<compile_context>
chip_gen: v6e
topology: v6e:2x2x1
jax: 0.10.0
libtpu: 0.0.40
codegen_flags: <defaults>
</compile_context>

<pallas_src>
import math

import jax
import jax.numpy as jnp
from jax import lax
from jax.experimental import pallas as pl
from jax.experimental.pallas import tpu as pltpu

EPS = 1e-5


# ----------------------------- in-kernel helpers -----------------------------

def _gelu(x):
    # tanh-approximate GELU (single EUP op); drift vs exact erf < ~1e-3.
    c = 0.7978845608028654  # sqrt(2/pi)
    return 0.5 * x * (1.0 + jnp.tanh(c * (x + 0.044715 * x * x * x)))


def _dot(a, w):
    # Weights arrive in the compute dtype (bf16 in production, f32 for the tight
    # validation compile); always accumulate in f32 on the MXU.
    return jnp.dot(a.astype(w.dtype), w, preferred_element_type=jnp.float32)


# ------------------------------ fused kernel ---------------------------------

def attn_kernel(x_ref,
                wbig_ref, bbig_ref, phase_ref, whtap_ref, wwtap_ref,
                wr1_ref, br1_ref, wr2_ref, br2_ref,
                wproj_ref, bproj_ref,
                w1_ref, b1_ref, w2_ref, b2_ref,
                o_ref):
    _, H, W, CP = x_ref.shape
    M = H * W

    x2d = x_ref[...].reshape(M, CP)                       # f32, lanes >= C are zero

    # ---------------- PATM block (leading BN folded into wbig) ----------------
    # One fused 1x1-conv matmul producing three 128-lane blocks:
    #   [theta packed | fc_h/fc_w packed | fc_c]
    # packed lane layout inside a block: [h_v0(C) | h_v1(C) | w_v0(C) | w_v1(C)]
    # (grouped-conv pairing: output channel c reads concat channels 2c, 2c+1).
    big = _dot(x2d, wbig_ref[...]) + bbig_ref[...]        # (M, 3*CP) f32
    theta = jnp.maximum(big[:, 0:CP], 0.0)                # theta convs (+BN) + ReLU
    xmod = big[:, CP:2 * CP]
    ccol = big[:, 2 * CP:3 * CP]

    # single-cos phase trick: cos-lanes get phase 0, sin-lanes get -pi/2
    v = xmod * jnp.cos(theta + phase_ref[...])            # (M, CP)
    v3 = v.reshape(H, W, CP)
    cc3 = ccol.reshape(H, W, CP)

    # Depthwise 7-tap convs (groups=C): two sequential passes over the packed
    # block.  Pass 1 shifts along W (h-stream lanes, tap weights zero elsewhere),
    # pass 2 shifts along H (w-stream lanes).  Zero padding handles boundaries.
    f32 = jnp.float32
    acc = jnp.zeros((H, W, CP), f32)
    zw = jnp.zeros((H, 3, CP), f32)
    vpw = jnp.concatenate([zw, v3, zw], axis=1)           # (H, W+6, CP)
    for t in range(7):
        acc = acc + vpw[:, t:t + W, :] * whtap_ref[t].reshape(1, 1, CP)
    zh = jnp.zeros((3, W, CP), f32)
    vph = jnp.concatenate([zh, v3, zh], axis=0)           # (H+6, W, CP)
    for t in range(7):
        acc = acc + vph[t:t + H, :, :] * wwtap_ref[t].reshape(1, 1, CP)

    # adaptive_avg_pool2d + reweight MLP.  The 4-lane-group sums (h_v0+h_v1 etc.)
    # are folded into wr1/wproj whose rows are replicated across the lane groups.
    s_packed = acc + cc3
    pooled = jnp.mean(s_packed.reshape(M, CP), axis=0, keepdims=True)   # (1, CP)
    z1 = _gelu(_dot(pooled, wr1_ref[...]) + br1_ref[...])               # (1, C/4)
    lg = _dot(z1, wr2_ref[...]) + br2_ref[...]                          # (1, 3*CP)
    # per-lane 3-way softmax: block A holds each lane's OWN branch logit,
    # block B the other h/w branch, block C the fc_c branch.
    la, lb, lc = lg[:, 0:CP], lg[:, CP:2 * CP], lg[:, 2 * CP:3 * CP]
    mx = jnp.maximum(jnp.maximum(la, lb), lc)
    ea = jnp.exp(la - mx)
    eb = jnp.exp(lb - mx)
    ec = jnp.exp(lc - mx)
    inv = pl.reciprocal(ea + eb + ec, approx=True)
    s_self = (ea * inv).reshape(1, 1, CP)   # = a0 on h-lanes, a1 on w-lanes
    s_c = (ec * inv).reshape(1, 1, CP)      # = a2 (fc_c branch) on all lanes

    y = acc * s_self + cc3 * s_c                                        # packed
    yp = _dot(y.reshape(M, CP), wproj_ref[...]) + bproj_ref[...]        # (M, CP)
    out1 = x2d + yp                                                     # residual 1

    # ---------------- MLP block (leading BN folded into w1/b1) ----------------
    hdn = _gelu(_dot(out1, w1_ref[...]) + b1_ref[...])
    y2 = _dot(hdn, w2_ref[...]) + b2_ref[...]
    o_ref[...] = (out1 + y2).reshape(1, H, W, CP)                       # residual 2


# ------------------------------ wrapper / glue --------------------------------

def _const_spec(shape):
    nd = len(shape)
    return pl.BlockSpec(shape, lambda b, nd=nd: (0,) * nd)


@jax.jit
def attn_layer_apply(xp, args):
    B, H, W, CP = xp.shape
    in_specs = [pl.BlockSpec((1, H, W, CP), lambda b: (b, 0, 0, 0))]
    in_specs += [_const_spec(a.shape) for a in args]
    return pl.pallas_call(
        attn_kernel,
        out_shape=jax.ShapeDtypeStruct((B, H, W, CP), jnp.float32),
        grid_spec=pltpu.PrefetchScalarGridSpec(
            num_scalar_prefetch=0,
            grid=(B,),                                    # one sample per step
            in_specs=in_specs,
            out_specs=pl.BlockSpec((1, H, W, CP), lambda b: (b, 0, 0, 0))),
        input_output_aliases={0: 0},                      # x block fully read first
        compiler_params=pltpu.CompilerParams(
            dimension_semantics=("parallel",)),           # megacore split on v7x
    )(xp, *args)


def init_params(key, C):
    """PyTorch-default (uniform +-1/sqrt(fan_in)) Conv2d init, torch layouts."""
    C4 = C // 4
    keys = iter(jax.random.split(key, 20))

    def u(shape, fan_in):
        b = 1.0 / math.sqrt(fan_in)
        return jax.random.uniform(next(keys), shape, jnp.float32, -b, b)

    P = {}
    P['w_th'] = u((C, C), C);       P['b_th'] = u((1, C), C)
    P['w_tw'] = u((C, C), C);       P['b_tw'] = u((1, C), C)
    P['w_fh'] = u((C, C), C)
    P['w_fw'] = u((C, C), C)
    P['w_fc'] = u((C, C), C)
    P['w_tfch'] = u((C, 2, 1, 7), 14)      # torch OIHW, groups=C
    P['w_tfcw'] = u((C, 2, 7, 1), 14)
    P['w_r1'] = u((C, C4), C);      P['b_r1'] = u((1, C4), C)
    P['w_r2'] = u((C4, 3 * C), C4); P['b_r2'] = u((1, 3 * C), C4)
    P['w_proj'] = u((C, C), C);     P['b_proj'] = u((1, C), C)
    P['w1'] = u((C, 2 * C), C);     P['b1'] = u((1, 2 * C), C)
    P['w2'] = u((2 * C, C), 2 * C); P['b2'] = u((1, C), 2 * C)
    return P


def kernel_params(P, C, CP, compute_dtype=jnp.bfloat16):
    """Fold BNs, pack lanes, permute channels, pad, cast.  All channel shuffling
    happens here - the kernel only does dense matmuls and elementwise math."""
    assert C % 4 == 0 and 4 * C <= CP
    C4 = C // 4
    HP = max(128, 2 * C)                   # padded MLP hidden width
    f32 = jnp.float32

    def pad_to(a, shape):
        out = jnp.zeros(shape, f32)
        return out.at[tuple(slice(0, d) for d in a.shape)].set(a.astype(f32))

    # eval-mode BatchNorm (PyTorch default stats) -> per-channel scale/bias
    def bn_sb():
        gamma = jnp.ones((C,), f32); beta = jnp.zeros((C,), f32)
        mean = jnp.zeros((C,), f32); var = jnp.ones((C,), f32)
        s = gamma / jnp.sqrt(var + EPS)
        return s, beta - mean * s

    bn0_s, bn0_b = bn_sb()     # leading BN of the PATM block
    bnt_s, bnt_b = bn_sb()     # BN inside theta_h_conv / theta_w_conv
    bn1_s, bn1_b = bn_sb()     # leading BN of the MLP block

    def fold1x1(Wc, bc, s_in, b_in, s_out=None, b_out=None):
        Wc = Wc.astype(f32)
        bc = jnp.zeros((Wc.shape[1],), f32) if bc is None else bc.astype(f32).reshape(-1)
        Wf = s_in[:, None] * Wc
        bf = b_in @ Wc + bc
        if s_out is not None:
            Wf = Wf * s_out[None, :]
            bf = bf * s_out + b_out
        return Wf, bf

    Wth, bth = fold1x1(P['w_th'], P['b_th'], bn0_s, bn0_b, bnt_s, bnt_b)
    Wtw, btw = fold1x1(P['w_tw'], P['b_tw'], bn0_s, bn0_b, bnt_s, bnt_b)
    Wfh, bfh = fold1x1(P['w_fh'], None, bn0_s, bn0_b)
    Wfw, bfw = fold1x1(P['w_fw'], None, bn0_s, bn0_b)
    Wfc, bfc = fold1x1(P['w_fc'], None, bn0_s, bn0_b)

    # packed lane layout: [h_v0(C) | h_v1(C) | w_v0(C) | w_v1(C) | pad]
    r0 = (2 * jnp.arange(C)) % C
    r1 = (2 * jnp.arange(C) + 1) % C

    blk_th_w = jnp.concatenate([Wth[:, r0], Wth[:, r1], Wtw[:, r0], Wtw[:, r1]], axis=1)
    blk_th_b = jnp.concatenate([bth[r0], bth[r1], btw[r0], btw[r1]])
    blk_x_w = jnp.concatenate([Wfh[:, r0], Wfh[:, r1], Wfw[:, r0], Wfw[:, r1]], axis=1)
    blk_x_b = jnp.concatenate([bfh[r0], bfh[r1], bfw[r0], bfw[r1]])

    w_big = jnp.concatenate([pad_to(blk_th_w, (CP, CP)),
                             pad_to(blk_x_w, (CP, CP)),
                             pad_to(Wfc, (CP, CP))], axis=1)             # (CP, 3CP)
    b_big = jnp.concatenate([pad_to(blk_th_b[None, :], (1, CP)),
                             pad_to(blk_x_b[None, :], (1, CP)),
                             pad_to(bfc[None, :], (1, CP))], axis=1)     # (1, 3CP)

    # single-cos phase: concat channel 2c(+j) < C -> cos (0), else sin (-pi/2)
    lane = jnp.arange(CP)
    phase = jnp.where((lane % C) < (C // 2), 0.0, -jnp.pi / 2.0)
    phase = jnp.where(lane < 4 * C, phase, 0.0).astype(f32).reshape(1, CP)

    # depthwise 7-tap weights, packed per lane (zero on the other stream's lanes)
    wt_h = P['w_tfch'].reshape(C, 2, 7).astype(f32)
    wt_w = P['w_tfcw'].reshape(C, 2, 7).astype(f32)
    wh_tap = jnp.zeros((7, CP), f32)
    wh_tap = wh_tap.at[:, 0:C].set(wt_h[:, 0, :].T).at[:, C:2 * C].set(wt_h[:, 1, :].T)
    ww_tap = jnp.zeros((7, CP), f32)
    ww_tap = ww_tap.at[:, 2 * C:3 * C].set(wt_w[:, 0, :].T).at[:, 3 * C:4 * C].set(wt_w[:, 1, :].T)
    wh_tap = wh_tap.reshape(7, 1, CP)
    ww_tap = ww_tap.reshape(7, 1, CP)

    # lane-group sums (h_v0+h_v1+w_v0+w_v1[+c]) are folded into these matmuls by
    # replicating the real C rows across the 4 lane groups.
    def rep_rows(Wc):
        return jnp.concatenate([Wc, Wc, Wc, Wc], axis=0)

    wr1 = pad_to(rep_rows(P['w_r1']), (CP, C4))
    br1 = P['b_r1'].astype(f32).reshape(1, C4)

    # reweight fc2: torch reshape(B, C, 3) -> branch k lives at output index 3c+k.
    # Packed so every lane sees (own branch | other h/w branch | fc_c branch).
    idx3 = 3 * jnp.arange(C)
    w_r2 = P['w_r2'].astype(f32)
    b_r2 = P['b_r2'].astype(f32).reshape(-1)
    w2b = [w_r2[:, idx3 + k] for k in range(3)]
    b2b = [b_r2[idx3 + k] for k in range(3)]
    LA_w = jnp.concatenate([w2b[0], w2b[0], w2b[1], w2b[1]], axis=1)
    LA_b = jnp.concatenate([b2b[0], b2b[0], b2b[1], b2b[1]])
    LB_w = jnp.concatenate([w2b[1], w2b[1], w2b[0], w2b[0]], axis=1)
    LB_b = jnp.concatenate([b2b[1], b2b[1], b2b[0], b2b[0]])
    LC_w = jnp.concatenate([w2b[2], w2b[2], w2b[2], w2b[2]], axis=1)
    LC_b = jnp.concatenate([b2b[2], b2b[2], b2b[2], b2b[2]])
    wr2 = jnp.concatenate([pad_to(LA_w, (C4, CP)), pad_to(LB_w, (C4, CP)),
                           pad_to(LC_w, (C4, CP))], axis=1)              # (C4, 3CP)
    br2 = jnp.concatenate([pad_to(LA_b[None, :], (1, CP)), pad_to(LB_b[None, :], (1, CP)),
                           pad_to(LC_b[None, :], (1, CP))], axis=1)

    wproj = pad_to(rep_rows(P['w_proj']), (CP, CP))
    bproj = pad_to(P['b_proj'].reshape(1, C), (1, CP))

    # MLP block: fold its leading BN into fc1
    W1f, b1f = fold1x1(P['w1'], P['b1'], bn1_s, bn1_b)
    w1p = pad_to(W1f, (CP, HP)); b1p = pad_to(b1f[None, :], (1, HP))
    w2p = pad_to(P['w2'], (HP, CP)); b2p = pad_to(P['b2'].reshape(1, C), (1, CP))

    cd = lambda a: a.astype(compute_dtype)
    return (cd(w_big), b_big, phase, wh_tap, ww_tap,
            cd(wr1), br1, cd(wr2), br2,
            cd(wproj), bproj,
            cd(w1p), b1p, cd(w2p), b2p)


# ----------------------- pure-JAX NCHW reference (check) ----------------------

def reference_forward(x_nchw, P, approx_gelu=False):
    B, C, H, W = x_nchw.shape
    hi = lax.Precision.HIGHEST

    def conv1x1(x, w, b=None):
        y = jnp.einsum('bihw,io->bohw', x, w, precision=hi)
        if b is not None:
            y = y + b.reshape(1, -1, 1, 1)
        return y

    def bn(x):  # eval-mode BatchNorm2d with default stats
        return x * (1.0 / jnp.sqrt(1.0 + EPS))

    def gelu(x):
        return jax.nn.gelu(x, approximate=approx_gelu)

    x = x_nchw
    xb = bn(x)
    th = jax.nn.relu(bn(conv1x1(xb, P['w_th'], P['b_th'])))
    tw = jax.nn.relu(bn(conv1x1(xb, P['w_tw'], P['b_tw'])))
    xh = conv1x1(xb, P['w_fh'])
    xw = conv1x1(xb, P['w_fw'])
    cc = conv1x1(xb, P['w_fc'])
    xh_cat = jnp.concatenate([xh * jnp.cos(th), xh * jnp.sin(th)], axis=1)
    xw_cat = jnp.concatenate([xw * jnp.cos(tw), xw * jnp.sin(tw)], axis=1)
    h = lax.conv_general_dilated(xh_cat, P['w_tfch'], (1, 1), ((0, 0), (3, 3)),
                                 dimension_numbers=('NCHW', 'OIHW', 'NCHW'),
                                 feature_group_count=C, precision=hi)
    w_ = lax.conv_general_dilated(xw_cat, P['w_tfcw'], (1, 1), ((3, 3), (0, 0)),
                                  dimension_numbers=('NCHW', 'OIHW', 'NCHW'),
                                  feature_group_count=C, precision=hi)
    a = jnp.mean(h + w_ + cc, axis=(2, 3), keepdims=True)
    a = conv1x1(a, P['w_r1'], P['b_r1'])
    a = gelu(a)
    a = conv1x1(a, P['w_r2'], P['b_r2'])                 # (B, 3C, 1, 1)
    a = a.reshape(B, C, 3).transpose(2, 0, 1)
    a = jax.nn.softmax(a, axis=0)[..., None, None]
    y = h * a[0] + w_ * a[1] + cc * a[2]
    y = conv1x1(y, P['w_proj'], P['b_proj'])
    out1 = x + y

    xb2 = bn(out1)
    y2 = conv1x1(xb2, P['w1'], P['b1'])
    y2 = gelu(y2)
    y2 = conv1x1(y2, P['w2'], P['b2'])
    return out1 + y2


# ----------------------------------- main -------------------------------------

if __name__ == "__main__":
    B, C, H, W = 2, 32, 8, 8    # dim=32 (divisible by 4), small spatial grid
    CP = 128                    # channel dim zero-padded to the full lane width

    key = jax.random.PRNGKey(0)
    kx, kp = jax.random.split(key)
    x_nchw = jax.random.normal(kx, (B, C, H, W), jnp.float32)
    P = init_params(kp, C)

    x_nhwc = jnp.transpose(x_nchw, (0, 2, 3, 1))
    xp = jnp.pad(x_nhwc, ((0, 0), (0, 0), (0, 0), (0, CP - C)))

    # 1) Structural check: same kernel compiled with f32 weights vs a tanh-GELU
    #    f32 reference at a tight tolerance (catches packing/permutation bugs
    #    that the loose bf16 tolerance could hide).
    args32 = kernel_params(P, C, CP, compute_dtype=jnp.float32)
    out32 = jax.block_until_ready(attn_layer_apply(xp, args32))
    got32 = jnp.transpose(out32[..., :C], (0, 3, 1, 2))
    ref_t = reference_forward(x_nchw, P, approx_gelu=True)
    if not jnp.allclose(got32, ref_t, atol=2e-2, rtol=2e-2):
        raise AssertionError(
            f"structural mismatch, max abs err = {jnp.max(jnp.abs(got32 - ref_t))}")

    # 2) Production config: bf16 MXU weights vs the exact-erf-GELU reference.
    #    Tolerance covers bf16 matmul drift + tanh-GELU approximation.
    args16 = kernel_params(P, C, CP, compute_dtype=jnp.bfloat16)
    out16 = jax.block_until_ready(attn_layer_apply(xp, args16))
    got16 = jnp.transpose(out16[..., :C], (0, 3, 1, 2))
    ref_e = reference_forward(x_nchw, P, approx_gelu=False)
    if not jnp.allclose(got16, ref_e, atol=5e-2, rtol=5e-2):
        raise AssertionError(
            f"kernel/reference mismatch, max abs err = {jnp.max(jnp.abs(got16 - ref_e))}")

    print("KERNEL_OK")
</pallas_src>

<mosaic_0001>
module attributes {stable_mosaic.version = 11 : i64} {
  func.func @attn_kernel(%arg0: i32, %arg1: memref<1x8x8x128xf32, #tpu.memory_space<vmem>>, %arg2: memref<128x384xf32, #tpu.memory_space<vmem>>, %arg3: memref<1x384xf32, #tpu.memory_space<vmem>>, %arg4: memref<1x128xf32, #tpu.memory_space<vmem>>, %arg5: memref<7x1x128xf32, #tpu.memory_space<vmem>>, %arg6: memref<7x1x128xf32, #tpu.memory_space<vmem>>, %arg7: memref<128x8xf32, #tpu.memory_space<vmem>>, %arg8: memref<1x8xf32, #tpu.memory_space<vmem>>, %arg9: memref<8x384xf32, #tpu.memory_space<vmem>>, %arg10: memref<1x384xf32, #tpu.memory_space<vmem>>, %arg11: memref<128x128xf32, #tpu.memory_space<vmem>>, %arg12: memref<1x128xf32, #tpu.memory_space<vmem>>, %arg13: memref<128x128xf32, #tpu.memory_space<vmem>>, %arg14: memref<1x128xf32, #tpu.memory_space<vmem>>, %arg15: memref<128x128xf32, #tpu.memory_space<vmem>>, %arg16: memref<1x128xf32, #tpu.memory_space<vmem>>, %arg17: memref<1x8x8x128xf32, #tpu.memory_space<vmem>>) attributes {dimension_semantics = [#tpu.dimension_semantics<parallel>], iteration_bounds = array<i64: 2>, scalar_prefetch = 0 : i64, scratch_operands = 0 : i64, tpu.core_type = #tpu.core_type<tc>, window_params = [{transform_indices = @transform_0, window_bounds = array<i64: 1, 8, 8, 128>}, {pipeline_mode = #tpu.pipeline_mode<synchronous>, transform_indices = @transform_1, window_bounds = array<i64: 128, 384>}, {pipeline_mode = #tpu.pipeline_mode<synchronous>, transform_indices = @transform_2, window_bounds = array<i64: 1, 384>}, {pipeline_mode = #tpu.pipeline_mode<synchronous>, transform_indices = @transform_3, window_bounds = array<i64: 1, 128>}, {pipeline_mode = #tpu.pipeline_mode<synchronous>, transform_indices = @transform_4, window_bounds = array<i64: 7, 1, 128>}, {pipeline_mode = #tpu.pipeline_mode<synchronous>, transform_indices = @transform_5, window_bounds = array<i64: 7, 1, 128>}, {pipeline_mode = #tpu.pipeline_mode<synchronous>, transform_indices = @transform_6, window_bounds = array<i64: 128, 8>}, {pipeline_mode = #tpu.pipeline_mode<synchronous>, transform_indices = @transform_7, window_bounds = array<i64: 1, 8>}, {pipeline_mode = #tpu.pipeline_mode<synchronous>, transform_indices = @transform_8, window_bounds = array<i64: 8, 384>}, {pipeline_mode = #tpu.pipeline_mode<synchronous>, transform_indices = @transform_9, window_bounds = array<i64: 1, 384>}, {pipeline_mode = #tpu.pipeline_mode<synchronous>, transform_indices = @transform_10, window_bounds = array<i64: 128, 128>}, {pipeline_mode = #tpu.pipeline_mode<synchronous>, transform_indices = @transform_11, window_bounds = array<i64: 1, 128>}, {pipeline_mode = #tpu.pipeline_mode<synchronous>, transform_indices = @transform_12, window_bounds = array<i64: 128, 128>}, {pipeline_mode = #tpu.pipeline_mode<synchronous>, transform_indices = @transform_13, window_bounds = array<i64: 1, 128>}, {pipeline_mode = #tpu.pipeline_mode<synchronous>, transform_indices = @transform_14, window_bounds = array<i64: 128, 128>}, {pipeline_mode = #tpu.pipeline_mode<synchronous>, transform_indices = @transform_15, window_bounds = array<i64: 1, 128>}, {transform_indices = @transform_16, window_bounds = array<i64: 1, 8, 8, 128>}]} {
    %c0 = arith.constant 0 : index
    %c0_0 = arith.constant 0 : index
    %c0_1 = arith.constant 0 : index
    %c0_2 = arith.constant 0 : index
    %0 = vector.load %arg1[%c0, %c0_0, %c0_1, %c0_2] : memref<1x8x8x128xf32, #tpu.memory_space<vmem>>, vector<1x8x8x128xf32>
    %1 = vector.shape_cast %0 : vector<1x8x8x128xf32> to vector<64x128xf32>
    %c0_3 = arith.constant 0 : index
    %c0_4 = arith.constant 0 : index
    %2 = vector.load %arg2[%c0_3, %c0_4] : memref<128x384xf32, #tpu.memory_space<vmem>>, vector<128x384xf32>
    %cst = arith.constant dense<0.000000e+00> : vector<64x384xf32>
    %3 = tpu.matmul %1, %2, %cst {dimension_numbers = #tpu.dot_dimension_numbers<[1], [0], [0], [1], [0, 0, 1, 1], [], []>} : vector<64x128xf32>, vector<128x384xf32>, vector<64x384xf32> -> vector<64x384xf32>
    %c0_5 = arith.constant 0 : index
    %c0_6 = arith.constant 0 : index
    %4 = vector.load %arg3[%c0_5, %c0_6] : memref<1x384xf32, #tpu.memory_space<vmem>>, vector<1x384xf32>
    %5 = vector.broadcast %4 : vector<1x384xf32> to vector<64x384xf32>
    %6 = arith.addf %3, %5 : vector<64x384xf32>
    %7 = vector.extract_strided_slice %6 {offsets = [0, 0], sizes = [64, 128], strides = [1, 1]} : vector<64x384xf32> to vector<64x128xf32>
    %cst_7 = arith.constant 0.000000e+00 : f32
    %8 = vector.broadcast %cst_7 : f32 to vector<64x128xf32>
    %9 = arith.maximumf %7, %8 : vector<64x128xf32>
    %10 = vector.extract_strided_slice %6 {offsets = [0, 128], sizes = [64, 128], strides = [1, 1]} : vector<64x384xf32> to vector<64x128xf32>
    %11 = vector.extract_strided_slice %6 {offsets = [0, 256], sizes = [64, 128], strides = [1, 1]} : vector<64x384xf32> to vector<64x128xf32>
    %c0_8 = arith.constant 0 : index
    %c0_9 = arith.constant 0 : index
    %12 = vector.load %arg4[%c0_8, %c0_9] : memref<1x128xf32, #tpu.memory_space<vmem>>, vector<1x128xf32>
    %13 = vector.broadcast %12 : vector<1x128xf32> to vector<64x128xf32>
    %14 = arith.addf %9, %13 : vector<64x128xf32>
    %15 = math.cos %14 : vector<64x128xf32>
    %16 = arith.mulf %10, %15 : vector<64x128xf32>
    %17 = vector.shape_cast %16 : vector<64x128xf32> to vector<8x8x128xf32>
    %18 = vector.shape_cast %11 : vector<64x128xf32> to vector<8x8x128xf32>
    %cst_10 = arith.constant 0.000000e+00 : f32
    %19 = vector.broadcast %cst_10 : f32 to vector<8x8x128xf32>
    %cst_11 = arith.constant 0.000000e+00 : f32
    %20 = vector.broadcast %cst_11 : f32 to vector<8x3x128xf32>
    %21 = tpu.concatenate %20, %17, %20 in 1 : vector<8x3x128xf32>, vector<8x8x128xf32>, vector<8x3x128xf32> -> vector<8x14x128xf32>
    %22 = vector.extract_strided_slice %21 {offsets = [0, 0, 0], sizes = [8, 8, 128], strides = [1, 1, 1]} : vector<8x14x128xf32> to vector<8x8x128xf32>
    %c0_12 = arith.constant 0 : index
    %c0_13 = arith.constant 0 : index
    %c0_14 = arith.constant 0 : index
    %23 = vector.load %arg5[%c0_12, %c0_13, %c0_14] : memref<7x1x128xf32, #tpu.memory_space<vmem>>, vector<1x1x128xf32>
    %24 = vector.shape_cast %23 : vector<1x1x128xf32> to vector<1x128xf32>
    %25 = vector.shape_cast %24 : vector<1x128xf32> to vector<1x1x128xf32>
    %26 = vector.broadcast %25 : vector<1x1x128xf32> to vector<8x8x128xf32>
    %27 = arith.mulf %22, %26 : vector<8x8x128xf32>
    %28 = arith.addf %19, %27 : vector<8x8x128xf32>
    %29 = vector.extract_strided_slice %21 {offsets = [0, 1, 0], sizes = [8, 8, 128], strides = [1, 1, 1]} : vector<8x14x128xf32> to vector<8x8x128xf32>
    %c1 = arith.constant 1 : index
    %c0_15 = arith.constant 0 : index
    %c0_16 = arith.constant 0 : index
    %30 = vector.load %arg5[%c1, %c0_15, %c0_16] : memref<7x1x128xf32, #tpu.memory_space<vmem>>, vector<1x1x128xf32>
    %31 = vector.shape_cast %30 : vector<1x1x128xf32> to vector<1x128xf32>
    %32 = vector.shape_cast %31 : vector<1x128xf32> to vector<1x1x128xf32>
    %33 = vector.broadcast %32 : vector<1x1x128xf32> to vector<8x8x128xf32>
    %34 = arith.mulf %29, %33 : vector<8x8x128xf32>
    %35 = arith.addf %28, %34 : vector<8x8x128xf32>
    %36 = vector.extract_strided_slice %21 {offsets = [0, 2, 0], sizes = [8, 8, 128], strides = [1, 1, 1]} : vector<8x14x128xf32> to vector<8x8x128xf32>
    %c2 = arith.constant 2 : index
    %c0_17 = arith.constant 0 : index
    %c0_18 = arith.constant 0 : index
    %37 = vector.load %arg5[%c2, %c0_17, %c0_18] : memref<7x1x128xf32, #tpu.memory_space<vmem>>, vector<1x1x128xf32>
    %38 = vector.shape_cast %37 : vector<1x1x128xf32> to vector<1x128xf32>
    %39 = vector.shape_cast %38 : vector<1x128xf32> to vector<1x1x128xf32>
    %40 = vector.broadcast %39 : vector<1x1x128xf32> to vector<8x8x128xf32>
    %41 = arith.mulf %36, %40 : vector<8x8x128xf32>
    %42 = arith.addf %35, %41 : vector<8x8x128xf32>
    %43 = vector.extract_strided_slice %21 {offsets = [0, 3, 0], sizes = [8, 8, 128], strides = [1, 1, 1]} : vector<8x14x128xf32> to vector<8x8x128xf32>
    %c3 = arith.constant 3 : index
    %c0_19 = arith.constant 0 : index
    %c0_20 = arith.constant 0 : index
    %44 = vector.load %arg5[%c3, %c0_19, %c0_20] : memref<7x1x128xf32, #tpu.memory_space<vmem>>, vector<1x1x128xf32>
    %45 = vector.shape_cast %44 : vector<1x1x128xf32> to vector<1x128xf32>
    %46 = vector.shape_cast %45 : vector<1x128xf32> to vector<1x1x128xf32>
    %47 = vector.broadcast %46 : vector<1x1x128xf32> to vector<8x8x128xf32>
    %48 = arith.mulf %43, %47 : vector<8x8x128xf32>
    %49 = arith.addf %42, %48 : vector<8x8x128xf32>
    %50 = vector.extract_strided_slice %21 {offsets = [0, 4, 0], sizes = [8, 8, 128], strides = [1, 1, 1]} : vector<8x14x128xf32> to vector<8x8x128xf32>
    %c4 = arith.constant 4 : index
    %c0_21 = arith.constant 0 : index
    %c0_22 = arith.constant 0 : index
    %51 = vector.load %arg5[%c4, %c0_21, %c0_22] : memref<7x1x128xf32, #tpu.memory_space<vmem>>, vector<1x1x128xf32>
    %52 = vector.shape_cast %51 : vector<1x1x128xf32> to vector<1x128xf32>
    %53 = vector.shape_cast %52 : vector<1x128xf32> to vector<1x1x128xf32>
    %54 = vector.broadcast %53 : vector<1x1x128xf32> to vector<8x8x128xf32>
    %55 = arith.mulf %50, %54 : vector<8x8x128xf32>
    %56 = arith.addf %49, %55 : vector<8x8x128xf32>
    %57 = vector.extract_strided_slice %21 {offsets = [0, 5, 0], sizes = [8, 8, 128], strides = [1, 1, 1]} : vector<8x14x128xf32> to vector<8x8x128xf32>
    %c5 = arith.constant 5 : index
    %c0_23 = arith.constant 0 : index
    %c0_24 = arith.constant 0 : index
    %58 = vector.load %arg5[%c5, %c0_23, %c0_24] : memref<7x1x128xf32, #tpu.memory_space<vmem>>, vector<1x1x128xf32>
    %59 = vector.shape_cast %58 : vector<1x1x128xf32> to vector<1x128xf32>
    %60 = vector.shape_cast %59 : vector<1x128xf32> to vector<1x1x128xf32>
    %61 = vector.broadcast %60 : vector<1x1x128xf32> to vector<8x8x128xf32>
    %62 = arith.mulf %57, %61 : vector<8x8x128xf32>
    %63 = arith.addf %56, %62 : vector<8x8x128xf32>
    %64 = vector.extract_strided_slice %21 {offsets = [0, 6, 0], sizes = [8, 8, 128], strides = [1, 1, 1]} : vector<8x14x128xf32> to vector<8x8x128xf32>
    %c6 = arith.constant 6 : index
    %c0_25 = arith.constant 0 : index
    %c0_26 = arith.constant 0 : index
    %65 = vector.load %arg5[%c6, %c0_25, %c0_26] : memref<7x1x128xf32, #tpu.memory_space<vmem>>, vector<1x1x128xf32>
    %66 = vector.shape_cast %65 : vector<1x1x128xf32> to vector<1x128xf32>
    %67 = vector.shape_cast %66 : vector<1x128xf32> to vector<1x1x128xf32>
    %68 = vector.broadcast %67 : vector<1x1x128xf32> to vector<8x8x128xf32>
    %69 = arith.mulf %64, %68 : vector<8x8x128xf32>
    %70 = arith.addf %63, %69 : vector<8x8x128xf32>
    %cst_27 = arith.constant 0.000000e+00 : f32
    %71 = vector.broadcast %cst_27 : f32 to vector<3x8x128xf32>
    %72 = tpu.concatenate %71, %17, %71 in 0 : vector<3x8x128xf32>, vector<8x8x128xf32>, vector<3x8x128xf32> -> vector<14x8x128xf32>
    %73 = vector.extract_strided_slice %72 {offsets = [0, 0, 0], sizes = [8, 8, 128], strides = [1, 1, 1]} : vector<14x8x128xf32> to vector<8x8x128xf32>
    %c0_28 = arith.constant 0 : index
    %c0_29 = arith.constant 0 : index
    %c0_30 = arith.constant 0 : index
    %74 = vector.load %arg6[%c0_28, %c0_29, %c0_30] : memref<7x1x128xf32, #tpu.memory_space<vmem>>, vector<1x1x128xf32>
    %75 = vector.shape_cast %74 : vector<1x1x128xf32> to vector<1x128xf32>
    %76 = vector.shape_cast %75 : vector<1x128xf32> to vector<1x1x128xf32>
    %77 = vector.broadcast %76 : vector<1x1x128xf32> to vector<8x8x128xf32>
    %78 = arith.mulf %73, %77 : vector<8x8x128xf32>
    %79 = arith.addf %70, %78 : vector<8x8x128xf32>
    %80 = vector.extract_strided_slice %72 {offsets = [1, 0, 0], sizes = [8, 8, 128], strides = [1, 1, 1]} : vector<14x8x128xf32> to vector<8x8x128xf32>
    %c1_31 = arith.constant 1 : index
    %c0_32 = arith.constant 0 : index
    %c0_33 = arith.constant 0 : index
    %81 = vector.load %arg6[%c1_31, %c0_32, %c0_33] : memref<7x1x128xf32, #tpu.memory_space<vmem>>, vector<1x1x128xf32>
    %82 = vector.shape_cast %81 : vector<1x1x128xf32> to vector<1x128xf32>
    %83 = vector.shape_cast %82 : vector<1x128xf32> to vector<1x1x128xf32>
    %84 = vector.broadcast %83 : vector<1x1x128xf32> to vector<8x8x128xf32>
    %85 = arith.mulf %80, %84 : vector<8x8x128xf32>
    %86 = arith.addf %79, %85 : vector<8x8x128xf32>
    %87 = vector.extract_strided_slice %72 {offsets = [2, 0, 0], sizes = [8, 8, 128], strides = [1, 1, 1]} : vector<14x8x128xf32> to vector<8x8x128xf32>
    %c2_34 = arith.constant 2 : index
    %c0_35 = arith.constant 0 : index
    %c0_36 = arith.constant 0 : index
    %88 = vector.load %arg6[%c2_34, %c0_35, %c0_36] : memref<7x1x128xf32, #tpu.memory_space<vmem>>, vector<1x1x128xf32>
    %89 = vector.shape_cast %88 : vector<1x1x128xf32> to vector<1x128xf32>
    %90 = vector.shape_cast %89 : vector<1x128xf32> to vector<1x1x128xf32>
    %91 = vector.broadcast %90 : vector<1x1x128xf32> to vector<8x8x128xf32>
    %92 = arith.mulf %87, %91 : vector<8x8x128xf32>
    %93 = arith.addf %86, %92 : vector<8x8x128xf32>
    %94 = vector.extract_strided_slice %72 {offsets = [3, 0, 0], sizes = [8, 8, 128], strides = [1, 1, 1]} : vector<14x8x128xf32> to vector<8x8x128xf32>
    %c3_37 = arith.constant 3 : index
    %c0_38 = arith.constant 0 : index
    %c0_39 = arith.constant 0 : index
    %95 = vector.load %arg6[%c3_37, %c0_38, %c0_39] : memref<7x1x128xf32, #tpu.memory_space<vmem>>, vector<1x1x128xf32>
    %96 = vector.shape_cast %95 : vector<1x1x128xf32> to vector<1x128xf32>
    %97 = vector.shape_cast %96 : vector<1x128xf32> to vector<1x1x128xf32>
    %98 = vector.broadcast %97 : vector<1x1x128xf32> to vector<8x8x128xf32>
    %99 = arith.mulf %94, %98 : vector<8x8x128xf32>
    %100 = arith.addf %93, %99 : vector<8x8x128xf32>
    %101 = vector.extract_strided_slice %72 {offsets = [4, 0, 0], sizes = [8, 8, 128], strides = [1, 1, 1]} : vector<14x8x128xf32> to vector<8x8x128xf32>
    %c4_40 = arith.constant 4 : index
    %c0_41 = arith.constant 0 : index
    %c0_42 = arith.constant 0 : index
    %102 = vector.load %arg6[%c4_40, %c0_41, %c0_42] : memref<7x1x128xf32, #tpu.memory_space<vmem>>, vector<1x1x128xf32>
    %103 = vector.shape_cast %102 : vector<1x1x128xf32> to vector<1x128xf32>
    %104 = vector.shape_cast %103 : vector<1x128xf32> to vector<1x1x128xf32>
    %105 = vector.broadcast %104 : vector<1x1x128xf32> to vector<8x8x128xf32>
    %106 = arith.mulf %101, %105 : vector<8x8x128xf32>
    %107 = arith.addf %100, %106 : vector<8x8x128xf32>
    %108 = vector.extract_strided_slice %72 {offsets = [5, 0, 0], sizes = [8, 8, 128], strides = [1, 1, 1]} : vector<14x8x128xf32> to vector<8x8x128xf32>
    %c5_43 = arith.constant 5 : index
    %c0_44 = arith.constant 0 : index
    %c0_45 = arith.constant 0 : index
    %109 = vector.load %arg6[%c5_43, %c0_44, %c0_45] : memref<7x1x128xf32, #tpu.memory_space<vmem>>, vector<1x1x128xf32>
    %110 = vector.shape_cast %109 : vector<1x1x128xf32> to vector<1x128xf32>
    %111 = vector.shape_cast %110 : vector<1x128xf32> to vector<1x1x128xf32>
    %112 = vector.broadcast %111 : vector<1x1x128xf32> to vector<8x8x128xf32>
    %113 = arith.mulf %108, %112 : vector<8x8x128xf32>
    %114 = arith.addf %107, %113 : vector<8x8x128xf32>
    %115 = vector.extract_strided_slice %72 {offsets = [6, 0, 0], sizes = [8, 8, 128], strides = [1, 1, 1]} : vector<14x8x128xf32> to vector<8x8x128xf32>
    %c6_46 = arith.constant 6 : index
    %c0_47 = arith.constant 0 : index
    %c0_48 = arith.constant 0 : index
    %116 = vector.load %arg6[%c6_46, %c0_47, %c0_48] : memref<7x1x128xf32, #tpu.memory_space<vmem>>, vector<1x1x128xf32>
    %117 = vector.shape_cast %116 : vector<1x1x128xf32> to vector<1x128xf32>
    %118 = vector.shape_cast %117 : vector<1x128xf32> to vector<1x1x128xf32>
    %119 = vector.broadcast %118 : vector<1x1x128xf32> to vector<8x8x128xf32>
    %120 = arith.mulf %115, %119 : vector<8x8x128xf32>
    %121 = arith.addf %114, %120 : vector<8x8x128xf32>
    %122 = arith.addf %121, %18 : vector<8x8x128xf32>
    %123 = vector.shape_cast %122 : vector<8x8x128xf32> to vector<64x128xf32>
    %cst_49 = arith.constant dense<0.000000e+00> : vector<128xf32>
    %124 = vector.multi_reduction <add>, %123, %cst_49 [0] : vector<64x128xf32> to vector<128xf32>
    %125 = vector.shape_cast %124 : vector<128xf32> to vector<1x128xf32>
    %cst_50 = arith.constant 6.400000e+01 : f32
    %126 = vector.broadcast %cst_50 : f32 to vector<1x128xf32>
    %127 = arith.divf %125, %126 : vector<1x128xf32>
    %c0_51 = arith.constant 0 : index
    %c0_52 = arith.constant 0 : index
    %128 = vector.load %arg7[%c0_51, %c0_52] : memref<128x8xf32, #tpu.memory_space<vmem>>, vector<128x8xf32>
    %cst_53 = arith.constant dense<0.000000e+00> : vector<1x8xf32>
    %129 = tpu.matmul %127, %128, %cst_53 {dimension_numbers = #tpu.dot_dimension_numbers<[1], [0], [0], [1], [0, 0, 1, 1], [], []>} : vector<1x128xf32>, vector<128x8xf32>, vector<1x8xf32> -> vector<1x8xf32>
    %c0_54 = arith.constant 0 : index
    %c0_55 = arith.constant 0 : index
    %130 = vector.load %arg8[%c0_54, %c0_55] : memref<1x8xf32, #tpu.memory_space<vmem>>, vector<1x8xf32>
    %131 = arith.addf %129, %130 : vector<1x8xf32>
    %cst_56 = arith.constant 5.000000e-01 : f32
    %132 = vector.broadcast %cst_56 : f32 to vector<1x8xf32>
    %133 = arith.mulf %132, %131 : vector<1x8xf32>
    %cst_57 = arith.constant 4.471500e-02 : f32
    %134 = vector.broadcast %cst_57 : f32 to vector<1x8xf32>
    %135 = arith.mulf %134, %131 : vector<1x8xf32>
    %136 = arith.mulf %135, %131 : vector<1x8xf32>
    %137 = arith.mulf %136, %131 : vector<1x8xf32>
    %138 = arith.addf %131, %137 : vector<1x8xf32>
    %cst_58 = arith.constant 0.797884583 : f32
    %139 = vector.broadcast %cst_58 : f32 to vector<1x8xf32>
    %140 = arith.mulf %139, %138 : vector<1x8xf32>
    %141 = math.tanh %140 : vector<1x8xf32>
    %cst_59 = arith.constant 1.000000e+00 : f32
    %142 = vector.broadcast %cst_59 : f32 to vector<1x8xf32>
    %143 = arith.addf %142, %141 : vector<1x8xf32>
    %144 = arith.mulf %133, %143 : vector<1x8xf32>
    %c0_60 = arith.constant 0 : index
    %c0_61 = arith.constant 0 : index
    %145 = vector.load %arg9[%c0_60, %c0_61] : memref<8x384xf32, #tpu.memory_space<vmem>>, vector<8x384xf32>
    %cst_62 = arith.constant dense<0.000000e+00> : vector<1x384xf32>
    %146 = tpu.matmul %144, %145, %cst_62 {dimension_numbers = #tpu.dot_dimension_numbers<[1], [0], [0], [1], [0, 0, 1, 1], [], []>} : vector<1x8xf32>, vector<8x384xf32>, vector<1x384xf32> -> vector<1x384xf32>
    %c0_63 = arith.constant 0 : index
    %c0_64 = arith.constant 0 : index
    %147 = vector.load %arg10[%c0_63, %c0_64] : memref<1x384xf32, #tpu.memory_space<vmem>>, vector<1x384xf32>
    %148 = arith.addf %146, %147 : vector<1x384xf32>
    %149 = vector.extract_strided_slice %148 {offsets = [0, 0], sizes = [1, 128], strides = [1, 1]} : vector<1x384xf32> to vector<1x128xf32>
    %150 = vector.extract_strided_slice %148 {offsets = [0, 128], sizes = [1, 128], strides = [1, 1]} : vector<1x384xf32> to vector<1x128xf32>
    %151 = vector.extract_strided_slice %148 {offsets = [0, 256], sizes = [1, 128], strides = [1, 1]} : vector<1x384xf32> to vector<1x128xf32>
    %152 = arith.maximumf %149, %150 : vector<1x128xf32>
    %153 = arith.maximumf %152, %151 : vector<1x128xf32>
    %154 = arith.subf %149, %153 : vector<1x128xf32>
    %155 = math.exp %154 : vector<1x128xf32>
    %156 = arith.subf %150, %153 : vector<1x128xf32>
    %157 = math.exp %156 : vector<1x128xf32>
    %158 = arith.subf %151, %153 : vector<1x128xf32>
    %159 = math.exp %158 : vector<1x128xf32>
    %160 = arith.addf %155, %157 : vector<1x128xf32>
    %161 = arith.addf %160, %159 : vector<1x128xf32>
    %162 = tpu.reciprocal %161 {approx = true} : vector<1x128xf32> -> vector<1x128xf32>
    %163 = arith.mulf %155, %162 : vector<1x128xf32>
    %164 = vector.shape_cast %163 : vector<1x128xf32> to vector<1x1x128xf32>
    %165 = arith.mulf %159, %162 : vector<1x128xf32>
    %166 = vector.shape_cast %165 : vector<1x128xf32> to vector<1x1x128xf32>
    %167 = vector.broadcast %164 : vector<1x1x128xf32> to vector<8x8x128xf32>
    %168 = arith.mulf %121, %167 : vector<8x8x128xf32>
    %169 = vector.broadcast %166 : vector<1x1x128xf32> to vector<8x8x128xf32>
    %170 = arith.mulf %18, %169 : vector<8x8x128xf32>
    %171 = arith.addf %168, %170 : vector<8x8x128xf32>
    %172 = vector.shape_cast %171 : vector<8x8x128xf32> to vector<64x128xf32>
    %c0_65 = arith.constant 0 : index
    %c0_66 = arith.constant 0 : index
    %173 = vector.load %arg11[%c0_65, %c0_66] : memref<128x128xf32, #tpu.memory_space<vmem>>, vector<128x128xf32>
    %cst_67 = arith.constant dense<0.000000e+00> : vector<64x128xf32>
    %174 = tpu.matmul %172, %173, %cst_67 {dimension_numbers = #tpu.dot_dimension_numbers<[1], [0], [0], [1], [0, 0, 1, 1], [], []>} : vector<64x128xf32>, vector<128x128xf32>, vector<64x128xf32> -> vector<64x128xf32>
    %c0_68 = arith.constant 0 : index
    %c0_69 = arith.constant 0 : index
    %175 = vector.load %arg12[%c0_68, %c0_69] : memref<1x128xf32, #tpu.memory_space<vmem>>, vector<1x128xf32>
    %176 = vector.broadcast %175 : vector<1x128xf32> to vector<64x128xf32>
    %177 = arith.addf %174, %176 : vector<64x128xf32>
    %178 = arith.addf %1, %177 : vector<64x128xf32>
    %c0_70 = arith.constant 0 : index
    %c0_71 = arith.constant 0 : index
    %179 = vector.load %arg13[%c0_70, %c0_71] : memref<128x128xf32, #tpu.memory_space<vmem>>, vector<128x128xf32>
    %cst_72 = arith.constant dense<0.000000e+00> : vector<64x128xf32>
    %180 = tpu.matmul %178, %179, %cst_72 {dimension_numbers = #tpu.dot_dimension_numbers<[1], [0], [0], [1], [0, 0, 1, 1], [], []>} : vector<64x128xf32>, vector<128x128xf32>, vector<64x128xf32> -> vector<64x128xf32>
    %c0_73 = arith.constant 0 : index
    %c0_74 = arith.constant 0 : index
    %181 = vector.load %arg14[%c0_73, %c0_74] : memref<1x128xf32, #tpu.memory_space<vmem>>, vector<1x128xf32>
    %182 = vector.broadcast %181 : vector<1x128xf32> to vector<64x128xf32>
    %183 = arith.addf %180, %182 : vector<64x128xf32>
    %cst_75 = arith.constant 5.000000e-01 : f32
    %184 = vector.broadcast %cst_75 : f32 to vector<64x128xf32>
    %185 = arith.mulf %184, %183 : vector<64x128xf32>
    %cst_76 = arith.constant 4.471500e-02 : f32
    %186 = vector.broadcast %cst_76 : f32 to vector<64x128xf32>
    %187 = arith.mulf %186, %183 : vector<64x128xf32>
    %188 = arith.mulf %187, %183 : vector<64x128xf32>
    %189 = arith.mulf %188, %183 : vector<64x128xf32>
    %190 = arith.addf %183, %189 : vector<64x128xf32>
    %cst_77 = arith.constant 0.797884583 : f32
    %191 = vector.broadcast %cst_77 : f32 to vector<64x128xf32>
    %192 = arith.mulf %191, %190 : vector<64x128xf32>
    %193 = math.tanh %192 : vector<64x128xf32>
    %cst_78 = arith.constant 1.000000e+00 : f32
    %194 = vector.broadcast %cst_78 : f32 to vector<64x128xf32>
    %195 = arith.addf %194, %193 : vector<64x128xf32>
    %196 = arith.mulf %185, %195 : vector<64x128xf32>
    %c0_79 = arith.constant 0 : index
    %c0_80 = arith.constant 0 : index
    %197 = vector.load %arg15[%c0_79, %c0_80] : memref<128x128xf32, #tpu.memory_space<vmem>>, vector<128x128xf32>
    %cst_81 = arith.constant dense<0.000000e+00> : vector<64x128xf32>
    %198 = tpu.matmul %196, %197, %cst_81 {dimension_numbers = #tpu.dot_dimension_numbers<[1], [0], [0], [1], [0, 0, 1, 1], [], []>} : vector<64x128xf32>, vector<128x128xf32>, vector<64x128xf32> -> vector<64x128xf32>
    %c0_82 = arith.constant 0 : index
    %c0_83 = arith.constant 0 : index
    %199 = vector.load %arg16[%c0_82, %c0_83] : memref<1x128xf32, #tpu.memory_space<vmem>>, vector<1x128xf32>
    %200 = vector.broadcast %199 : vector<1x128xf32> to vector<64x128xf32>
    %201 = arith.addf %198, %200 : vector<64x128xf32>
    %202 = arith.addf %178, %201 : vector<64x128xf32>
    %203 = vector.shape_cast %202 : vector<64x128xf32> to vector<1x8x8x128xf32>
    %c0_84 = arith.constant 0 : index
    %c0_85 = arith.constant 0 : index
    %c0_86 = arith.constant 0 : index
    %c0_87 = arith.constant 0 : index
    %204 = vector.load %arg17[%c0_84, %c0_85, %c0_86, %c0_87] : memref<1x8x8x128xf32, #tpu.memory_space<vmem>>, vector<1x8x8x128xf32>
    tpu.vector_store %arg17[%c0_84, %c0_85, %c0_86, %c0_87], %203 {strides = array<i32>} : memref<1x8x8x128xf32, #tpu.memory_space<vmem>>, vector<1x8x8x128xf32>,
    return
  }
  func.func @transform_0(%arg0: i32) -> (i32, i32, i32, i32) {
    %c0_i32 = arith.constant 0 : i32
    %c0_i32_0 = arith.constant 0 : i32
    %c0_i32_1 = arith.constant 0 : i32
    %c0_i32_2 = arith.constant 0 : i32
    return %arg0, %c0_i32, %c0_i32_0, %c0_i32_1 : i32, i32, i32, i32
  }
  func.func @transform_1(%arg0: i32) -> (i32, i32) {
    %c0_i32 = arith.constant 0 : i32
    %c0_i32_0 = arith.constant 0 : i32
    %c0_i32_1 = arith.constant 0 : i32
    return %c0_i32, %c0_i32_0 : i32, i32
  }
  func.func @transform_2(%arg0: i32) -> (i32, i32) {
    %c0_i32 = arith.constant 0 : i32
    %c0_i32_0 = arith.constant 0 : i32
    %c0_i32_1 = arith.constant 0 : i32
    return %c0_i32, %c0_i32_0 : i32, i32
  }
  func.func @transform_3(%arg0: i32) -> (i32, i32) {
    %c0_i32 = arith.constant 0 : i32
    %c0_i32_0 = arith.constant 0 : i32
    %c0_i32_1 = arith.constant 0 : i32
    return %c0_i32, %c0_i32_0 : i32, i32
  }
  func.func @transform_4(%arg0: i32) -> (i32, i32, i32) {
    %c0_i32 = arith.constant 0 : i32
    %c0_i32_0 = arith.constant 0 : i32
    %c0_i32_1 = arith.constant 0 : i32
    %c0_i32_2 = arith.constant 0 : i32
    return %c0_i32, %c0_i32_0, %c0_i32_1 : i32, i32, i32
  }
  func.func @transform_5(%arg0: i32) -> (i32, i32, i32) {
    %c0_i32 = arith.constant 0 : i32
    %c0_i32_0 = arith.constant 0 : i32
    %c0_i32_1 = arith.constant 0 : i32
    %c0_i32_2 = arith.constant 0 : i32
    return %c0_i32, %c0_i32_0, %c0_i32_1 : i32, i32, i32
  }
  func.func @transform_6(%arg0: i32) -> (i32, i32) {
    %c0_i32 = arith.constant 0 : i32
    %c0_i32_0 = arith.constant 0 : i32
    %c0_i32_1 = arith.constant 0 : i32
    return %c0_i32, %c0_i32_0 : i32, i32
  }
  func.func @transform_7(%arg0: i32) -> (i32, i32) {
    %c0_i32 = arith.constant 0 : i32
    %c0_i32_0 = arith.constant 0 : i32
    %c0_i32_1 = arith.constant 0 : i32
    return %c0_i32, %c0_i32_0 : i32, i32
  }
  func.func @transform_8(%arg0: i32) -> (i32, i32) {
    %c0_i32 = arith.constant 0 : i32
    %c0_i32_0 = arith.constant 0 : i32
    %c0_i32_1 = arith.constant 0 : i32
    return %c0_i32, %c0_i32_0 : i32, i32
  }
  func.func @transform_9(%arg0: i32) -> (i32, i32) {
    %c0_i32 = arith.constant 0 : i32
    %c0_i32_0 = arith.constant 0 : i32
    %c0_i32_1 = arith.constant 0 : i32
    return %c0_i32, %c0_i32_0 : i32, i32
  }
  func.func @transform_10(%arg0: i32) -> (i32, i32) {
    %c0_i32 = arith.constant 0 : i32
    %c0_i32_0 = arith.constant 0 : i32
    %c0_i32_1 = arith.constant 0 : i32
    return %c0_i32, %c0_i32_0 : i32, i32
  }
  func.func @transform_11(%arg0: i32) -> (i32, i32) {
    %c0_i32 = arith.constant 0 : i32
    %c0_i32_0 = arith.constant 0 : i32
    %c0_i32_1 = arith.constant 0 : i32
    return %c0_i32, %c0_i32_0 : i32, i32
  }
  func.func @transform_12(%arg0: i32) -> (i32, i32) {
    %c0_i32 = arith.constant 0 : i32
    %c0_i32_0 = arith.constant 0 : i32
    %c0_i32_1 = arith.constant 0 : i32
    return %c0_i32, %c0_i32_0 : i32, i32
  }
  func.func @transform_13(%arg0: i32) -> (i32, i32) {
    %c0_i32 = arith.constant 0 : i32
    %c0_i32_0 = arith.constant 0 : i32
    %c0_i32_1 = arith.constant 0 : i32
    return %c0_i32, %c0_i32_0 : i32, i32
  }
  func.func @transform_14(%arg0: i32) -> (i32, i32) {
    %c0_i32 = arith.constant 0 : i32
    %c0_i32_0 = arith.constant 0 : i32
    %c0_i32_1 = arith.constant 0 : i32
    return %c0_i32, %c0_i32_0 : i32, i32
  }
  func.func @transform_15(%arg0: i32) -> (i32, i32) {
    %c0_i32 = arith.constant 0 : i32
    %c0_i32_0 = arith.constant 0 : i32
    %c0_i32_1 = arith.constant 0 : i32
    return %c0_i32, %c0_i32_0 : i32, i32
  }
  func.func @transform_16(%arg0: i32) -> (i32, i32, i32, i32) {
    %c0_i32 = arith.constant 0 : i32
    %c0_i32_0 = arith.constant 0 : i32
    %c0_i32_1 = arith.constant 0 : i32
    %c0_i32_2 = arith.constant 0 : i32
    return %arg0, %c0_i32, %c0_i32_0, %c0_i32_1 : i32, i32, i32, i32
  }
}

</mosaic_0001>

<bundles_post_ra>
// kernel: attn_layer_apply.1
= control target key start
LH: loop header
LB: loop body
LE: loop exit
PB: predicated region body
PF: predicated region fallthrough
CT: control target
= control target key end

     0   :  { %s6553_s0 = inlined_call_operand.hbm [shape: f32[2,8,8,128], index: 0, kind: input, shape index: {}, may-alias: {0,16}]   ;;  %s6554_s1 = inlined_call_operand.vmem [shape: f32[128,384], index: 1, kind: input, shape index: {}]   ;;  %s6555_s2 = inlined_call_operand.vmem [shape: f32[1,384], index: 2, kind: input, shape index: {}]   ;;  %s6556_s3 = inlined_call_operand.vmem [shape: f32[1,128], index: 3, kind: input, shape index: {}]   ;;  %s6557_s4 = inlined_call_operand.hbm [shape: f32[7,1,128], index: 4, kind: input, shape index: {}]   ;;  %s6558_s5 = inlined_call_operand.hbm [shape: f32[7,1,128], index: 5, kind: input, shape index: {}]   ;;  %s6559_s6 = inlined_call_operand.vmem [shape: f32[128,8], index: 6, kind: input, shape index: {}]   ;;  %s6560_s7 = inlined_call_operand.vmem [shape: f32[1,8], index: 7, kind: input, shape index: {}]   ;;  %s6561_s8 = inlined_call_operand.hbm [shape: f32[8,384], index: 8, kind: input, shape index: {}]   ;;  %s6562_s9 = inlined_call_operand.vmem [shape: f32[1,384], index: 9, kind: input, shape index: {}]   ;;  %s6563_s10 = inlined_call_operand.hbm [shape: f32[128,128], index: 10, kind: input, shape index: {}]   ;;  %s6564_s11 = inlined_call_operand.vmem [shape: f32[1,128], index: 11, kind: input, shape index: {}]   ;;  %s6565_s12 = inlined_call_operand.hbm [shape: f32[128,128], index: 12, kind: input, shape index: {}]   ;;  %s6566_s13 = inlined_call_operand.vmem [shape: f32[1,128], index: 13, kind: input, shape index: {}]   ;;  %s6567_s14 = inlined_call_operand.hbm [shape: f32[128,128], index: 14, kind: input, shape index: {}]   ;;  %s6568_s15 = inlined_call_operand.vmem [shape: f32[1,128], index: 15, kind: input, shape index: {}]   ;;  %s6569_s16 = inlined_call_operand.hbm [shape: f32[2,8,8,128], index: 16, kind: output, shape index: {}, may-alias: {0,16}]  }
   0x1   :  { %6612 = sst [smem:[#allocation35_spill]] %s6553_s0 }
   0x2   :  { %6613 = sst [smem:[#allocation36_spill]] %s6557_s4 }
   0x3   :  { %6614 = sst [smem:[#allocation37_spill]] %s6558_s5 }
   0x4   :  { %6615 = sst [smem:[#allocation38_spill]] %s6561_s8 }
   0x5   :  { %6616 = sst [smem:[#allocation39_spill]] %s6563_s10 }
   0x6   :  { %6617 = sst [smem:[#allocation40_spill]] %s6565_s12 }
   0x7   :  { %6618 = sst [smem:[#allocation41_spill]] %s6566_s13 }
   0x8   :  { %6619 = sst [smem:[#allocation42_spill]] %s6567_s14 }
   0x9   :  { %6620 = sst [smem:[#allocation43_spill]] %s6568_s15 }
   0xa   :  { %6621 = sst [smem:[#allocation44_spill]] %s6569_s16 }
   0xb   :  { %21 = vsyncpa [#allocation3], 0 }
   0xc   :  { %23 = vsyncpa [#allocation3 + $0x1], 0 }
   0xd   :  { %24 = vsyncpa [#allocation6], 0 }
   0xe   :  { %25 = vsyncpa [#allocation9], 0 }
   0xf   :  { %26 = vsyncpa [#allocation12], 0 }
  0x10   :  { %27 = vsyncpa [#allocation4], 0 }
  0x11   :  { %29 = vsyncpa [#allocation4 + $0x1], 0  ;;  %s4445_s21 = smov 0   ;;  %s4447_s22 = smov 0  }
  0x12   :  { %s4449_s23 = smov 0   ;;  %s4451_s24 = smov 0  }
  0x13 LB: > { %s4338_s25 = smov [#allocation5]   ;;  %s4466_s27 = sadd.s32 4294967295, %s4336_s24   ;;  %s4336_s24 = sphi %s4451_s24, %s6730_s24   ;;  %s4332_s23 = sphi %s4449_s23, %s6729_s23   ;;  %s4328_s22 = sphi %s4447_s22, %s6728_s22   ;;  %s4324_s21 = sphi %s4445_s21, %s6727_s21  }
  0x14   : > { %s428_s26 = sshll.u32 %s4338_s25, 4  ;;  %p3438_p0 = scmp.ge.s32.totalorder %s4336_s24, 1  ;;  %s429_s26 = int_to_ptr.vmem [resolvable:$true] %s428_s26 }
  0x15   : > { %p6572_p1 = scmp.eq.s32.totalorder %s4466_s27, 0  ;;  %p407_p2 = scmp.lt.s32.totalorder %s4336_s24, 3 }
  0x16   : > { %s4339_s29 = smov [#allocation8]   ;;  %s4340_s17 = smov [#allocation11]  }
  0x17   : > { %p4471_p3 = pnand %p3438_p0, %p407_p2  ;;  %s461_s30 = sshll.u32 %s4339_s29, 4  ;;  %s462_s30 = int_to_ptr.vmem [resolvable:$true] %s461_s30 }
  0x18   : > { %s490_s18 = sshll.u32 %s4340_s17, 4  ;;  %s4087_s20 = scalar_lea.vmem %s429_s26, 112  ;;  %s491_s18 = int_to_ptr.vmem [resolvable:$true] %s490_s18 }
  0x19   : > { %s6622_s28 = scalar_select %p4471_p3, 1, 0 }
  0x1a   : > { %p3908_p5 = pneg %p4471_p3  ;;  %p4088_p8 = scmp.ne.s32.totalorder %s429_s26, %s4087_s20 }
  0x1b   : > { %s4094_s25 = scalar_lea.vmem %s429_s26, 128  ;;  %p4095_p11 = scmp.lt.s32.totalorder %s429_s26, %s429_s26 }
  0x1c   : > { %p4480_p6 = pnand %p3908_p5, %p6572_p1  ;;  %p4096_p12 = scmp.lt.s32.totalorder %s4094_s25, %s4087_s20 }
  0x1e   : > { %p4486_p7 = pneg %p4480_p6  ;;  %p4097_p13 = por %p4096_p12, %p4095_p11 }
  0x20   : > { %p4090_p9 = pnand %p4088_p8, %p4486_p7 }
  0x22   : > { %p4091_p10 = pneg %p4090_p9 }
  0x24   : > { %p4098_p0 = pnand %p4097_p13, %p4091_p10 }
  0x26   : > { %4101 = shalt.err (!%p4098_p0)
}
  0x27   : > { %s6574_s29 = smov 16   ;;  %s6575_s17 = smov 1  }
  0x28   : > { %s6625_s4 = sld [smem:[#allocation36_spill]]  ;;  %s4113_s13 = scalar_lea.vmem %s462_s30, 384 }
  0x29   : > { %p4114_p2 = scmp.ne.s32.totalorder %s462_s30, %s4113_s13  ;;  %p4121_p9 = scmp.lt.s32.totalorder %s462_s30, %s462_s30 }
  0x2a   : > { %p4122_p10 = scmp.lt.s32.totalorder %s4113_s13, %s4113_s13 }
  0x2b   : > { %p4116_p5 = pnand %p4114_p2, %p4486_p7 }
  0x2c   : > { %p4123_p11 = por %p4122_p10, %p4121_p9 }
  0x2d   : > { %p4117_p8 = pneg %p4116_p5 }
  0x2e   : > { %3911 = dma.hbm_to_vmem [thread:$0]  (!%p4480_p6), %s6625_s4, 112, %s429_s26, [#allocation6], %s6574_s29, %s6574_s29, %s6575_s17  }
  0x2f   : > { %p4124_p12 = pnand %p4123_p11, %p4117_p8 }
  0x31   : > { %4127 = shalt.err (!%p4124_p12)
}
  0x32   : > { %s6626_s8 = sld [smem:[#allocation38_spill]]  ;;  %s4139_s15 = scalar_lea.vmem %s491_s18, 2048 }
  0x33   : > { %p4140_p13 = scmp.ne.s32.totalorder %s491_s18, %s4139_s15  ;;  %p4147_p2 = scmp.lt.s32.totalorder %s491_s18, %s491_s18 }
  0x34   : > { %p4148_p5 = scmp.lt.s32.totalorder %s4139_s15, %s4139_s15 }
  0x35   : > { %p4142_p0 = pnand %p4140_p13, %p4486_p7 }
  0x36   : > { %p4149_p1 = por %p4148_p5, %p4147_p2 }
  0x37   : > { %p4143_p4 = pneg %p4142_p0 }
  0x38   : > { %3917 = dma.hbm_to_vmem [thread:$0]  (!%p4480_p6), %s6626_s8, 384, %s462_s30, [#allocation9]  }
  0x39   : > { %p4150_p3 = pnand %p4149_p1, %p4143_p4 }
  0x3b   : > { %4153 = shalt.err (!%p4150_p3)
}
  0x3c   : > { %s6576_s13 = smov 128   ;;  %s6577_s16 = smov 8  }
  0x3d   : > { %s6627_s12 = sld [smem:[#allocation40_spill]]  ;;  %s4345_s20 = smov [#allocation7]  }
  0x3e   : > { %s441_s25 = sshll.u32 %s4345_s20, 4  ;;  %s4346_s29 = smov [#allocation10]   ;;  %s442_s25 = int_to_ptr.vmem [resolvable:$true] %s441_s25 }
  0x3f   : > { %s474_s15 = sshll.u32 %s4346_s29, 4  ;;  %s4165_s17 = scalar_lea.vmem %s442_s25, 112  ;;  %s475_s15 = int_to_ptr.vmem [resolvable:$true] %s474_s15 }
  0x40   : > { %p4166_p1 = scmp.ne.s32.totalorder %s442_s25, %s4165_s17  ;;  %s4172_s4 = scalar_lea.vmem %s442_s25, 128 }
  0x41   : > { %p4173_p8 = scmp.lt.s32.totalorder %s442_s25, %s442_s25  ;;  %p4174_p9 = scmp.lt.s32.totalorder %s4172_s4, %s4165_s17 }
  0x42   : > { %p4168_p3 = pnand %p4166_p1, %p4486_p7 }
  0x43   : > { %3923 = dma.hbm_to_vmem [thread:$0]  (!%p4480_p6), %s6627_s12, 2048, %s491_s18, [#allocation12], %s6576_s13, %s6576_s13, %s6577_s16  }
  0x44   : > { %p4169_p4 = pneg %p4168_p3  ;;  %p4175_p10 = por %p4174_p9, %p4173_p8 }
  0x46   : > { %p4176_p11 = pnand %p4175_p10, %p4169_p4 }
  0x48   : > { %4179 = shalt.err (!%p4176_p11)
}
  0x49   : > { %s6628_s26 = smov 1   ;;  %s6629_s18 = smov 16  }
  0x4a   : > { %s6630_s5 = sld [smem:[#allocation37_spill]]  ;;  %s4191_s29 = scalar_lea.vmem %s475_s15, 2048 }
  0x4b   : > { %p4192_p12 = scmp.ne.s32.totalorder %s475_s15, %s4191_s29  ;;  %p4199_p2 = scmp.lt.s32.totalorder %s475_s15, %s475_s15 }
  0x4c   : > { %p4200_p5 = scmp.lt.s32.totalorder %s4191_s29, %s4191_s29 }
  0x4d   : > { %p4194_p13 = pnand %p4192_p12, %p4486_p7 }
  0x4e   : > { %p4201_p1 = por %p4200_p5, %p4199_p2 }
  0x4f   : > { %p4195_p0 = pneg %p4194_p13 }
  0x50   : > { %3914 = dma.hbm_to_vmem [thread:$0]  (!%p4480_p6), %s6630_s5, 112, %s442_s25, [#allocation6], %s6629_s18, %s6629_s18, %s6628_s26  }
  0x51   : > { %p4202_p3 = pnand %p4201_p1, %p4195_p0 }
  0x53   : > { %4205 = shalt.err (!%p4202_p3)
}
  0x54   : > { %s6631_s10 = sld [smem:[#allocation39_spill]]  ;;  %s4347_s25 = smov [#allocation13]  }
  0x55   : > { %s506_s26 = sshll.u32 %s4347_s25, 4  ;;  %s507_s26 = int_to_ptr.vmem [resolvable:$true] %s506_s26 }
  0x56   : > { %s4217_s18 = scalar_lea.vmem %s507_s26, 2048  ;;  %p4225_p10 = scmp.lt.s32.totalorder %s507_s26, %s507_s26 }
  0x57   : > { %p4218_p4 = scmp.ne.s32.totalorder %s507_s26, %s4217_s18  ;;  %p4226_p11 = scmp.lt.s32.totalorder %s4217_s18, %s4217_s18 }
  0x59   : > { %p4220_p8 = pnand %p4218_p4, %p4486_p7  ;;  %p4227_p12 = por %p4226_p11, %p4225_p10 }
  0x5a   : > { %3920 = dma.hbm_to_vmem [thread:$0]  (!%p4480_p6), %s6631_s10, 2048, %s475_s15, [#allocation9], %s6576_s13, %s6576_s13, %s6577_s16  }
  0x5b   : > { %p4221_p9 = pneg %p4220_p8 }
  0x5d   : > { %p4228_p13 = pnand %p4227_p12, %p4221_p9 }
  0x5f   : > { %4231 = shalt.err (!%p4228_p13)
}
  0x60   : > { %s6632_s14 = sld [smem:[#allocation42_spill]]  ;;  %s3437_s0 = sadd.s32 4294967294, %s4336_s24  }
  0x61   : > { %s4549_s19 = sadd.s32 1, %s4336_s24   ;;  %s42_s29 = sadd.s32 1, %s4332_s23 }
  0x62   : > { %s39_s20 = ssub.s32 %s4336_s24, %s4549_s19  ;;  %p49_p0 = scmp.ne.s32.totalorder %s4332_s23, %s4328_s22 }
  0x63   : > { %p40_p7 = scmp.eq.s32.totalorder %s39_s20, 0  ;;  %p50_p2 = scmp.eq.s32.totalorder %s4336_s24, 0 }
  0x64   : > { %p55_p5 = scmp.ne.s32.totalorder %s4328_s22, %s4324_s21  ;;  %p6635_p3 = scmp.eq.s32.totalorder %s4466_s27, 0 }
  0x65   : > { %s4560_s4 = scalar_select %p40_p7, %s4332_s23, %s42_s29  }
  0x66   : > { %3926 = dma.hbm_to_vmem [thread:$0]  (!%p4480_p6), %s6632_s14, 2048, %s507_s26, [#allocation12], %s6576_s13, %s6576_s13, %s6577_s16  }
  0x67   : > { %6633 = sst [smem:[#allocation20_spill]] %s4560_s4  ;;  %p4562_p1 = por %p50_p2, %p49_p0 }
  0x68   : > { %p4568_p6 = por %p6635_p3, %p55_p5  ;;  %p394_p4 = scmp.eq.s32.totalorder %s4466_s27, 1 }
  0x69   : > { %p400_p8 = scmp.eq.s32.totalorder %s3437_s0, 1  ;;  %p3941_p9 = scmp.lt.s32.totalorder %s4336_s24, 2 }
  0x6a   : > { %s6636_s25 = scalar_select %p4568_p6, 1, 0 }
  0x6b   : > { %s523_s26 = sand.u32 1, %s4332_s23   ;;  %p4575_p10 = por %p394_p4, %p49_p0 }
  0x6c   : > { %p4579_p11 = por %p400_p8, %p55_p5  ;;  %s3446_s15 = sshll.u32 %s523_s26, 6 }
  0x6d   : > { %s6637_s18 = scalar_select %p4575_p10, 1, 0 }
  0x6e   : > { %s6638_s30 = scalar_select %p4579_p11, 1, 0 }
  0x6f   : > { %s3515_s20 = sshll.u32 %s4336_s24, 10  ;;  %s6639_s16 = sld [smem:[#allocation35_spill]] }
  0x70   : > { %s527_s0 = scalar_lea.vmem [#allocation2], %s3446_s15  ;;  %p4593_p12 = pnand %p3941_p9, %p4562_p1 }
  0x71   : > { %s534_s8 = sshll.u32 %s527_s0, 4  ;;  %s4597_s12 = scalar_lea.sflag [#allocation3], %s523_s26  ;;  %s4589_s8 = int_to_ptr.vmem [resolvable:$true] %s534_s8 }
  0x72   : > { %p4234_p7 = pneg %p4593_p12 }
  0x75   : > { %s4587_s5 = scalar_lea.hbm %s6639_s16, %s3515_s20  ;;  %s4237_s15 = scalar_lea.hbm %s6639_s16, 2048 }
  0x76   : > { %s4232_s14 = scalar_lea.hbm %s4587_s5, 1024  ;;  %p4238_p5 = scmp.lt.s32.totalorder %s4587_s5, %s6639_s16 }
  0x77   : > { %p4233_p13 = scmp.ne.s32.totalorder %s4587_s5, %s4232_s14  ;;  %p4239_p1 = scmp.lt.s32.totalorder %s4237_s15, %s4232_s14 }
  0x79   : > { %p4235_p0 = pnand %p4234_p7, %p4233_p13  ;;  %p4240_p3 = por %p4239_p1, %p4238_p5 }
  0x7b   : > { %p4236_p2 = pneg %p4235_p0 }
  0x7d   : > { %p4241_p4 = pnand %p4240_p3, %p4236_p2 }
  0x7f   : > { %4244 = shalt.err (!%p4241_p4)
}
  0x80   : > { %s4245_s17 = scalar_lea.vmem %s4589_s8, 1024  ;;  %s4348_s26 = smov [#allocation2]  }
  0x81   : > { %p4246_p8 = scmp.ne.s32.totalorder %s4589_s8, %s4245_s17  ;;  %s4250_s4 = sshll.u32 %s4348_s26, 4  ;;  %s4251_s4 = int_to_ptr.vmem [resolvable:$false] %s4250_s4 }
  0x82   : > { %s4252_s13 = scalar_lea.vmem %s4251_s4, 2048  ;;  %p4253_p0 = scmp.lt.s32.totalorder %s4589_s8, %s4251_s4 }
  0x83   : > { %p4248_p9 = pnand %p4246_p8, %p4234_p7  ;;  %p4254_p11 = scmp.lt.s32.totalorder %s4252_s13, %s4245_s17 }
  0x85   : > { %p4249_p13 = pneg %p4248_p9  ;;  %p4255_p10 = por %p4254_p11, %p4253_p0 }
  0x87   : > { %p4256_p6 = pnand %p4255_p10, %p4249_p13 }
  0x89   : > { %4259 = shalt.err (!%p4256_p6)
}
  0x8a   : > { %s6641_s14 = smov 8   ;;  %s6642_s20 = smov 128  }
  0x8b   : > { %3930 = dma.hbm_to_vmem [thread:$0]  (!%p4593_p12), %s4587_s5, 1024, %s4589_s8, %s4597_s12, %s6642_s20, %s6642_s20, %s6641_s14  }
  0x8c   : > { %p6643_p7 = scmp.ne.s32.totalorder %s6622_s28, 0 }
  0x8e   : > { %546 = sbr.rel (%p6643_p7) target bundleno = 1865 (0x749), region = 84 }
  0x93   : > { %s4624_s15 = sand.u32 1, %s4328_s22   ;;  %p6644_p6 = scmp.ne.s32.totalorder %s6636_s25, 0 }
  0x94   : > { %s3450_s4 = sshll.u32 %s4624_s15, 6  ;;  %s549_s29 = scalar_lea.sflag [#allocation3], %s4624_s15 }
  0x95   : > { %s4630_s10 = scalar_lea.vmem [#allocation2], %s3450_s4 }
  0x96   : > { %4303 = dma.done.wait (%p6644_p6), %s549_s29, 1024  }
  0x97   : > { %4305 = vsyncadd (%p6644_p6), %s549_s29, 4294966272  ;;  %p6645_p10 = scmp.eq.s32.totalorder %s4466_s27, 0 }
  0x99   : > { %4307 = dma.done.wait (%p6645_p10), [#allocation6], 224   ;;  %p6646_p11 = pmov %p6645_p10 }
  0x9a   : > { %p6647_p12 = pmov %p6645_p10 }
  0x9b   : > { %4309 = vsyncadd (%p6646_p11), [#allocation6], 4294967072 }
  0x9c   : > { %4311 = dma.done.wait (%p6647_p12), [#allocation9], 2432   ;;  %p6648_p2 = pmov %p6645_p10 }
  0x9e   : > { %4313 = vsyncadd (%p6648_p2), [#allocation9], 4294964864  ;;  %p6649_p5 = pmov %p6648_p2 }
  0x9f   : > { %p6650_p1 = pmov %p6648_p2 }
  0xa0   : > { %4315 = dma.done.wait (%p6649_p5), [#allocation12], 4096  }
  0xa1   : > { %4317 = vsyncadd (%p6650_p1), [#allocation12], 4294963200  ;;  %v6581_v0 = vmov 0.0   ;;  %v679_v1 = vld [vmem:[%s6554_s1 + $0x170] sm:$0xff]  ;;  %v678_v2 = vld [vmem:[%s6554_s1 + $0x168] sm:$0xff]  ;;  %v683_v57 = vlaneseq  ;;  %s6720_s29 = sld [smem:[#allocation41_spill]] }
  0xa2   : > { %762 = vmatprep.mubr.f32.mxu0 %v6581_v0  ;;  %v676_v3 = vld [vmem:[%s6554_s1 + $0x158] sm:$0xff]  ;;  %698 = vmatprep.subr.mxu0 %v679_v1  ;;  %v675_v4 = vld [vmem:[%s6554_s1 + $0x150] sm:$0xff]  ;;  %v673_v5 = vld [vmem:[%s6554_s1 + $0x140] sm:$0xff]  ;;  %s6721_s12 = sld [smem:[#allocation43_spill]]  ;;  %s624_s28 = scalar_lea.vmem [#allocation14], %s3450_s4 }
  0xa3   : > { %699 = vmatpush1.msra.mxu0 %v678_v2  ;;  %v672_v6 = vld [vmem:[%s6554_s1 + $0x138] sm:$0xff]  ;;  %v670_v7 = vld [vmem:[%s6554_s1 + $0x128] sm:$0xff]  ;;  %v669_v8 = vld [vmem:[%s6554_s1 + $0x120] sm:$0xff]  ;;  %v4813_v58 = vshrl.u32 %v683_v57, 7  ;;  %s3307_s4 = sshll.u32 %s624_s28, 4  ;;  %s3516_s25 = sshll.u32 %s4466_s27, 10  ;;  %s6503_s4 = int_to_ptr.vmem [resolvable:$true] %s3307_s4 }
  0xa4   : > { %700 = vmatprep.subr.mxu0 %v676_v3  ;;  %v667_v9 = vld [vmem:[%s6554_s1 + $0x110] sm:$0xff]  ;;  %v666_v10 = vld [vmem:[%s6554_s1 + $0x108] sm:$0xff]  ;;  %v664_v11 = vld [vmem:[%s6554_s1 + $0xf8] sm:$0xff]  ;;  %s6722_s26 = sld [smem:[#allocation44_spill]]  ;;  %s3294_s27 = scalar_lea.sflag [#allocation4], %s4624_s15 }
  0xa5   : > { %701 = vmatpush1.msra.mxu0 %v675_v4  ;;  %v663_v12 = vld [vmem:[%s6554_s1 + $0xf0] sm:$0xff]  ;;  %v661_v13 = vld [vmem:[%s6554_s1 + $0xe0] sm:$0xff]  ;;  %v660_v15 = vld [vmem:[%s6554_s1 + $0xd8] sm:$0xff]  ;;  %6651 = vst [vmem:[#allocation21_spill] sm:$0xff] %v4813_v58  ;;  %v4816_v59 = vsub.s32 0, %v4813_v58  ;;  %s4260_s14 = scalar_lea.vmem %s6503_s4, 1024 }
  0xa6   : > { %702 = vmatprep.subr.mxu0 %v673_v5  ;;  %v4689_v14 = vld [vmem:[%s4630_s10] sm:$0xff]  ;;  %v658_v16 = vld [vmem:[%s6554_s1 + $0xc8] sm:$0xff]  ;;  %v680_v18 = vld [vmem:[%s6554_s1 + $0x178] sm:$0xff]  ;;  %p4261_p3 = scmp.ne.s32.totalorder %s6503_s4, %s4260_s14  ;;  %p6723_p4 = scmp.ne.s32.totalorder %s6637_s18, 0 }
  0xa7   : > { %703 = vmatpush1.msra.mxu0 %v672_v6  ;;  %3664 = vmatprep.mubr.f32.mxu1 %v4689_v14  ;;  %v657_v17 = vld [vmem:[%s6554_s1 + $0xc0] sm:$0xff]  ;;  %v655_v20 = vld [vmem:[%s6554_s1 + $0xb0] sm:$0xff]  ;;  %v654_v21 = vld [vmem:[%s6554_s1 + $0xa8] sm:$0xff]  ;;  %6652 = vst [vmem:[#allocation22_spill] sm:$0xff] %v4816_v59 }
  0xa8   : > { %704 = vmatprep.subr.mxu0 %v670_v7  ;;  %v677_v19 = vld [vmem:[%s6554_s1 + $0x160] sm:$0xff]  ;;  %3632 = vmatprep.subr.mxu1 %v680_v18  ;;  %v674_v22 = vld [vmem:[%s6554_s1 + $0x148] sm:$0xff]  ;;  %v652_v23 = vld [vmem:[%s6554_s1 + $0x98] sm:$0xff]  ;;  %p4262_p8 = pnand %p4261_p3, %p6723_p4 }
  0xa9   : > { %705 = vmatpush1.msra.mxu0 %v669_v8  ;;  %3633 = vmatpush3.msra.mxu1 %v680_v18  ;;  %v651_v24 = vld [vmem:[%s6554_s1 + $0x90] sm:$0xff]  ;;  %v649_v26 = vld [vmem:[%s6554_s1 + $0x80] sm:$0xff]  ;;  %v648_v27 = vld [vmem:[%s6554_s1 + $0x78] sm:$0xff] }
  0xaa   : > { %706 = vmatprep.subr.mxu0 %v667_v9  ;;  %3634 = vmatprep.subr.mxu1 %v677_v19  ;;  %v671_v25 = vld [vmem:[%s6554_s1 + $0x130] sm:$0xff]  ;;  %v668_v28 = vld [vmem:[%s6554_s1 + $0x118] sm:$0xff]  ;;  %v646_v29 = vld [vmem:[%s6554_s1 + $0x68] sm:$0xff]  ;;  %s6509_s13 = scalar_lea.hbm %s6722_s26, %s3516_s25  ;;  %p4263_p9 = pneg %p4262_p8 }
  0xab   : > { %707 = vmatpush1.msra.mxu0 %v666_v10  ;;  %3635 = vmatpush3.msra.mxu1 %v677_v19  ;;  %v645_v30 = vld [vmem:[%s6554_s1 + $0x60] sm:$0xff]  ;;  %v643_v32 = vld [vmem:[%s6554_s1 + $0x50] sm:$0xff]  ;;  %v642_v33 = vld [vmem:[%s6554_s1 + $0x48] sm:$0xff] }
  0xac   : > { %708 = vmatprep.subr.mxu0 %v664_v11  ;;  %3636 = vmatprep.subr.mxu1 %v674_v22  ;;  %v665_v31 = vld [vmem:[%s6554_s1 + $0x100] sm:$0xff]  ;;  %v662_v34 = vld [vmem:[%s6554_s1 + $0xe8] sm:$0xff]  ;;  %v640_v35 = vld [vmem:[%s6554_s1 + $0x38] sm:$0xff] }
  0xad   : > { %709 = vmatpush1.msra.mxu0 %v663_v12  ;;  %3637 = vmatpush3.msra.mxu1 %v674_v22  ;;  %v639_v36 = vld [vmem:[%s6554_s1 + $0x30] sm:$0xff]  ;;  %v637_v38 = vld [vmem:[%s6554_s1 + $0x20] sm:$0xff]  ;;  %v636_v39 = vld [vmem:[%s6554_s1 + $0x18] sm:$0xff] }
  0xae   : > { %710 = vmatprep.subr.mxu0 %v661_v13  ;;  %3638 = vmatprep.subr.mxu1 %v671_v25  ;;  %v659_v37 = vld [vmem:[%s6554_s1 + $0xd0] sm:$0xff]  ;;  %v656_v40 = vld [vmem:[%s6554_s1 + $0xb8] sm:$0xff]  ;;  %v634_v41 = vld [vmem:[%s6554_s1 + $0x8] sm:$0xff] }
  0xaf   : > { %711 = vmatpush1.msra.mxu0 %v660_v15  ;;  %3639 = vmatpush3.msra.mxu1 %v671_v25  ;;  %v633_v42 = vld [vmem:[%s6554_s1] sm:$0xff]  ;;  %v650_v44 = vld [vmem:[%s6554_s1 + $0x88] sm:$0xff]  ;;  %v647_v45 = vld [vmem:[%s6554_s1 + $0x70] sm:$0xff] }
  0xb0   : > { %712 = vmatprep.subr.mxu0 %v658_v16  ;;  %3640 = vmatprep.subr.mxu1 %v668_v28  ;;  %v653_v43 = vld [vmem:[%s6554_s1 + $0xa0] sm:$0xff]  ;;  %v626_v46 = vld [vmem:[%s4630_s10 + $0x8] sm:$0xff]  ;;  %v644_v47 = vld [vmem:[%s6554_s1 + $0x58] sm:$0xff] }
  0xb1   : > { %713 = vmatpush1.msra.mxu0 %v657_v17  ;;  %3641 = vmatpush3.msra.mxu1 %v668_v28  ;;  %v641_v48 = vld [vmem:[%s6554_s1 + $0x40] sm:$0xff]  ;;  %v627_v49 = vld [vmem:[%s4630_s10 + $0x10] sm:$0xff]  ;;  %v638_v50 = vld [vmem:[%s6554_s1 + $0x28] sm:$0xff] }
  0xb2   : > { %714 = vmatprep.subr.mxu0 %v655_v20  ;;  %3642 = vmatprep.subr.mxu1 %v665_v31  ;;  %v635_v51 = vld [vmem:[%s6554_s1 + $0x10] sm:$0xff]  ;;  %v628_v52 = vld [vmem:[%s4630_s10 + $0x18] sm:$0xff]  ;;  %v629_v53 = vld [vmem:[%s4630_s10 + $0x20] sm:$0xff] }
  0xb3   : > { %715 = vmatpush1.msra.mxu0 %v654_v21  ;;  %3643 = vmatpush3.msra.mxu1 %v665_v31  ;;  %v630_v54 = vld [vmem:[%s4630_s10 + $0x28] sm:$0xff]  ;;  %v631_v55 = vld [vmem:[%s4630_s10 + $0x30] sm:$0xff]  ;;  %v632_v56 = vld [vmem:[%s4630_s10 + $0x38] sm:$0xff] }
  0xb4   : > { %716 = vmatprep.subr.mxu0 %v652_v23  ;;  %3644 = vmatprep.subr.mxu1 %v662_v34  ;;  %v4821_v60 = vld [vmem:[%s6555_s2] sm:$0x7] }
  0xb5   : > { %717 = vmatpush1.msra.mxu0 %v651_v24  ;;  %3645 = vmatpush3.msra.mxu1 %v662_v34  ;;  %v4825_v61 = vrot.slane %v4821_v60, %v4816_v59  ;;  %v4831_v1 = vld [vmem:[%s6556_s3] ss:$0 sm:$0xff]  ;;  %v6676_v59 = vmov 2102212464  }
  0xb6   : > { %718 = vmatprep.subr.mxu0 %v649_v26  ;;  %3646 = vmatprep.subr.mxu1 %v659_v37 }
  0xb7   : > { %719 = vmatpush1.msra.mxu0 %v648_v27  ;;  %3647 = vmatpush3.msra.mxu1 %v659_v37 }
  0xb8   : > { %720 = vmatprep.subr.mxu0 %v646_v29  ;;  %3648 = vmatprep.subr.mxu1 %v656_v40 }
  0xb9   : > { %721 = vmatpush1.msra.mxu0 %v645_v30  ;;  %3649 = vmatpush3.msra.mxu1 %v656_v40  ;;  %v6593_v40 = vmov 2475754826  }
  0xba   : > { %722 = vmatprep.subr.mxu0 %v643_v32  ;;  %3650 = vmatprep.subr.mxu1 %v653_v43 }
  0xbb   : > { %723 = vmatpush1.msra.mxu0 %v642_v33  ;;  %3651 = vmatpush3.msra.mxu1 %v653_v43  ;;  %v6591_v33 = vmov 2102212464  }
  0xbc   : > { %724 = vmatprep.subr.mxu0 %v640_v35  ;;  %3652 = vmatprep.subr.mxu1 %v650_v44  ;;  %v6595_v35 = vmov 920167782  }
  0xbd   : > { %725 = vmatpush1.msra.mxu0 %v639_v36  ;;  %3653 = vmatpush3.msra.mxu1 %v650_v44 }
  0xbe   : > { %726 = vmatprep.subr.mxu0 %v637_v38  ;;  %3654 = vmatprep.subr.mxu1 %v647_v45  ;;  %v6589_v38 = vmov 683565275  }
  0xbf   : > { %727 = vmatpush1.msra.mxu0 %v636_v39  ;;  %3655 = vmatpush3.msra.mxu1 %v647_v45  ;;  %v6585_v45 = vmov 1326507024  }
  0xc0   : > { %728 = vmatprep.subr.mxu0 %v634_v41  ;;  %3656 = vmatprep.subr.mxu1 %v644_v47 }
  0xc1   : > { %729 = vmatpush1.msra.mxu0 %v633_v42  ;;  %3657 = vmatpush3.msra.mxu1 %v644_v47  ;;  %v6587_v42 = vmov 2131351028  }
  0xc2   : > { %763 = vmatmul.mubr.f32.vlgmr.msra.gmra.mxu0 %v4689_v14  ;;  %3676 = vmatprep.subr.mxu0 %v6581_v0 }
  0xc3   : > { %768 = vmatprep.mubr.f32.mxu0 %v6581_v0  ;;  %3658 = vmatprep.subr.mxu1 %v641_v48 }
  0xc4   : > { %3659 = vmatpush3.msra.mxu1 %v641_v48 }
  0xc5   : > { %3660 = vmatprep.subr.mxu1 %v638_v50 }
  0xc6   : > { %769 = vmatmul.mubr.f32.gmra.mxu0 %v626_v46  ;;  %3661 = vmatpush3.msra.mxu1 %v638_v50 }
  0xc7   : > { %774 = vmatprep.mubr.f32.mxu0 %v6581_v0  ;;  %3662 = vmatprep.subr.mxu1 %v635_v51 }
  0xc8   : > { %3663 = vmatpush3.msra.mxu1 %v635_v51 }
  0xc9   : > { %3665 = vmatmul.mubr.f32.vlgmr.msra.gmra.mxu1 %v626_v46 }
  0xca   : > { %775 = vmatmul.mubr.f32.gmra.mxu0 %v627_v49  ;;  %3667 = vmatprep.mubr.f32.mxu1 %v627_v49 }
  0xcb   : > { %780 = vmatprep.mubr.f32.mxu0 %v6581_v0 }
  0xcd   : > { %3668 = vmatmul.mubr.f32.gmra.mxu1 %v628_v52 }
  0xce   : > { %781 = vmatmul.mubr.f32.gmra.mxu0 %v628_v52  ;;  %3670 = vmatprep.mubr.f32.mxu1 %v629_v53 }
  0xcf   : > { %786 = vmatprep.mubr.f32.mxu0 %v6581_v0 }
  0xd1   : > { %3671 = vmatmul.mubr.f32.gmra.mxu1 %v630_v54 }
  0xd2   : > { %787 = vmatmul.mubr.f32.gmra.mxu0 %v629_v53  ;;  %3673 = vmatprep.mubr.f32.mxu1 %v631_v55 }
  0xd3   : > { %792 = vmatprep.mubr.f32.mxu0 %v6581_v0 }
  0xd5   : > { %3674 = vmatmul.mubr.f32.gmra.mxu1 %v632_v56 }
  0xd6   : > { %793 = vmatmul.mubr.f32.gmra.mxu0 %v630_v54 }
  0xd7   : > { %798 = vmatprep.mubr.f32.mxu0 %v6581_v0 }
  0xda   : > { %799 = vmatmul.mubr.f32.gmra.mxu0 %v631_v55 }
  0xdb   : > { %804 = vmatprep.mubr.f32.mxu0 %v6581_v0 }
  0xde   : > { %805 = vmatmul.mubr.f32.gmra.mxu0 %v632_v56 }
 0x182   : > { %v764_v62 = vpop.f32.mrf.mxu0 }
 0x183   : > { %v765_v63 = vadd.f32 %v764_v62, %v4825_v61 }
 0x184   : > { %v4833_v2 = vpop.f32.mrf.mxu0 }
 0x185   : > { %v916_v3 = vmax.f32 %v765_v63, 0.0 }
 0x186   : > { %v770_v4 = vpop.f32.mrf.mxu0 }
 0x187   : > { %v4836_v5 = vadd.f32 %v4831_v1, %v916_v3  ;;  %v771_v6 = vadd.f32 %v770_v4, %v4825_v61 }
 0x188   : > { %v4839_v7 = vpop.f32.mrf.mxu0 }
 0x189   : > { %v942_v8 = vand.u32 2139095040, %v4836_v5  ;;  %v939_v9 = vand.u32 2147483647, %v4836_v5  ;;  %v917_v10 = vmax.f32 %v771_v6, 0.0 }
 0x18a   : > { %v776_v11 = vpop.f32.mrf.mxu0 }
 0x18b   : > { %v943_v12 = vshrl.u32 %v942_v8, 23  ;;  %v777_v13 = vadd.f32 %v776_v11, %v4825_v61  ;;  %v946_v14 = vand.u32 8388607, %v939_v9  ;;  %v4847_v15 = vadd.f32 %v4831_v1, %v917_v10 }
 0x18d   : > { %v3459_v16 = vadd.s32 4294967169, %v943_v12  ;;  %v918_v17 = vmax.f32 %v777_v13, 0.0  ;;  %v1045_v18 = vand.u32 2139095040, %v4847_v15  ;;  %v947_v21 = vor.u32 8388608, %v946_v14 }
 0x18e   : > { %v1042_v23 = vand.u32 2147483647, %v4847_v15 }
 0x18f   : > { %v949_v19 = vadd.s32 1, %v3459_v16  ;;  %v4851_v20 = vadd.f32 %v4831_v1, %v918_v17  ;;  %v1046_v22 = vshrl.u32 %v1045_v18, 23  ;;  %v4855_v29 = vshll.u32 %v947_v21, 8 }
 0x190   : > { %v4859_v30 = vand.u32 8388607, %v1042_v23 }
 0x191   : > { %vm950_vm0 = vcmp.gt.s32.totalorder %v949_v19, 0  ;;  %v1148_v24 = vand.u32 2139095040, %v4851_v20  ;;  %v3463_v26 = vadd.s32 4294967169, %v1046_v22 }
 0x192   : > { %v951_v25 = vsel %vm950_vm0, %v949_v19, 0 }
 0x193   : > { %v952_v27 = vshrl.u32 %v951_v25, 5  ;;  %v953_v28 = vand.u32 31, %v951_v25  ;;  %v1149_v31 = vshrl.u32 %v1148_v24, 23  ;;  %v1052_v37 = vadd.s32 1, %v3463_v26 }
 0x194   : > { %v1050_v25 = vor.u32 8388608, %v4859_v30 }
 0x195   : > { %v954_v32 = vsub.s32 32, %v953_v28  ;;  %v965_v34 = vshll.u32 %v6591_v33, %v953_v28  ;;  %v968_v36 = vshll.u32 %v6595_v35, %v953_v28  ;;  %vm974_vm1 = vcmp.lt.s32.totalorder %v952_v27, 4 }
 0x196   : > { %v956_v39 = vshll.u32 %v6589_v38, %v953_v28  ;;  %v959_v41 = vshll.u32 %v6593_v40, %v953_v28  ;;  %v962_v43 = vshll.u32 %v6587_v42, %v953_v28  ;;  %vm971_vm2 = vcmp.lt.s32.totalorder %v952_v27, 1 }
 0x197   : > { %v966_v44 = vshrl.u32 %v6595_v35, %v954_v32  ;;  %v969_v46 = vshrl.u32 %v6585_v45, %v954_v32  ;;  %v957_v47 = vshrl.u32 %v6593_v40, %v954_v32  ;;  %v955_v48 = vshrl.u32 %v6589_v38, %v954_v32 }
 0x198   : > { %v960_v49 = vshrl.u32 %v6587_v42, %v954_v32  ;;  %v963_v50 = vshrl.u32 %v6591_v33, %v954_v32  ;;  %vm972_vm3 = vcmp.lt.s32.totalorder %v952_v27, 2  ;;  %vm1053_vm4 = vcmp.gt.s32.totalorder %v1052_v37, 0 }
 0x199   : > { %v967_v51 = vor.u32 %v966_v44, %v965_v34  ;;  %v970_v52 = vor.u32 %v969_v46, %v968_v36  ;;  %v958_v53 = vor.u32 %v957_v47, %v956_v39  ;;  %vm973_vm5 = vcmp.lt.s32.totalorder %v952_v27, 3 }
 0x19a   : > { %v961_v54 = vor.u32 %v960_v49, %v959_v41  ;;  %v964_v55 = vor.u32 %v963_v50, %v962_v43  ;;  %v1054_v56 = vsel %vm1053_vm4, %v1052_v37, 0  ;;  %v3467_v27 = vadd.s32 4294967169, %v1149_v31 }
 0x19b   : > { %v980_v57 = vsel %vm974_vm1, %v967_v51, 920167782  ;;  %v984_v62 = vsel %vm974_vm1, %v970_v52, 1326507024  ;;  %v975_v63 = vsel %vm971_vm2, %v955_v48, %v958_v53  ;;  %v4875_v3 = vshrl.u32 %v1054_v56, 5 }
 0x19c   : > { %v976_v4 = vsel %vm974_vm1, %v964_v55, 2102212464  ;;  %v979_v6 = vsel %vm971_vm2, %v958_v53, %v961_v54  ;;  %v981_v8 = vsel %vm973_vm5, %v964_v55, %v980_v57  ;;  %v983_v10 = vsel %vm971_vm2, %v961_v54, %v964_v55 }
 0x19d   : > { %v977_v11 = vsel %vm973_vm5, %v961_v54, %v976_v4  ;;  %v982_v12 = vsel %vm972_vm3, %v979_v6, %v981_v8  ;;  %v985_v13 = vsel %vm973_vm5, %v967_v51, %v984_v62  ;;  %v1056_v14 = vand.u32 31, %v1054_v56  ;;  %v4913_v54 = vpop.f32.mrf.mxu0 }
 0x19e   : > { %v978_v16 = vsel %vm972_vm3, %v975_v63, %v977_v11  ;;  %v986_v17 = vsel %vm972_vm3, %v983_v10, %v985_v13  ;;  %v4884_v18 = vmul.u32.u64.low %v4855_v29, %v982_v12  ;;  %v4885_v19 = vmul.u32.u64.high %v4855_v29, %v982_v12, %v4884_v18 }
 0x19f   : > { %v4889_v21 = vmul.u32.u64.low %v4855_v29, %v986_v17  ;;  %v4890_v22 = vmul.u32.u64.high %v4855_v29, %v986_v17, %v4889_v21  ;;  %v1057_v24 = vsub.s32 32, %v1056_v14  ;;  %v994_v26 = vmul.u32 %v4855_v29, %v978_v16  ;;  %v782_v16 = vpop.f32.mrf.mxu0 }
 0x1a0   : > { %v1068_v28 = vshll.u32 %v6591_v33, %v1056_v14  ;;  %v1071_v32 = vshll.u32 %v6595_v35, %v1056_v14  ;;  %vm1077_vm6 = vcmp.lt.s32.totalorder %v4875_v3, 4  ;;  %v997_v39 = vadd.s32 1, %v4885_v19 }
 0x1a1   : > { %v1069_v34 = vshrl.u32 %v6595_v35, %v1057_v24  ;;  %v1072_v36 = vshrl.u32 %v6585_v45, %v1057_v24  ;;  %v1060_v37 = vshrl.u32 %v6593_v40, %v1057_v24  ;;  %v1059_v41 = vshll.u32 %v6589_v38, %v1056_v14 }
 0x1a2   : > { %v1062_v30 = vshll.u32 %v6593_v40, %v1056_v14  ;;  %v1063_v29 = vshrl.u32 %v6587_v42, %v1057_v24  ;;  %vm996_vm7 = vc.u32 %v4890_v22, %v4884_v18  ;;  %v1065_v44 = vshll.u32 %v6587_v42, %v1056_v14 }
 0x1a3   : > { %v1070_v31 = vor.u32 %v1069_v34, %v1068_v28  ;;  %v1073_v43 = vor.u32 %v1072_v36, %v1071_v32  ;;  %v998_v46 = vsel %vm996_vm7, %v997_v39, %v4885_v19  ;;  %v1061_v47 = vor.u32 %v1060_v37, %v1059_v41 }
 0x1a4   : > { %v1064_v48 = vor.u32 %v1063_v29, %v1062_v30  ;;  %v1066_v49 = vshrl.u32 %v6591_v33, %v1057_v24  ;;  %v999_v50 = vadd.s32 %v998_v46, %v994_v26  ;;  %v1090_v53 = vshll.u32 %v1050_v25, 8 }
 0x1a5   : > { %v1083_v51 = vsel %vm1077_vm6, %v1070_v31, 920167782  ;;  %v1087_v52 = vsel %vm1077_vm6, %v1073_v43, 1326507024  ;;  %v1058_v55 = vshrl.u32 %v6589_v38, %v1057_v24  ;;  %vm1074_vm8 = vcmp.lt.s32.totalorder %v4875_v3, 1 }
 0x1a6   : > { %v1067_v56 = vor.u32 %v1066_v49, %v1065_v44  ;;  %vm1076_vm9 = vcmp.lt.s32.totalorder %v4875_v3, 3  ;;  %v1000_v57 = vadd.s32 536870912, %v999_v50  ;;  %v1082_v62 = vsel %vm1074_vm8, %v1061_v47, %v1064_v48 }
 0x1a7   : > { %v1088_v63 = vsel %vm1076_vm9, %v1070_v31, %v1087_v52  ;;  %v1155_v4 = vadd.s32 1, %v3467_v27  ;;  %vm1075_vm10 = vcmp.lt.s32.totalorder %v4875_v3, 2  ;;  %v1078_v12 = vsel %vm1074_vm8, %v1058_v55, %v1061_v47 }
 0x1a8   : > { %v1079_v6 = vsel %vm1077_vm6, %v1067_v56, 2102212464  ;;  %v1084_v8 = vsel %vm1076_vm9, %v1067_v56, %v1083_v51  ;;  %v1086_v10 = vsel %vm1074_vm8, %v1064_v48, %v1067_v56  ;;  %v4921_v11 = vshrl.u32 %v1000_v57, 30 }
 0x1a9   : > { %v1085_v13 = vsel %vm1075_vm10, %v1082_v62, %v1084_v8  ;;  %v1089_v14 = vsel %vm1075_vm10, %v1086_v10, %v1088_v63  ;;  %v1080_v17 = vsel %vm1076_vm9, %v1064_v48, %v1079_v6  ;;  %vm1156_vm11 = vcmp.gt.s32.totalorder %v1155_v4, 0 }
 0x1aa   : > { %v4927_v19 = vmul.u32.u64.low %v1090_v53, %v1089_v14  ;;  %v4928_v21 = vmul.u32.u64.high %v1090_v53, %v1089_v14, %v4927_v19  ;;  %v1002_v24 = vshll.u32 %v4921_v11, 30  ;;  %v1157_v28 = vsel %vm1156_vm11, %v1155_v4, 0 }
 0x1ab   : > { %v4931_v25 = vmul.u32.u64.low %v1090_v53, %v1085_v13  ;;  %v4932_v26 = vmul.u32.u64.high %v1090_v53, %v1085_v13, %v4931_v25  ;;  %v1145_v32 = vand.u32 2147483647, %v4851_v20  ;;  %v783_v27 = vadd.f32 %v782_v16, %v4825_v61 }
 0x1ac   : > { %v1003_v34 = vsub.s32 %v999_v50, %v1002_v24  ;;  %v1081_v36 = vsel %vm1075_vm10, %v1078_v12, %v1080_v17  ;;  %v1159_v37 = vand.u32 31, %v1157_v28  ;;  %v995_v29 = vadd.s32 %v4884_v18, %v4890_v22 }
 0x1ad   : > { %vm1099_vm12 = vc.u32 %v4928_v21, %v4931_v25  ;;  %v1100_v41 = vadd.s32 1, %v4932_v26  ;;  %v1097_v31 = vmul.u32 %v1090_v53, %v1081_v36  ;;  %v1152_v43 = vand.u32 8388607, %v1145_v32 }
 0x1ae   : > { %v1005_v39 = vsub.s32 0, %v1003_v34  ;;  %v1160_v30 = vsub.s32 32, %v1159_v37  ;;  %v919_v44 = vmax.f32 %v783_v27, 0.0  ;;  %v4946_v47 = vshrl.u32 %v1157_v28, 5 }
 0x1af   : > { %v1171_v3 = vshll.u32 %v6591_v33, %v1159_v37  ;;  %v1174_v48 = vshll.u32 %v6595_v35, %v1159_v37  ;;  %v1101_v49 = vsel %vm1099_vm12, %v1100_v41, %v4932_v26  ;;  %v1162_v18 = vshll.u32 %v6589_v38, %v1159_v37 }
 0x1b0   : > { %v3460_v46 = vmin.u32 %v1005_v39, %v1003_v34  ;;  %v1172_v50 = vshrl.u32 %v6595_v35, %v1160_v30  ;;  %v1175_v51 = vshrl.u32 %v6585_v45, %v1160_v30  ;;  %v1102_v52 = vadd.s32 %v1101_v49, %v1097_v31 }
 0x1b1   : > { %v1163_v53 = vshrl.u32 %v6593_v40, %v1160_v30  ;;  %v1165_v55 = vshll.u32 %v6593_v40, %v1159_v37  ;;  %v1166_v62 = vshrl.u32 %v6587_v42, %v1160_v30  ;;  %v1168_v63 = vshll.u32 %v6587_v42, %v1159_v37 }
 0x1b2   : > { %v1007_v22 = vclz %v3460_v46  ;;  %v1173_v56 = vor.u32 %v1172_v50, %v1171_v3  ;;  %v1176_v57 = vor.u32 %v1175_v51, %v1174_v48  ;;  %v1103_v6 = vadd.s32 536870912, %v1102_v52 }
 0x1b3   : > { %v1164_v8 = vor.u32 %v1163_v53, %v1162_v18  ;;  %v1169_v10 = vshrl.u32 %v6591_v33, %v1160_v30  ;;  %vm1180_vm13 = vcmp.lt.s32.totalorder %v4946_v47, 4  ;;  %v1153_v12 = vor.u32 8388608, %v1152_v43 }
 0x1b4   : > { %v3461_v4 = vadd.s32 4294967294, %v1007_v22  ;;  %v1167_v13 = vor.u32 %v1166_v62, %v1165_v55  ;;  %v4961_v14 = vadd.f32 %v4831_v1, %v919_v44  ;;  %v4963_v16 = vshrl.u32 %v1103_v6, 30 }
 0x1b5   : > { %v1186_v17 = vsel %vm1180_vm13, %v1173_v56, 920167782  ;;  %v1170_v19 = vor.u32 %v1169_v10, %v1168_v63  ;;  %v1190_v26 = vsel %vm1180_vm13, %v1176_v57, 1326507024  ;;  %vm1177_vm15 = vcmp.lt.s32.totalorder %v4946_v47, 1 }
 0x1b6   : > { %vm3462_vm14 = vcmp.lt.s32.totalorder %v3461_v4, 0  ;;  %vm1179_vm0 = vcmp.lt.s32.totalorder %v4946_v47, 3  ;;  %v1105_v36 = vshll.u32 %v4963_v16, 30  ;;  %v1185_v37 = vsel %vm1177_vm15, %v1164_v8, %v1167_v13 }
 0x1b7   : > { %v1010_v24 = vsel %vm3462_vm14, 0, %v3461_v4  ;;  %vm1178_vm1 = vcmp.lt.s32.totalorder %v4946_v47, 2  ;;  %v1187_v41 = vsel %vm1179_vm0, %v1170_v19, %v1186_v17  ;;  %v1189_v46 = vsel %vm1177_vm15, %v1167_v13, %v1170_v19 }
 0x1b8   : > { %v1011_v28 = vsub.s32 32, %v1010_v24  ;;  %v1015_v27 = vsub.s32 4294967266, %v1010_v24  ;;  %v1012_v39 = vshll.u32 %v1003_v34, %v1010_v24  ;;  %v1106_v44 = vsub.s32 %v1102_v52, %v1105_v36 }
 0x1b9   : > { %v1188_v3 = vsel %vm1178_vm1, %v1185_v37, %v1187_v41  ;;  %v1191_v48 = vsel %vm1179_vm0, %v1173_v56, %v1190_v26  ;;  %v1193_v49 = vshll.u32 %v1153_v12, 8  ;;  %v1251_v34 = vand.u32 2139095040, %v4961_v14 }
 0x1ba   : > { %v1013_v31 = vshrl.u32 %v995_v29, %v1011_v28  ;;  %v1016_v43 = vadd.s32 127, %v1015_v27  ;;  %v1108_v18 = vsub.s32 0, %v1106_v44  ;;  %v1182_v29 = vsel %vm1180_vm13, %v1170_v19, 2102212464 }
 0x1bb   : > { %v1161_v22 = vshrl.u32 %v6589_v38, %v1160_v30  ;;  %v1192_v52 = vsel %vm1178_vm1, %v1189_v46, %v1191_v48  ;;  %v4989_v53 = vmul.u32.u64.low %v1193_v49, %v1188_v3  ;;  %v4990_v55 = vmul.u32.u64.high %v1193_v49, %v1188_v3, %v4989_v53 }
 0x1bc   : > { %v1014_v50 = vor.u32 %v1013_v31, %v1012_v39  ;;  %v1017_v51 = vshll.u32 %v1016_v43, 23  ;;  %v3464_v56 = vmin.u32 %v1108_v18, %v1106_v44  ;;  %v1183_v4 = vsel %vm1179_vm0, %v1167_v13, %v1182_v29 }
 0x1bd   : > { %v1181_v63 = vsel %vm1177_vm15, %v1161_v22, %v1164_v8  ;;  %v1252_v6 = vshrl.u32 %v1251_v34, 23  ;;  %v4997_v30 = vmul.u32.u64.low %v1193_v49, %v1192_v52  ;;  %v4998_v17 = vmul.u32.u64.high %v1193_v49, %v1192_v52, %v4997_v30 }
 0x1be   : > { %v1018_v57 = vor.u32 4788187, %v1017_v51  ;;  %v1021_v62 = vcvt.s32.f32 %v1014_v50  ;;  %v1110_v12 = vclz %v3464_v56  ;;  %v1203_v19 = vadd.s32 1, %v4990_v55  ;;  %v5046_v30 = vpop.f32.mrf.mxu0 }
 0x1bf   : > { %v3471_v24 = vadd.s32 4294967169, %v1252_v6  ;;  %v1184_v27 = vsel %vm1178_vm1, %v1181_v63, %v1183_v4  ;;  %v6580_v36 = vsub.s32 1, %v4813_v58  ;;  %vm5006_vm2 = vcmp.le.f32.partialorder %v939_v9, 0.7853982 }
 0x1c0   : > { %v1019_v10 = vand.u32 2147483647, %v1018_v57  ;;  %v3465_v28 = vadd.s32 4294967294, %v1110_v12  ;;  %vm941_vm3 = vcmp.lt.s32.totalorder %v4836_v5, 0  ;;  %v1025_v39 = vsub.s32 4, %v4921_v11 }
 0x1c1   : > { %v1258_v13 = vadd.s32 1, %v3471_v24  ;;  %vm1202_vm5 = vc.u32 %v4998_v17, %v4989_v53  ;;  %v1200_v41 = vmul.u32 %v1193_v49, %v1184_v27  ;;  %v1098_v43 = vadd.s32 %v4931_v25, %v4928_v21 }
 0x1c2   : > { %v1022_v26 = vmul.f32 %v1021_v62, %v1019_v10  ;;  %vm3466_vm4 = vcmp.lt.s32.totalorder %v3465_v28, 0  ;;  %v1204_v31 = vsel %vm1202_vm5, %v1203_v19, %v4990_v55  ;;  %v1026_v49 = vsel %vm941_vm3, %v1025_v39, %v4921_v11 }
 0x1c3   : > { %v1113_v47 = vsel %vm3466_vm4, 0, %v3465_v28  ;;  %vm1259_vm6 = vcmp.gt.s32.totalorder %v1258_v13, 0  ;;  %v1205_v34 = vadd.s32 %v1204_v31, %v1200_v41  ;;  %v5028_v21 = vrot.slane %v4821_v60, %v6580_v36 }
 0x1c4   : > { %v1023_v37 = vxor.u32 2147483648, %v1022_v26  ;;  %v1114_v46 = vsub.s32 32, %v1113_v47  ;;  %v1118_v3 = vsub.s32 4294967266, %v1113_v47  ;;  %v1260_v50 = vsel %vm1259_vm6, %v1258_v13, 0 }
 0x1c5   : > { %v1115_v29 = vshll.u32 %v1106_v44, %v1113_v47  ;;  %v1206_v22 = vadd.s32 536870912, %v1205_v34  ;;  %v1262_v52 = vand.u32 31, %v1260_v50  ;;  %v1028_v55 = vsel %vm5006_vm2, 0, %v1026_v49 }
 0x1c6   : > { %v1024_v9 = vsel %vm941_vm3, %v1023_v37, %v1022_v26  ;;  %v1116_v51 = vshrl.u32 %v1098_v43, %v1114_v46  ;;  %v1119_v18 = vadd.s32 127, %v1118_v3  ;;  %v5036_v63 = vshrl.u32 %v1260_v50, 5  ;;  %v788_v46 = vpop.f32.mrf.mxu0 }
 0x1c7   : > { %v1027_v48 = vsel %vm5006_vm2, %v4836_v5, %v1024_v9  ;;  %v5032_v56 = vshrl.u32 %v1206_v22, 30  ;;  %v5034_v11 = vsub.s32 32, %v1262_v52  ;;  %v1274_v44 = vshll.u32 %v6591_v33, %v1262_v52 }
 0x1c8   : > { %4001 = vcosq.f32 %v1027_v48  ;;  %v1120_v25 = vshll.u32 %v1119_v18, 23  ;;  %v1117_v57 = vor.u32 %v1116_v51, %v1115_v29  ;;  %v1248_v4 = vand.u32 2147483647, %v4961_v14 }
 0x1c9   : > { %4003 = vsinq.f32 %v1027_v48  ;;  %v1208_v6 = vshll.u32 %v5032_v56, 30  ;;  %v1275_v60 = vshrl.u32 %v6595_v35, %v5034_v11  ;;  %v1277_v10 = vshll.u32 %v6595_v35, %v1262_v52 }
 0x1ca   : > { %v1121_v62 = vor.u32 4788187, %v1120_v25  ;;  %v1278_v12 = vshrl.u32 %v6585_v45, %v5034_v11  ;;  %v1266_v24 = vshrl.u32 %v6593_v40, %v5034_v11  ;;  %v1269_v26 = vshrl.u32 %v6587_v42, %v5034_v11 }
 0x1cb   : > { %v1124_v28 = vcvt.s32.f32 %v1117_v57  ;;  %v5052_v27 = vsub.s32 %v1205_v34, %v1208_v6  ;;  %v1276_v8 = vor.u32 %v1275_v60, %v1274_v44  ;;  %v1032_v37 = vand.u32 3, %v1028_v55 }
 0x1cc   : > { %v1122_v19 = vand.u32 2147483647, %v1121_v62  ;;  %v1279_v13 = vor.u32 %v1278_v12, %v1277_v10  ;;  %v1255_v39 = vand.u32 8388607, %v1248_v4  ;;  %v1265_v47 = vshll.u32 %v6589_v38, %v1262_v52 }
 0x1cd   : > { %v1268_v41 = vshll.u32 %v6593_v40, %v1262_v52  ;;  %v767_v31 = vadd.f32 %v4833_v2, %v5028_v21  ;;  %v1211_v43 = vsub.s32 0, %v5052_v27  ;;  %vm1283_vm7 = vcmp.lt.s32.totalorder %v5036_v63, 4 }
 0x1ce   : > { %v1125_v9 = vmul.f32 %v1124_v28, %v1122_v19  ;;  %vm1031_vm8 = vweird.f32 %v4836_v5  ;;  %v1267_v3 = vor.u32 %v1266_v24, %v1265_v47  ;;  %v1271_v34 = vshll.u32 %v6587_v42, %v1262_v52 }
 0x1cf   : > { %v1270_v48 = vor.u32 %v1269_v26, %v1268_v41  ;;  %v1272_v50 = vshrl.u32 %v6591_v33, %v5034_v11  ;;  %vm1044_vm9 = vcmp.lt.s32.totalorder %v4847_v15, 0  ;;  %v3468_v49 = vmin.u32 %v1211_v43, %v5052_v27 }
 0x1d0   : > { %v1289_v2 = vsel %vm1283_vm7, %v1276_v8, 920167782  ;;  %v1293_v51 = vsel %vm1283_vm7, %v1279_v13, 1326507024  ;;  %vm1033_vm10 = vcmp.lt.s32.totalorder %v1032_v37, 2  ;;  %v1256_v18 = vor.u32 8388608, %v1255_v39 }
 0x1d1   : > { %v1273_v29 = vor.u32 %v1272_v50, %v1271_v34  ;;  %v789_v22 = vadd.f32 %v788_v46, %v4825_v61  ;;  %v1126_v52 = vxor.u32 2147483648, %v1125_v9  ;;  %v1213_v55 = vclz %v3468_v49 }
 0x1d2   : > { %vm1280_vm11 = vcmp.lt.s32.totalorder %v5036_v63, 1  ;;  %vm1282_vm12 = vcmp.lt.s32.totalorder %v5036_v63, 3  ;;  %vm1034_vm13 = vcmp.eq.s32.totalorder %v1032_v37, 0  ;;  %vm1037_vm14 = vcmp.eq.s32.totalorder %v1032_v37, 2 }
 0x1d3   : > { %v1288_v44 = vsel %vm1280_vm11, %v1267_v3, %v1270_v48  ;;  %v1290_v6 = vsel %vm1282_vm12, %v1273_v29, %v1289_v2  ;;  %v1294_v60 = vsel %vm1282_vm12, %v1276_v8, %v1293_v51  ;;  %v3469_v12 = vadd.s32 4294967294, %v1213_v55 }
 0x1d4   : > { %vm1281_vm15 = vcmp.lt.s32.totalorder %v5036_v63, 2  ;;  %v1292_v24 = vsel %vm1280_vm11, %v1270_v48, %v1273_v29  ;;  %v1296_v26 = vshll.u32 %v1256_v18, 8  ;;  %vm5091_vm1 = vcmp.le.f32.partialorder %v1042_v23, 0.7853982 }
 0x1d5   : > { %v4002_v25 = vpop.eup %4001  ;;  %vm3470_vm0 = vcmp.lt.s32.totalorder %v3469_v12, 0  ;;  %v1291_v13 = vsel %vm1281_vm15, %v1288_v44, %v1290_v6  ;;  %v1295_v39 = vsel %vm1281_vm15, %v1292_v24, %v1294_v60  ;;  %v1127_v41 = vsel %vm1044_vm9, %v1126_v52, %v1125_v9 }
 0x1d6   : > { %v4004_v57 = vpop.eup %4003  ;;  %v1038_v62 = vxor.u32 2147483648, %v4002_v25  ;;  %v920_v43 = vmax.f32 %v789_v22, 0.0  ;;  %v1216_v34 = vsel %vm3470_vm0, 0, %v3469_v12  ;;  %v1285_v37 = vsel %vm1283_vm7, %v1273_v29, 2102212464 }
 0x1d7   : > { %v1035_v10 = vxor.u32 2147483648, %v4004_v57  ;;  %v5099_v50 = vmul.u32.u64.low %v1296_v26, %v1295_v39  ;;  %v5100_v49 = vmul.u32.u64.high %v1296_v26, %v1295_v39, %v5099_v50  ;;  %v1130_v9 = vsel %vm5091_vm1, %v4847_v15, %v1127_v41 }
 0x1d8   : > { %v1039_v19 = vsel %vm1037_vm14, %v1038_v62, %v4004_v57  ;;  %v5106_v23 = vmul.u32.u64.low %v1296_v26, %v1291_v13  ;;  %v5107_v51 = vmul.u32.u64.high %v1296_v26, %v1291_v13, %v5106_v23  ;;  %v1264_v5 = vshrl.u32 %v6589_v38, %v5034_v11  ;;  %v5126_v62 = vpop.f32.mrf.mxu0 }
 0x1d9   : > { %v1036_v28 = vsel %vm1034_vm13, %v4002_v25, %v1035_v10  ;;  %v1221_v18 = vsub.s32 4294967266, %v1216_v34  ;;  %v5115_v22 = vadd.f32 %v4831_v1, %v920_v43  ;;  %v1286_v29 = vsel %vm1282_vm12, %v1270_v48, %v1285_v37  ;;  %6657 = vst [vmem:[#allocation23_spill] sm:$0xff] %v5126_v62 }
 0x1da   : > { %v1040_v8 = vsel %vm1033_vm10, %v1036_v28, %v1039_v19  ;;  %4005 = vcosq.f32 %v1130_v9  ;;  %v1306_v55 = vadd.s32 1, %v5107_v51  ;;  %vm1305_vm2 = vc.u32 %v5100_v49, %v5106_v23  ;;  %v794_v24 = vpop.f32.mrf.mxu0 }
 0x1db   : > { %v1041_v46 = vsel %vm1031_vm8, nan, %v1040_v8  ;;  %4007 = vsinq.f32 %v1130_v9  ;;  %v1222_v25 = vadd.s32 127, %v1221_v18  ;;  %v1354_v11 = vand.u32 2139095040, %v5115_v22 }
 0x1dc   : > { %v5102_v2 = vmul.f32 %v1041_v46, %v767_v31  ;;  %v1284_v31 = vsel %vm1280_vm11, %v1264_v5, %v1267_v3  ;;  %v1217_v57 = vsub.s32 32, %v1216_v34  ;;  %v1128_v3 = vsub.s32 4, %v4963_v16 }
 0x1dd   : > { %v1287_v52 = vsel %vm1281_vm15, %v1284_v31, %v1286_v29  ;;  %v1201_v48 = vadd.s32 %v4989_v53, %v4998_v17  ;;  %v1223_v6 = vshll.u32 %v1222_v25, 23  ;;  %v1307_v60 = vsel %vm1305_vm2, %v1306_v55, %v5107_v51 }
 0x1de   : > { %v1303_v44 = vmul.u32 %v1296_v26, %v1287_v52  ;;  %v1355_v63 = vshrl.u32 %v1354_v11, 23  ;;  %v1129_v28 = vsel %vm1044_vm9, %v1128_v3, %v4963_v16  ;;  %v1218_v39 = vshll.u32 %v5052_v27, %v1216_v34 }
 0x1df   : > { %v1219_v12 = vshrl.u32 %v1201_v48, %v1217_v57  ;;  %v1224_v8 = vor.u32 4788187, %v1223_v6  ;;  %v1231_v26 = vsub.s32 4, %v5032_v56  ;;  %v6584_v17 = vand.u32 2147483647, %v5115_v22 }
 0x1e0   : > { %v1308_v10 = vadd.s32 %v1307_v60, %v1303_v44  ;;  %v3475_v19 = vadd.s32 4294967169, %v1355_v63  ;;  %v795_v43 = vadd.f32 %v794_v24, %v4825_v61  ;;  %v1131_v16 = vsel %vm5091_vm1, 0, %v1129_v28 }
 0x1e1   : > { %v1220_v46 = vor.u32 %v1219_v12, %v1218_v39  ;;  %vm1147_vm4 = vcmp.lt.s32.totalorder %v4851_v20, 0  ;;  %v5151_v51 = vadd.f32 %v4839_v7, %v5028_v21  ;;  %v5155_v9 = vadd.f32 %v4913_v54, %v5028_v21 }
 0x1e2   : > { %v1309_v13 = vadd.s32 536870912, %v1308_v10  ;;  %v1361_v41 = vadd.s32 1, %v3475_v19  ;;  %v1225_v5 = vand.u32 2147483647, %v1224_v8  ;;  %v5160_v47 = vsel %vm1147_vm4, %v1231_v26, %v5032_v56 }
 0x1e3   : > { %vm5164_vm5 = vcmp.le.f32.partialorder %v1145_v32, 0.7853982  ;;  %v1358_v7 = vand.u32 8388607, %v6584_v17  ;;  %v921_v29 = vmax.f32 %v795_v43, 0.0  ;;  %v5172_v54 = vand.u32 3, %v1131_v16 }
 0x1e4   : > { %v5137_v53 = vshrl.u32 %v1309_v13, 30  ;;  %vm1362_vm3 = vcmp.gt.s32.totalorder %v1361_v41, 0  ;;  %v1227_v25 = vcvt.s32.f32 %v1220_v46  ;;  %v5176_v52 = vadd.f32 %v5046_v30, %v5028_v21 }
 0x1e5   : > { %v1363_v34 = vsel %vm1362_vm3, %v1361_v41, 0  ;;  %v1779_v55 = vrot.slane %v5102_v2, 5  ;;  %v1234_v32 = vsel %vm5164_vm5, 0, %v5160_v47  ;;  %v1304_v11 = vadd.s32 %v5106_v23, %v5100_v49 }
 0x1e6   : > { %v1311_v27 = vshll.u32 %v5137_v53, 30  ;;  %v1365_v56 = vand.u32 31, %v1363_v34  ;;  %v5186_v48 = vmul.f32 %v1227_v25, %v1225_v5  ;;  %v5189_v60 = vshrl.u32 %v1363_v34, 5 }
 0x1e7   : > { %v5141_v50 = vpop.eup %4005  ;;  %v1359_v63 = vor.u32 8388608, %v1358_v7  ;;  %vm1795_vm6 = vcmask 1042432   ;;  %vm1137_vm8 = vcmp.eq.s32.totalorder %v5172_v54, 0  ;;  %vm1140_vm9 = vcmp.eq.s32.totalorder %v5172_v54, 2 }
 0x1e8   : > { %v5147_v37 = vpop.eup %4007  ;;  %v5168_v31 = vsub.s32 %v1308_v10, %v1311_v27  ;;  %v1141_v44 = vxor.u32 2147483648, %v5141_v50  ;;  %v1366_v6 = vsub.s32 32, %v1365_v56  ;;  %v5192_v10 = vadd.f32 %v4831_v1, %v921_v29 }
 0x1e9   : > { %v1138_v3 = vxor.u32 2147483648, %v5147_v37  ;;  %v1377_v12 = vshll.u32 %v6591_v33, %v1365_v56  ;;  %v1380_v23 = vshll.u32 %v6595_v35, %v1365_v56  ;;  %v1368_v19 = vshll.u32 %v6589_v38, %v1365_v56 }
 0x1ea   : > { %v1314_v57 = vsub.s32 0, %v5168_v31  ;;  %v1378_v49 = vshrl.u32 %v6595_v35, %v1366_v6  ;;  %v1381_v28 = vshrl.u32 %v6585_v45, %v1366_v6  ;;  %v1369_v13 = vshrl.u32 %v6593_v40, %v1366_v6 }
 0x1eb   : > { %v1371_v39 = vshll.u32 %v6593_v40, %v1365_v56  ;;  %v1372_v26 = vshrl.u32 %v6587_v42, %v1366_v6  ;;  %v1374_v41 = vshll.u32 %v6587_v42, %v1365_v56  ;;  %v1375_v43 = vshrl.u32 %v6591_v33, %v1366_v6 }
 0x1ec   : > { %v3472_v30 = vmin.u32 %v1314_v57, %v5168_v31  ;;  %v1379_v8 = vor.u32 %v1378_v49, %v1377_v12  ;;  %v1382_v16 = vor.u32 %v1381_v28, %v1380_v23  ;;  %vm1386_vm7 = vcmp.lt.s32.totalorder %v5189_v60, 4 }
 0x1ed   : > { %v1370_v27 = vor.u32 %v1369_v13, %v1368_v19  ;;  %v1373_v5 = vor.u32 %v1372_v26, %v1371_v39  ;;  %v1376_v7 = vor.u32 %v1375_v43, %v1374_v41  ;;  %v5209_v29 = vshll.u32 %v1359_v63, 8  ;;  %v5222_v19 = vpop.f32.mrf.mxu0 }
 0x1ee   : > { %v1316_v24 = vclz %v3472_v30  ;;  %v1392_v34 = vsel %vm1386_vm7, %v1379_v8, 920167782  ;;  %v1396_v25 = vsel %vm1386_vm7, %v1382_v16, 1326507024  ;;  %vm1383_vm11 = vcmp.lt.s32.totalorder %v5189_v60, 1 }
 0x1ef   : > { %vm1385_vm12 = vcmp.lt.s32.totalorder %v5189_v60, 3  ;;  %v1367_v57 = vshrl.u32 %v6589_v38, %v1366_v6  ;;  %v1391_v30 = vsel %vm1383_vm11, %v1370_v27, %v1373_v5  ;;  %vm1384_vm13 = vcmp.lt.s32.totalorder %v5189_v60, 2 }
 0x1f0   : > { %v3473_v46 = vadd.s32 4294967294, %v1316_v24  ;;  %v1393_v12 = vsel %vm1385_vm12, %v1376_v7, %v1392_v34  ;;  %v1457_v23 = vand.u32 2139095040, %v5192_v10  ;;  %v1388_v28 = vsel %vm1386_vm7, %v1376_v7, 2102212464 }
 0x1f1   : > { %v1395_v6 = vsel %vm1383_vm11, %v1373_v5, %v1376_v7  ;;  %v1397_v13 = vsel %vm1385_vm12, %v1379_v8, %v1396_v25  ;;  %vm1136_vm14 = vcmp.lt.s32.totalorder %v5172_v54, 2  ;;  %v1394_v41 = vsel %vm1384_vm13, %v1391_v30, %v1393_v12  ;;  %v5250_v12 = vld [vmem:[#allocation7] ss:$0 sm:$0xff] }
 0x1f2   : > { %vm3474_vm10 = vcmp.lt.s32.totalorder %v3473_v46, 0  ;;  %v1398_v43 = vsel %vm1384_vm13, %v1395_v6, %v1397_v13  ;;  %v1458_v25 = vshrl.u32 %v1457_v23, 23  ;;  %v5248_v30 = vsel %vm1795_vm6, 0.0, %v1779_v55 }
 0x1f3   : > { %v1319_v56 = vsel %vm3474_vm10, 0, %v3473_v46  ;;  %v1387_v46 = vsel %vm1383_vm11, %v1367_v57, %v1370_v27  ;;  %v5240_v16 = vmul.u32.u64.low %v5209_v29, %v1398_v43  ;;  %v5241_v34 = vmul.u32.u64.high %v5209_v29, %v1398_v43, %v5240_v16  ;;  %6660 = vst [vmem:[#allocation24_spill] sm:$0xff] %v5248_v30 }
 0x1f4   : > { %v1320_v49 = vsub.s32 32, %v1319_v56  ;;  %v1324_v63 = vsub.s32 4294967266, %v1319_v56  ;;  %v1321_v24 = vshll.u32 %v5168_v31, %v1319_v56  ;;  %v1229_v31 = vxor.u32 2147483648, %v5186_v48  ;;  %v800_v56 = vpop.f32.mrf.mxu0 }
 0x1f5   : > { %v5256_v27 = vand.u32 3, %v1234_v32  ;;  %vm1250_vm15 = vcmp.lt.s32.totalorder %v4961_v14, 0  ;;  %vm1134_vm0 = vweird.f32 %v4847_v15  ;;  %v1142_v47 = vsel %vm1140_vm9, %v1141_v44, %v5147_v37  ;;  %v5290_v37 = vld [vmem:[#allocation5 + $0x1] ss:$0 sm:$0xff] }
 0x1f6   : > { %v1322_v39 = vshrl.u32 %v1304_v11, %v1320_v49  ;;  %v1325_v26 = vadd.s32 127, %v1324_v63  ;;  %v1389_v11 = vsel %vm1385_vm12, %v1373_v5, %v1388_v28  ;;  %v5264_v49 = vld [vmem:[#allocation5] ss:$0 sm:$0xff]  ;;  %v1139_v63 = vsel %vm1137_vm8, %v5141_v50, %v1138_v3 }
 0x1f7   : > { %v5260_v57 = vmul.u32.u64.low %v5209_v29, %v1394_v41  ;;  %v5261_v5 = vmul.u32.u64.high %v5209_v29, %v1394_v41, %v5260_v57  ;;  %v3479_v23 = vadd.s32 4294967169, %v1458_v25  ;;  %vm5282_vm1 = vcmp.le.f32.partialorder %v1248_v4, 0.7853982  ;;  %v5308_v41 = vld [vmem:[#allocation5 + $0x2] ss:$0 sm:$0xff] }
 0x1f8   : > { %v1323_v8 = vor.u32 %v1322_v39, %v1321_v24  ;;  %v1326_v7 = vshll.u32 %v1325_v26, 23  ;;  %v1230_v24 = vsel %vm1147_vm4, %v1229_v31, %v5186_v48  ;;  %v1390_v3 = vsel %vm1384_vm13, %v1387_v46, %v1389_v11  ;;  %v5321_v11 = vld [vmem:[#allocation5 + $0x3] ss:$0 sm:$0xff] }
 0x1f9   : > { %v6583_v50 = vand.u32 2147483647, %v5192_v10  ;;  %v801_v6 = vadd.f32 %v800_v56, %v4825_v61  ;;  %vm1408_vm2 = vc.u32 %v5241_v34, %v5260_v57  ;;  %v1464_v48 = vadd.s32 1, %v3479_v23 }
 0x1fa   : > { %v1327_v32 = vor.u32 4788187, %v1326_v7  ;;  %v1330_v13 = vcvt.s32.f32 %v1323_v8  ;;  %v5297_v4 = vsel %vm1795_vm6, %v1779_v55, 0.0  ;;  %v5301_v60 = vmul.f32 %v5264_v49, %v5248_v30 }
 0x1fb   : > { %6663 = vst [vmem:[#allocation25_spill] sm:$0xff] %v5297_v4  ;;  %v5305_v39 = vmul.f32 %v5250_v12, %v5102_v2  ;;  %v1409_v26 = vadd.s32 1, %v5261_v5  ;;  %v1233_v43 = vsel %vm5164_vm5, %v4851_v20, %v1230_v24  ;;  %v1406_v55 = vmul.u32 %v5209_v29, %v1390_v3 }
 0x1fc   : > { %v1328_v44 = vand.u32 2147483647, %v1327_v32  ;;  %6664 = vst [vmem:[#allocation26_spill] sm:$0xff] %v5301_v60  ;;  %vm1465_vm3 = vcmp.gt.s32.totalorder %v1464_v48, 0  ;;  %v5316_v46 = vmul.f32 %v5290_v37, %v5248_v30  ;;  %v1143_v16 = vsel %vm1136_vm14, %v1139_v63, %v1142_v47 }
 0x1fd   : > { %6665 = vst [vmem:[#allocation27_spill] sm:$0xff] %v5305_v39  ;;  %v1410_v8 = vsel %vm1408_vm2, %v1409_v26, %v5261_v5  ;;  %v1466_v7 = vsel %vm1465_vm3, %v1464_v48, 0  ;;  %v1461_v18 = vand.u32 8388607, %v6583_v50  ;;  %v922_v32 = vmax.f32 %v801_v6, 0.0 }
 0x1fe   : > { %v1331_v31 = vmul.f32 %v1330_v13, %v1328_v44  ;;  %v1411_v56 = vadd.s32 %v1410_v8, %v1406_v55  ;;  %v5327_v29 = vmul.f32 %v5290_v37, %v5297_v4  ;;  %v5331_v23 = vmul.f32 %v5308_v41, %v5248_v30 }
 0x1ff   : > { %4009 = vcosq.f32 %v1233_v43  ;;  %v1468_v54 = vand.u32 31, %v1466_v7  ;;  %v5335_v47 = vshrl.u32 %v1466_v7, 5  ;;  %v5339_v24 = vmul.f32 %v5308_v41, %v5297_v4 }
 0x200   : > { %v1332_v25 = vxor.u32 2147483648, %v1331_v31  ;;  %6666 = vst [vmem:[#allocation28_spill] sm:$0xff] %v5331_v23  ;;  %4011 = vsinq.f32 %v1233_v43  ;;  %v1412_v63 = vadd.s32 536870912, %v1411_v56  ;;  %v5343_v3 = vmul.f32 %v5321_v11, %v5248_v30 }
 0x201   : > { %6667 = vst [vmem:[#allocation29_spill] sm:$0xff] %v5339_v24  ;;  %v1144_v6 = vsel %vm1134_vm0, nan, %v1143_v16  ;;  %v1469_v44 = vsub.s32 32, %v1468_v54  ;;  %v1462_v26 = vor.u32 8388608, %v1461_v18  ;;  %v5353_v43 = vadd.f32 %v4831_v1, %v922_v32 }
 0x202   : > { %v1333_v5 = vsel %vm1250_vm15, %v1332_v25, %v1331_v31  ;;  %6668 = vst [vmem:[#allocation30_spill] sm:$0xff] %v5343_v3  ;;  %v5350_v48 = vshrl.u32 %v1412_v63, 30  ;;  %v1480_v31 = vshll.u32 %v6591_v33, %v1468_v54  ;;  %v1483_v8 = vshll.u32 %v6595_v35, %v1468_v54 }
 0x203   : > { %v1336_v13 = vsel %vm5282_vm1, %v4961_v14, %v1333_v5  ;;  %v1481_v55 = vshrl.u32 %v6595_v35, %v1469_v44  ;;  %v1484_v15 = vshrl.u32 %v6585_v45, %v1469_v44  ;;  %vm1489_vm4 = vcmp.lt.s32.totalorder %v5335_v47, 4 }
 0x204   : > { %v1414_v16 = vshll.u32 %v5350_v48, 30  ;;  %v1471_v7 = vshll.u32 %v6589_v38, %v1468_v54  ;;  %v1472_v25 = vshrl.u32 %v6593_v40, %v1469_v44  ;;  %v1474_v1 = vshll.u32 %v6593_v40, %v1468_v54 }
 0x205   : > { %v1482_v18 = vor.u32 %v1481_v55, %v1480_v31  ;;  %v1485_v5 = vor.u32 %v1484_v15, %v1483_v8  ;;  %v1475_v32 = vshrl.u32 %v6587_v42, %v1469_v44  ;;  %v1477_v0 = vshll.u32 %v6587_v42, %v1468_v54  ;;  %v5379_v54 = vpop.f32.mrf.mxu0 }
 0x206   : > { %v5365_v63 = vsub.s32 %v1411_v56, %v1414_v16  ;;  %v1473_v36 = vor.u32 %v1472_v25, %v1471_v7  ;;  %v1478_v50 = vshrl.u32 %v6591_v33, %v1469_v44  ;;  %v5370_v17 = vmul.f32 %v1144_v6, %v5151_v51  ;;  %6669 = vst [vmem:[#allocation31_spill] sm:$0xff] %v5379_v54  ;;  %v5404_v33 = vld [vmem:[#allocation5 + $0x4] ss:$0 sm:$0xff] }
 0x207   : > { %v1334_v45 = vsub.s32 4, %v5137_v53  ;;  %v1495_v31 = vsel %vm1489_vm4, %v1482_v18, 920167782  ;;  %v1476_v55 = vor.u32 %v1475_v32, %v1474_v1  ;;  %v1499_v56 = vsel %vm1489_vm4, %v1485_v5, 1326507024  ;;  %v806_v42 = vpop.f32.mrf.mxu0 }
 0x208   : > { %v1417_v8 = vsub.s32 0, %v5365_v63  ;;  %v1479_v15 = vor.u32 %v1478_v50, %v1477_v0  ;;  %vm1486_vm5 = vcmp.lt.s32.totalorder %v5335_v47, 1  ;;  %4013 = vcosq.f32 %v1336_v13 }
 0x209   : > { %v1494_v51 = vsel %vm1486_vm5, %v1473_v36, %v1476_v55  ;;  %v5383_v6 = vshll.u32 %v1462_v26, 8  ;;  %v1560_v16 = vand.u32 2139095040, %v5353_v43  ;;  %v1470_v25 = vshrl.u32 %v6589_v38, %v1469_v44 }
 0x20a   : > { %v3476_v7 = vmin.u32 %v1417_v8, %v5365_v63  ;;  %vm1487_vm7 = vcmp.lt.s32.totalorder %v5335_v47, 2  ;;  %vm1488_vm8 = vcmp.lt.s32.totalorder %v5335_v47, 3  ;;  %vm1240_vm9 = vcmp.eq.s32.totalorder %v5256_v27, 0 }
 0x20b   : > { %vm1243_vm10 = vcmp.eq.s32.totalorder %v5256_v27, 2  ;;  %v1491_v0 = vsel %vm1489_vm4, %v1479_v15, 2102212464  ;;  %v1496_v50 = vsel %vm1488_vm8, %v1479_v15, %v1495_v31  ;;  %v1498_v26 = vsel %vm1486_vm5, %v1476_v55, %v1479_v15 }
 0x20c   : > { %v1500_v44 = vsel %vm1488_vm8, %v1482_v18, %v1499_v56  ;;  %v4010_v5 = vpop.eup %4009  ;;  %4015 = vsinq.f32 %v1336_v13  ;;  %v1419_v1 = vclz %v3476_v7  ;;  %v1497_v32 = vsel %vm1487_vm7, %v1494_v51, %v1496_v50 }
 0x20d   : > { %v1501_v8 = vsel %vm1487_vm7, %v1498_v26, %v1500_v44  ;;  %v4012_v38 = vpop.eup %4011  ;;  %v1490_v31 = vsel %vm1486_vm5, %v1470_v25, %v1473_v36  ;;  %v1561_v18 = vshrl.u32 %v1560_v16, 23  ;;  %vm1239_vm11 = vcmp.lt.s32.totalorder %v5256_v27, 2 }
 0x20e   : > { %v5409_v15 = vmul.u32.u64.low %v5383_v6, %v1501_v8  ;;  %v5410_v40 = vmul.u32.u64.high %v5383_v6, %v1501_v8, %v5409_v15  ;;  %v3477_v13 = vadd.s32 4294967294, %v1419_v1  ;;  %v1492_v56 = vsel %vm1488_vm8, %v1476_v55, %v1491_v0  ;;  %v5432_v55 = vld [vmem:[#allocation5 + $0x5] ss:$0 sm:$0xff] }
 0x20f   : > { %v5416_v51 = vmul.u32.u64.low %v5383_v6, %v1497_v32  ;;  %v5417_v7 = vmul.u32.u64.high %v5383_v6, %v1497_v32, %v5416_v51  ;;  %v5422_v50 = vmul.f32 %v5321_v11, %v5297_v4  ;;  %v1335_v36 = vsel %vm1250_vm15, %v1334_v45, %v5137_v53 }
 0x210   : > { %v3483_v16 = vadd.s32 4294967169, %v1561_v18  ;;  %v807_v25 = vadd.f32 %v806_v42, %v4825_v61  ;;  %v5430_v26 = vmul.f32 %v5404_v33, %v5297_v4  ;;  %v1241_v0 = vxor.u32 2147483648, %v4012_v38 }
 0x211   : > { %6670 = vst [vmem:[#allocation32_spill] sm:$0xff] %v5422_v50  ;;  %v1244_v44 = vxor.u32 2147483648, %v4010_v5  ;;  %vm3478_vm12 = vcmp.lt.s32.totalorder %v3477_v13, 0  ;;  %vm1237_vm13 = vweird.f32 %v4851_v20  ;;  %v1493_v61 = vsel %vm1487_vm7, %v1490_v31, %v1492_v56 }
 0x212   : > { %6671 = vst [vmem:[#allocation33_spill] sm:$0xff] %v5430_v26  ;;  %v5437_v8 = vsel %vm3478_vm12, 0, %v3477_v13  ;;  %v1780_v45 = vrot.slane %v5370_v17, 5  ;;  %v1337_v53 = vsel %vm5282_vm1, 0, %v1335_v36  ;;  %vm1511_vm14 = vc.u32 %v5410_v40, %v5416_v51 }
 0x213   : > { %v5449_v15 = vmul.f32 %v5432_v55, %v5297_v4  ;;  %v1512_v18 = vadd.s32 1, %v5417_v7  ;;  %v1567_v13 = vadd.s32 1, %v3483_v16  ;;  %v923_v1 = vmax.f32 %v807_v25, 0.0 }
 0x214   : > { %v1242_v47 = vsel %vm1240_vm9, %v4010_v5, %v1241_v0  ;;  %v1245_v31 = vsel %vm1243_vm10, %v1244_v44, %v4012_v38  ;;  %v1427_v28 = vsub.s32 4294967266, %v5437_v8  ;;  %v1509_v56 = vmul.u32 %v5383_v6, %v1493_v61 }
 0x215   : > { %6672 = vst [vmem:[#allocation34_spill] sm:$0xff] %v5449_v15  ;;  %v5459_v42 = vand.u32 3, %v1337_v53  ;;  %v1513_v32 = vsel %vm1511_vm14, %v1512_v18, %v5417_v7  ;;  %vm1568_vm15 = vcmp.gt.s32.totalorder %v1567_v13, 0  ;;  %v5462_v35 = vpop.eup %4013  ;;  %v5467_v25 = vsel %vm1795_vm6, %v1780_v45, 0.0  ;;  %v4059_v7 = vld [vmem:[%s6556_s3] ss:$0 sm:$0xff] }
 0x216   : > { %v1514_v38 = vadd.s32 %v1513_v32, %v1509_v56  ;;  %v1246_v6 = vsel %vm1239_vm11, %v1242_v47, %v1245_v31  ;;  %v1569_v0 = vsel %vm1568_vm15, %v1567_v13, 0  ;;  %v6603_v44 = vand.u32 2147483647, %v5353_v43 }
 0x217   : > { %v5475_v61 = vadd.f32 %v4059_v7, %v923_v1  ;;  %v5479_v18 = vsel %vm1795_vm6, 0.0, %v1780_v45  ;;  %v1428_v16 = vadd.s32 127, %v1427_v28  ;;  %v5485_v27 = vmul.f32 %v5290_v37, %v5467_v25 }
 0x218   : > { %v1515_v5 = vadd.s32 536870912, %v1514_v38  ;;  %v5489_v13 = vmul.f32 %v5308_v41, %v5467_v25  ;;  %vm1346_vm0 = vcmp.eq.s32.totalorder %v5459_v42, 2  ;;  %v1571_v1 = vand.u32 31, %v1569_v0 }
 0x219   : > { %v5481_v32 = vpop.eup %4015  ;;  %v5494_v47 = vsel %vm1237_vm13, nan, %v1246_v6  ;;  %v1407_v45 = vadd.s32 %v5260_v57, %v5241_v34  ;;  %v1423_v31 = vsub.s32 32, %v5437_v8  ;;  %v1347_v56 = vxor.u32 2147483648, %v5462_v35 }
 0x21a   : > { %v5499_v28 = vshrl.u32 %v1515_v5, 30  ;;  %v1572_v7 = vsub.s32 32, %v1571_v1  ;;  %v1564_v53 = vand.u32 8388607, %v6603_v44  ;;  %v1663_v36 = vand.u32 2139095040, %v5475_v61 }
 0x21b   : > { %v1429_v20 = vshll.u32 %v1428_v16, 23  ;;  %v5507_v58 = vshrl.u32 %v1569_v0, 5  ;;  %v6673_v34 = vmov 920167782   ;;  %v6674_v54 = vmov 1326507024  }
 0x21c   : > { %v1517_v6 = vshll.u32 %v5499_v28, 30  ;;  %v1584_v57 = vshrl.u32 %v6673_v34, %v1572_v7  ;;  %v1586_v5 = vshll.u32 %v6673_v34, %v1571_v1  ;;  %v1587_v62 = vshrl.u32 %v6674_v54, %v1572_v7 }
 0x21d   : > { %v6675_v39 = vmov 2475754826   ;;  %v1425_v4 = vshrl.u32 %v1407_v45, %v1423_v31  ;;  %v1510_v44 = vadd.s32 %v5416_v51, %v5410_v40  ;;  %v1583_v16 = vshll.u32 %v6676_v59, %v1571_v1 }
 0x21e   : > { %v1575_v26 = vshrl.u32 %v6675_v39, %v1572_v7  ;;  %v5515_v15 = vsub.s32 %v1514_v38, %v1517_v6  ;;  %v5521_v0 = vsel %vm1346_vm0, %v1347_v56, %v5481_v32  ;;  %v1588_v3 = vor.u32 %v1587_v62, %v1586_v5 }
 0x21f   : > { %v6677_v50 = vmov 683565275   ;;  %v1664_v60 = vshrl.u32 %v1663_v36, 23  ;;  %v1424_v23 = vshll.u32 %v5365_v63, %v5437_v8  ;;  %v1585_v31 = vor.u32 %v1584_v57, %v1583_v16 }
 0x220   : > { %v1574_v30 = vshll.u32 %v6677_v50, %v1571_v1  ;;  %v1520_v45 = vsub.s32 0, %v5515_v15  ;;  %v6678_v40 = vmov 2131351028   ;;  %v1430_v38 = vor.u32 4788187, %v1429_v20 }
 0x221   : > { %v1578_v51 = vshrl.u32 %v6678_v40, %v1572_v7  ;;  %vm1592_vm1 = vcmp.lt.s32.totalorder %v5507_v58, 4  ;;  %v1577_v24 = vshll.u32 %v6675_v39, %v1571_v1  ;;  %vm1343_vm2 = vcmp.eq.s32.totalorder %v5459_v42, 0 }
 0x222   : > { %v1576_v6 = vor.u32 %v1575_v26, %v1574_v30  ;;  %v1426_v62 = vor.u32 %v1425_v4, %v1424_v23  ;;  %v3480_v56 = vmin.u32 %v1520_v45, %v5515_v15  ;;  %v1602_v36 = vsel %vm1592_vm1, %v1588_v3, 1326507024 }
 0x223   : > { %v1565_v63 = vor.u32 8388608, %v1564_v53  ;;  %v1579_v8 = vor.u32 %v1578_v51, %v1577_v24  ;;  %v1580_v57 = vshll.u32 %v6678_v40, %v1571_v1  ;;  %v1581_v5 = vshrl.u32 %v6676_v59, %v1572_v7 }
 0x224   : > { %v3487_v20 = vadd.s32 4294967169, %v1664_v60  ;;  %v1522_v16 = vclz %v3480_v56  ;;  %v1598_v30 = vsel %vm1592_vm1, %v1585_v31, 920167782  ;;  %vm1589_vm3 = vcmp.lt.s32.totalorder %v5507_v58, 1 }
 0x225   : > { %vm1591_vm4 = vcmp.lt.s32.totalorder %v5507_v58, 3  ;;  %v1431_v4 = vand.u32 2147483647, %v1430_v38  ;;  %v1582_v23 = vor.u32 %v1581_v5, %v1580_v57  ;;  %v1597_v3 = vsel %vm1589_vm3, %v1576_v6, %v1579_v8 }
 0x226   : > { %v1603_v24 = vsel %vm1591_vm4, %v1585_v31, %v1602_v36  ;;  %v1433_v26 = vcvt.s32.f32 %v1426_v62  ;;  %v3481_v53 = vadd.s32 4294967294, %v1522_v16  ;;  %vm1590_vm5 = vcmp.lt.s32.totalorder %v5507_v58, 2 }
 0x227   : > { %v1605_v60 = vshll.u32 %v1565_v63, 8  ;;  %v1594_v1 = vsel %vm1592_vm1, %v1582_v23, 2102212464  ;;  %v1599_v45 = vsel %vm1591_vm4, %v1582_v23, %v1598_v30  ;;  %v1601_v51 = vsel %vm1589_vm3, %v1579_v8, %v1582_v23 }
 0x228   : > { %v1670_v38 = vadd.s32 1, %v3487_v20  ;;  %vm1353_vm7 = vcmp.lt.s32.totalorder %v5115_v22, 0  ;;  %vm3482_vm8 = vcmp.lt.s32.totalorder %v3481_v53, 0  ;;  %v1573_v31 = vshrl.u32 %v6677_v50, %v1572_v7 }
 0x229   : > { %v1600_v62 = vsel %vm1590_vm5, %v1597_v3, %v1599_v45  ;;  %v1604_v56 = vsel %vm1590_vm5, %v1601_v51, %v1603_v24  ;;  %v1434_v36 = vmul.f32 %v1433_v26, %v1431_v4  ;;  %v1525_v63 = vsel %vm3482_vm8, 0, %v3481_v53 }
 0x22a   : > { %v5557_v57 = vmul.u32.u64.low %v1605_v60, %v1604_v56  ;;  %v5558_v5 = vmul.u32.u64.high %v1605_v60, %v1604_v56, %v5557_v57  ;;  %vm1340_vm9 = vweird.f32 %v4961_v14  ;;  %v1526_v16 = vsub.s32 32, %v1525_v63 }
 0x22b   : > { %v1530_v20 = vsub.s32 4294967266, %v1525_v63  ;;  %v1593_v30 = vsel %vm1589_vm3, %v1573_v31, %v1576_v6  ;;  %v1595_v7 = vsel %vm1591_vm4, %v1579_v8, %v1594_v1  ;;  %v6679_v23 = vxor.u32 2147483648, %v5481_v32 }
 0x22c   : > { %v5570_v3 = vmul.u32.u64.low %v1605_v60, %v1600_v62  ;;  %v5571_v24 = vmul.u32.u64.high %v1605_v60, %v1600_v62, %v5570_v3  ;;  %vm1671_vm10 = vcmp.gt.s32.totalorder %v1670_v38, 0  ;;  %v6680_v26 = vand.u32 2147483647, %v5115_v22 }
 0x22d   : > { %v1345_v4 = vsel %vm1343_vm2, %v5462_v35, %v6679_v23  ;;  %v1527_v6 = vshll.u32 %v5515_v15, %v1525_v63  ;;  %v1528_v8 = vshrl.u32 %v1510_v44, %v1526_v16  ;;  %v1531_v1 = vadd.s32 127, %v1530_v20 }
 0x22e   : > { %vm5576_vm11 = vcmp.le.f32.partialorder %v6680_v26, 0.7853982  ;;  %v1672_v32 = vsel %vm1671_vm10, %v1670_v38, 0  ;;  %v1435_v45 = vxor.u32 2147483648, %v1434_v36  ;;  %v1596_v35 = vsel %vm1590_vm5, %v1593_v30, %v1595_v7 }
 0x22f   : > { %v1674_v51 = vand.u32 31, %v1672_v32  ;;  %v1660_v31 = vand.u32 2147483647, %v5475_v61  ;;  %vm1342_vm12 = vcmp.lt.s32.totalorder %v5459_v42, 2  ;;  %v1529_v62 = vor.u32 %v1528_v8, %v1527_v6 }
 0x230   : > { %v1532_v56 = vshll.u32 %v1531_v1, 23  ;;  %vm1614_vm13 = vc.u32 %v5558_v5, %v5570_v3  ;;  %v5589_v15 = vmul.f32 %v5494_v47, %v5155_v9  ;;  %v1437_v44 = vsub.s32 4, %v5350_v48 }
 0x231   : > { %v1615_v38 = vadd.s32 1, %v5571_v24  ;;  %v1675_v58 = vsub.s32 32, %v1674_v51  ;;  %v1880_v63 = vrot.slane %v5485_v27, 1  ;;  %v1349_v57 = vsel %vm1342_vm12, %v1345_v4, %v5521_v0 }
 0x232   : > { %v1533_v16 = vor.u32 4788187, %v1532_v56  ;;  %v1612_v42 = vmul.u32 %v1605_v60, %v1596_v35  ;;  %v1436_v20 = vsel %vm1353_vm7, %v1435_v45, %v1434_v36  ;;  %v1667_v9 = vand.u32 8388607, %v1660_v31 }
 0x233   : > { %v1616_v30 = vsel %vm1614_vm13, %v1615_v38, %v5571_v24  ;;  %v1687_v7 = vshrl.u32 %v6673_v34, %v1675_v58  ;;  %vm1456_vm14 = vcmp.lt.s32.totalorder %v5192_v10, 0  ;;  %v1536_v23 = vcvt.s32.f32 %v1529_v62 }
 0x234   : > { %v1534_v47 = vand.u32 2147483647, %v1533_v16  ;;  %v1617_v26 = vadd.s32 %v1616_v30, %v1612_v42  ;;  %v1690_v6 = vshrl.u32 %v6674_v54, %v1675_v58  ;;  %v6610_v0 = vrot.slane %v5589_v15, 5 }
 0x235   : > { %v1350_v60 = vsel %vm1340_vm9, nan, %v1349_v57  ;;  %v5609_v36 = vsel %vm1353_vm7, %v1437_v44, %v5350_v48  ;;  %v1686_v4 = vshll.u32 %v6676_v59, %v1674_v51  ;;  %v1689_v1 = vshll.u32 %v6673_v34, %v1674_v51 }
 0x236   : > { %v1537_v24 = vmul.f32 %v1536_v23, %v1534_v47  ;;  %v1618_v8 = vadd.s32 536870912, %v1617_v26  ;;  %v1678_v45 = vshrl.u32 %v6675_v39, %v1675_v58  ;;  %v5617_v54 = vsel %vm5576_vm11, %v5115_v22, %v1436_v20  ;;  %v2519_v23 = vld [vmem:[%s6559_s6 + $0x78] sm:$0xff] }
 0x237   : > { %v6683_v14 = vand.u32 2147483647, %v5192_v10  ;;  %v1673_v48 = vshrl.u32 %v1672_v32, 5  ;;  %v1688_v62 = vor.u32 %v1687_v7, %v1686_v4  ;;  %v1668_v56 = vor.u32 8388608, %v1667_v9  ;;  %3677 = vmatpush3.msra.mxu0 %v2519_v23 }
 0x238   : > { %v5625_v44 = vshrl.u32 %v1618_v8, 30  ;;  %v1691_v38 = vor.u32 %v1690_v6, %v1689_v1  ;;  %v1677_v34 = vshll.u32 %v6677_v50, %v1674_v51  ;;  %v1680_v57 = vshll.u32 %v6675_v39, %v1674_v51  ;;  %v2518_v39 = vld [vmem:[%s6559_s6 + $0x70] sm:$0xff]  ;;  %v2517_v8 = vld [vmem:[%s6559_s6 + $0x68] sm:$0xff] }
 0x239   : > { %vm5621_vm15 = vcmp.le.f32.partialorder %v6683_v14, 0.7853982  ;;  %v1538_v16 = vxor.u32 2147483648, %v1537_v24  ;;  %v1681_v42 = vshrl.u32 %v6678_v40, %v1675_v58  ;;  %v1683_v20 = vshll.u32 %v6678_v40, %v1674_v51 }
 0x23a   : > { %v1684_v30 = vshrl.u32 %v6676_v59, %v1675_v58  ;;  %v5633_v47 = vmul.f32 %v1350_v60, %v5176_v52  ;;  %v1540_v32 = vsub.s32 4, %v5499_v28  ;;  %v1620_v7 = vshll.u32 %v5625_v44, 30 }
 0x23b   : > { %v1679_v9 = vor.u32 %v1678_v45, %v1677_v34  ;;  %4017 = vcosq.f32 %v5617_v54  ;;  %vm1695_vm0 = vcmp.lt.s32.totalorder %v1673_v48, 4  ;;  %v1682_v59 = vor.u32 %v1681_v42, %v1680_v57 }
 0x23c   : > { %v1685_v40 = vor.u32 %v1684_v30, %v1683_v20  ;;  %v5644_v52 = vsub.s32 %v1617_v26, %v1620_v7  ;;  %v1701_v51 = vsel %vm1695_vm0, %v1688_v62, 920167782  ;;  %v1705_v6 = vsel %vm1695_vm0, %v1691_v38, 1326507024 }
 0x23d   : > { %v1676_v60 = vshrl.u32 %v6677_v50, %v1675_v58  ;;  %v6686_v4 = vmov 0.0   ;;  %v1539_v1 = vsel %vm1456_vm14, %v1538_v16, %v1537_v24  ;;  %vm1692_vm1 = vcmp.lt.s32.totalorder %v1673_v48, 1 }
 0x23e   : > { %3678 = vmatprep.subr.mxu0 %v6686_v4  ;;  %vm1694_vm2 = vcmp.lt.s32.totalorder %v1673_v48, 3  ;;  %v1708_v45 = vshll.u32 %v1668_v56, 8  ;;  %v1623_v26 = vsub.s32 0, %v5644_v52  ;;  %v1697_v38 = vsel %vm1695_vm0, %v1685_v40, 2102212464 }
 0x23f   : > { %3679 = vmatpush3.msra.mxu0 %v2518_v39  ;;  %v1696_v14 = vsel %vm1692_vm1, %v1676_v60, %v1679_v9  ;;  %v1700_v34 = vsel %vm1692_vm1, %v1679_v9, %v1682_v59  ;;  %v1698_v50 = vsel %vm1694_vm2, %v1682_v59, %v1697_v38  ;;  %v1702_v58 = vsel %vm1694_vm2, %v1685_v40, %v1701_v51  ;;  %v2516_v9 = vld [vmem:[%s6559_s6 + $0x60] sm:$0xff] }
 0x240   : > { %3680 = vmatprep.subr.mxu0 %v6686_v4  ;;  %v1704_v57 = vsel %vm1692_vm1, %v1682_v59, %v1685_v40  ;;  %v1706_v42 = vsel %vm1694_vm2, %v1688_v62, %v1705_v6  ;;  %v1542_v24 = vsel %vm5621_vm15, %v5192_v10, %v1539_v1  ;;  %v1613_v56 = vadd.s32 %v5570_v3, %v5558_v5 }
 0x241   : > { %3681 = vmatpush3.msra.mxu0 %v2517_v8  ;;  %v3484_v16 = vmin.u32 %v1623_v26, %v5644_v52  ;;  %vm1693_vm3 = vcmp.lt.s32.totalorder %v1673_v48, 2  ;;  %v1820_v7 = vmul.f32 %v5264_v49, %v5479_v18  ;;  %v1845_v62 = vmul.f32 %v5290_v37, %v5479_v18 }
 0x242   : > { %3682 = vmatprep.subr.mxu0 %v6686_v4  ;;  %v1703_v20 = vsel %vm1693_vm3, %v1700_v34, %v1702_v58  ;;  %v1707_v30 = vsel %vm1693_vm3, %v1704_v57, %v1706_v42  ;;  %v1699_v39 = vsel %vm1693_vm3, %v1696_v14, %v1698_v50  ;;  %4019 = vcosq.f32 %v1542_v24 }
 0x243   : > { %v1625_v23 = vclz %v3484_v16  ;;  %v5672_v5 = vmul.u32.u64.low %v1708_v45, %v1707_v30  ;;  %v5673_v3 = vmul.u32.u64.high %v1708_v45, %v1707_v30, %v5672_v5  ;;  %3683 = vmatpush3.msra.mxu0 %v2516_v9  ;;  %v1879_v40 = vrot.slane %v1845_v62, 1 }
 0x244   : > { %v5675_v48 = vmul.u32.u64.low %v1708_v45, %v1703_v20  ;;  %v5676_v59 = vmul.u32.u64.high %v1708_v45, %v1703_v20, %v5675_v48  ;;  %3684 = vmatprep.subr.mxu0 %v6686_v4  ;;  %4021 = vsinq.f32 %v1542_v24  ;;  %vm1875_vm4 = vcmask 1046528  }
 0x245   : > { %v3485_v49 = vadd.s32 4294967294, %v1625_v23  ;;  %v1926_v51 = vmul.f32 %v5308_v41, %v5479_v18  ;;  %v1715_v6 = vmul.u32 %v1708_v45, %v1699_v39  ;;  %v1881_v60 = vsel %vm1875_vm4, %v1879_v40, %v1880_v63 }
 0x246   : > { %v2007_v8 = vmul.f32 %v5321_v11, %v5479_v18  ;;  %v2008_v1 = vmul.f32 %v5321_v11, %v5467_v25  ;;  %vm1717_vm7 = vc.u32 %v5673_v3, %v5675_v48  ;;  %vm1956_vm8 = vcmask 1045504  }
 0x247   : > { %vm3486_vm5 = vcmp.lt.s32.totalorder %v3485_v49, 0  ;;  %v1961_v26 = vrot.slane %v5489_v13, 2  ;;  %v1718_v45 = vadd.s32 1, %v5676_v59  ;;  %v1909_v38 = vadd.f32 %v1881_v60, %v1820_v7 }
 0x248   : > { %v1628_v14 = vsel %vm3486_vm5, 0, %v3485_v49  ;;  %v1960_v27 = vrot.slane %v1926_v51, 2  ;;  %v5693_v34 = vpop.eup %4017  ;;  %v2041_v58 = vrot.slane %v2007_v8, 3  ;;  %v2042_v57 = vrot.slane %v2008_v1, 3 }
 0x249   : > { %v1629_v63 = vsub.s32 32, %v1628_v14  ;;  %v1633_v50 = vsub.s32 4294967266, %v1628_v14  ;;  %v1630_v42 = vshll.u32 %v5644_v52, %v1628_v14  ;;  %v1719_v24 = vsel %vm1717_vm7, %v1718_v45, %v5676_v59 }
 0x24a   : > { %v2088_v16 = vmul.f32 %v5404_v33, %v5479_v18  ;;  %v2089_v13 = vmul.f32 %v5404_v33, %v5467_v25  ;;  %v1720_v7 = vadd.s32 %v1719_v24, %v1715_v6  ;;  %v1962_v62 = vsel %vm1956_vm8, %v1960_v27, %v1961_v26 }
 0x24b   : > { %v1631_v20 = vshrl.u32 %v1613_v56, %v1629_v63  ;;  %v1634_v30 = vadd.s32 127, %v1633_v50  ;;  %v5705_v9 = vsel %vm1795_vm6, 0.0, %v6610_v0  ;;  %v5709_v52 = vadd.f32 %v5222_v19, %v5028_v21 }
 0x24c   : > { %v1990_v23 = vadd.f32 %v1962_v62, %v1909_v38  ;;  %vm2037_vm9 = vcmask 1044480   ;;  %v1721_v59 = vadd.s32 536870912, %v1720_v7  ;;  %v1440_v40 = vsel %vm5576_vm11, 0, %v5609_v36 }
 0x24d   : > { %v1632_v39 = vor.u32 %v1631_v20, %v1630_v42  ;;  %v1635_v5 = vshll.u32 %v1634_v30, 23  ;;  %v2043_v56 = vsel %vm2037_vm9, %v2041_v58, %v2042_v57  ;;  %v2122_v51 = vrot.slane %v2088_v16, 4 }
 0x24e   : > { %v2071_v49 = vadd.f32 %v2043_v56, %v1990_v23  ;;  %v2123_v6 = vrot.slane %v2089_v13, 4  ;;  %v6611_v60 = vrot.slane %v5633_v47, 5  ;;  %v1541_v19 = vsel %vm1456_vm14, %v1540_v32, %v5499_v28  ;;  %v5732_v32 = vld [vmem:[#allocation5 + $0x6] ss:$0 sm:$0xff] }
 0x24f   : > { %v1636_v8 = vor.u32 4788187, %v1635_v5  ;;  %v5721_v1 = vshrl.u32 %v1721_v59, 30  ;;  %v1643_v26 = vsub.s32 4, %v5625_v44  ;;  %vm2118_vm10 = vcmask 1043456   ;;  %v5728_v14 = vpop.eup %4019 }
 0x250   : > { %v2169_v53 = vmul.f32 %v5432_v55, %v5479_v18  ;;  %v2170_v36 = vmul.f32 %v5432_v55, %v5467_v25  ;;  %v1639_v38 = vcvt.s32.f32 %v1632_v39  ;;  %v2124_v28 = vsel %vm2118_vm10, %v2122_v51, %v2123_v6 }
 0x251   : > { %v1637_v45 = vand.u32 2147483647, %v1636_v8  ;;  %v1723_v27 = vshll.u32 %v5721_v1, 30  ;;  %v5734_v63 = vpop.eup %4021  ;;  %v2152_v50 = vadd.f32 %v2124_v28, %v2071_v49  ;;  %v2249_v42 = vmul.f32 %v5732_v32, %v5479_v18  ;;  %v5780_v8 = vld [vmem:[#allocation7 + $0x2] ss:$0 sm:$0xff] }
 0x252   : > { %v2202_v58 = vrot.slane %v2169_v53, 5  ;;  %v2203_v57 = vrot.slane %v2170_v36, 5  ;;  %v5738_v24 = vand.u32 3, %v1440_v40  ;;  %vm1559_vm11 = vcmp.lt.s32.totalorder %v5353_v43, 0 }
 0x253   : > { %v1640_v16 = vmul.f32 %v1639_v38, %v1637_v45  ;;  %v5741_v13 = vsub.s32 %v1720_v7, %v1723_v27  ;;  %4023 = vsinq.f32 %v5617_v54  ;;  %v1543_v20 = vsel %vm5621_vm15, 0, %v1541_v19 }
 0x254   : > { %v6687_v30 = vand.u32 2147483647, %v5353_v43  ;;  %v2250_v18 = vmul.f32 %v5732_v32, %v5467_v25  ;;  %v5757_v7 = vsel %vm1559_vm11, %v1643_v26, %v5625_v44  ;;  %v2204_v35 = vsel %vm1795_vm6, %v2202_v58, %v2203_v57  ;;  %v5782_v26 = vld [vmem:[#allocation7 + $0x1] ss:$0 sm:$0xff] }
 0x255   : > { %v1641_v23 = vxor.u32 2147483648, %v1640_v16  ;;  %v1726_v54 = vsub.s32 0, %v5741_v13  ;;  %v5764_v39 = vsel %vm1795_vm6, 0.0, %v6611_v60  ;;  %v2232_v5 = vadd.f32 %v2204_v35, %v2152_v50  ;;  %v6694_v35 = vld [vmem:[#allocation28_spill] sm:$0xff] }
 0x256   : > { %vm5748_vm12 = vcmp.le.f32.partialorder %v6687_v30, 0.7853982  ;;  %v2283_v59 = vrot.slane %v2249_v42, 6  ;;  %v2284_v56 = vrot.slane %v2250_v18, 6  ;;  %v5767_v40 = vand.u32 3, %v1543_v20 }
 0x257   : > { %v1642_v44 = vsel %vm1559_vm11, %v1641_v23, %v1640_v16  ;;  %v3488_v49 = vmin.u32 %v1726_v54, %v5741_v13  ;;  %v1716_v19 = vadd.s32 %v5675_v48, %v5673_v3  ;;  %vm2279_vm13 = vcmask 1041408   ;;  %v5793_v3 = vld [vmem:[#allocation7 + $0x3] ss:$0 sm:$0xff]  ;;  %v5799_v42 = vld [vmem:[#allocation7 + $0x4] ss:$0 sm:$0xff] }
 0x258   : > { %v1645_v51 = vsel %vm5748_vm12, %v5353_v43, %v1642_v44  ;;  %v2285_v38 = vsel %vm2279_vm13, %v2283_v59, %v2284_v56  ;;  %v5788_v28 = vmul.f32 0.0, %v5250_v12  ;;  %v5791_v50 = vmul.f32 0.0, %v5782_v26  ;;  %v6692_v23 = vld [vmem:[#allocation29_spill] sm:$0xff]  ;;  %v6696_v56 = vld [vmem:[#allocation26_spill] sm:$0xff] }
 0x259   : > { %v1728_v45 = vclz %v3488_v49  ;;  %4025 = vcosq.f32 %v1645_v51  ;;  %v2313_v27 = vadd.f32 %v2285_v38, %v2232_v5  ;;  %v2373_v58 = vmul.f32 %v5780_v8, %v5102_v2  ;;  %v6697_v49 = vld [vmem:[#allocation24_spill] sm:$0xff] }
 0x25a   : > { %4027 = vsinq.f32 %v1645_v51  ;;  %v2397_v57 = vmul.f32 %v5793_v3, %v5370_v17  ;;  %vm1552_vm14 = vcmp.eq.s32.totalorder %v5767_v40, 2  ;;  %v2421_v16 = vmul.f32 %v5799_v42, %v5589_v15 }
 0x25b   : > { %v3489_v48 = vadd.s32 4294967294, %v1728_v45  ;;  %v2334_v12 = vadd.f32 %v5788_v28, %v2313_v27  ;;  %v6690_v20 = vrot.slane %v5327_v29, 1  ;;  %v6691_v30 = vrot.slane %v5316_v46, 1  ;;  %v2515_v46 = vld [vmem:[%s6559_s6 + $0x58] sm:$0xff]  ;;  %v2514_v45 = vld [vmem:[%s6559_s6 + $0x50] sm:$0xff] }
 0x25c   : > { %v6693_v54 = vrot.slane %v6692_v23, 2  ;;  %v6695_v5 = vrot.slane %v6694_v35, 2  ;;  %vm1549_vm15 = vcmp.eq.s32.totalorder %v5767_v40, 0  ;;  %v2086_v51 = vmul.f32 %v5404_v33, %v6697_v49  ;;  %3685 = vmatpush3.msra.mxu0 %v2515_v46 }
 0x25d   : > { %v1878_v18 = vsel %vm1875_vm4, %v6691_v30, %v6690_v20  ;;  %vm3490_vm0 = vcmp.lt.s32.totalorder %v3489_v48, 0  ;;  %v2167_v29 = vmul.f32 %v5432_v55, %v6697_v49  ;;  %vm1662_vm1 = vcmp.lt.s32.totalorder %v5475_v61, 0  ;;  %v6698_v20 = vld [vmem:[#allocation32_spill] sm:$0xff]  ;;  %3686 = vmatprep.subr.mxu0 %v6686_v4 }
 0x25e   : > { %v1959_v59 = vsel %vm1956_vm8, %v6695_v5, %v6693_v54  ;;  %v1908_v44 = vadd.f32 %v1878_v18, %v6696_v56  ;;  %v1731_v38 = vsel %vm3490_vm0, 0, %v3489_v48  ;;  %v2357_v27 = vadd.f32 %v5791_v50, %v2334_v12  ;;  %v6700_v18 = vld [vmem:[#allocation30_spill] sm:$0xff]  ;;  %v2513_v12 = vld [vmem:[%s6559_s6 + $0x48] sm:$0xff]  ;;  %3687 = vmatpush3.msra.mxu0 %v2514_v45 }
 0x25f   : > { %v6699_v30 = vrot.slane %v6698_v20, 3  ;;  %v6701_v23 = vrot.slane %v6700_v18, 3  ;;  %v2247_v35 = vmul.f32 %v5732_v32, %v6697_v49  ;;  %vm1446_vm2 = vcmp.eq.s32.totalorder %v5738_v24, 0  ;;  %v6702_v48 = vld [vmem:[#allocation34_spill] sm:$0xff]  ;;  %v6703_v49 = vld [vmem:[#allocation25_spill] sm:$0xff]  ;;  %3688 = vmatprep.subr.mxu0 %v6686_v4 }
 0x260   : > { %vm1449_vm3 = vcmp.eq.s32.totalorder %v5738_v24, 2  ;;  %v1732_v5 = vsub.s32 32, %v1731_v38  ;;  %v1736_v56 = vsub.s32 4294967266, %v1731_v38  ;;  %v1989_v0 = vadd.f32 %v1959_v59, %v1908_v44  ;;  %v6706_v45 = vld [vmem:[#allocation33_spill] sm:$0xff]  ;;  %3689 = vmatpush3.msra.mxu0 %v2513_v12 }
 0x261   : > { %v2040_v54 = vsel %vm2037_vm9, %v6701_v23, %v6699_v30  ;;  %v2200_v25 = vrot.slane %v6702_v48, 5  ;;  %v2381_v20 = vadd.f32 %v2373_v58, %v2357_v27  ;;  %v2119_v30 = vrot.slane %v2086_v51, 4  ;;  %v4024_v23 = vpop.eup %4023  ;;  %v2512_v51 = vld [vmem:[%s6559_s6 + $0x40] sm:$0xff]  ;;  %3690 = vmatprep.subr.mxu0 %v6686_v4  ;;  %v2505_v59 = vld [vmem:[%s6559_s6 + $0x8] sm:$0xff] }
 0x262   : > { %v2199_v18 = vrot.slane %v2167_v29, 5  ;;  %v2248_v46 = vmul.f32 %v5732_v32, %v6703_v49  ;;  %vm1548_vm5 = vcmp.lt.s32.totalorder %v5767_v40, 2  ;;  %vm5848_vm7 = vcmp.le.f32.partialorder %v1660_v31, 0.7853982  ;;  %3691 = vmatpush3.msra.mxu0 %v2512_v51 }
 0x263   : > { %v1733_v44 = vshll.u32 %v5741_v13, %v1731_v38  ;;  %v1734_v48 = vshrl.u32 %v1716_v19, %v1732_v5  ;;  %v1737_v60 = vadd.s32 127, %v1736_v56  ;;  %v2070_v58 = vadd.f32 %v2040_v54, %v1989_v0  ;;  %v5861_v19 = vld [vmem:[#allocation7 + $0x5] ss:$0 sm:$0xff]  ;;  %3692 = vmatprep.subr.mxu0 %v6686_v4 }
 0x264   : > { %v2405_v29 = vadd.f32 %v2397_v57, %v2381_v20  ;;  %v6707_v27 = vrot.slane %v6706_v45, 4  ;;  %v2280_v31 = vrot.slane %v2247_v35, 6  ;;  %v2281_v53 = vrot.slane %v2248_v46, 6  ;;  %v2511_v57 = vld [vmem:[%s6559_s6 + $0x38] sm:$0xff] }
 0x265   : > { %v1735_v6 = vor.u32 %v1734_v48, %v1733_v44  ;;  %v1738_v36 = vshll.u32 %v1737_v60, 23  ;;  %v1746_v13 = vsub.s32 4, %v5721_v1  ;;  %v1447_v38 = vxor.u32 2147483648, %v4024_v23  ;;  %3693 = vmatpush3.msra.mxu0 %v2511_v57 }
 0x266   : > { %v2121_v49 = vsel %vm2118_vm10, %v2119_v30, %v6707_v27  ;;  %v2429_v54 = vadd.f32 %v2421_v16, %v2405_v29  ;;  %v2445_v35 = vmul.f32 %v5861_v19, %v5633_v47  ;;  %v2201_v5 = vsel %vm1795_vm6, %v2199_v18, %v2200_v25  ;;  %v2510_v25 = vld [vmem:[%s6559_s6 + $0x30] sm:$0xff]  ;;  %v5898_v48 = vpop.eup %4025  ;;  %3694 = vmatprep.subr.mxu0 %v6686_v4 }
 0x267   : > { %v2151_v0 = vadd.f32 %v2121_v49, %v2070_v58  ;;  %v6708_v60 = vxor.u32 2147483648, %v5728_v14  ;;  %v6709_v12 = vsel %vm5748_vm12, 0, %v5757_v7  ;;  %v1739_v30 = vor.u32 4788187, %v1738_v36  ;;  %v5909_v29 = vpop.eup %4027  ;;  %3695 = vmatpush3.msra.mxu0 %v2510_v25 }
 0x268   : > { %v5879_v20 = vand.u32 3, %v6709_v12  ;;  %v6710_v18 = vxor.u32 2147483648, %v5734_v63  ;;  %v5890_v44 = vadd.f32 %v2445_v35, %v2429_v54  ;;  %v2282_v62 = vsel %vm2279_vm13, %v2280_v31, %v2281_v53  ;;  %v2509_v53 = vld [vmem:[%s6559_s6 + $0x28] sm:$0xff]  ;;  %3696 = vmatprep.subr.mxu0 %v6686_v4 }
 0x269   : > { %v1554_v56 = vsel %vm1552_vm14, %v6708_v60, %v5734_v63  ;;  %v2231_v16 = vadd.f32 %v2201_v5, %v2151_v0  ;;  %v6711_v7 = vrot.slane %v5633_v47, 5  ;;  %v1740_v58 = vand.u32 2147483647, %v1739_v30  ;;  %3697 = vmatpush3.msra.mxu0 %v2509_v53  ;;  %v5943_v60 = vld [vmem:[#allocation5] ss:$0 sm:$0xff] }
 0x26a   : > { %v1551_v46 = vsel %vm1549_vm15, %v5728_v14, %v6710_v18  ;;  %v1742_v51 = vcvt.s32.f32 %v1735_v6  ;;  %v5903_v63 = vsel %vm1662_vm1, %v1746_v13, %v5721_v1  ;;  %v5914_v45 = vsel %vm1446_vm2, %v5693_v34, %v1447_v38  ;;  %3698 = vmatprep.subr.mxu0 %v6686_v4 }
 0x26b   : > { %v5896_v36 = vsel %vm1795_vm6, %v6711_v7, 0.0  ;;  %v2312_v14 = vadd.f32 %v2282_v62, %v2231_v16  ;;  %v6712_v6 = vxor.u32 2147483648, %v5693_v34  ;;  %v1849_v27 = vmul.f32 %v5290_v37, %v5764_v39  ;;  %v2508_v34 = vld [vmem:[%s6559_s6 + $0x20] sm:$0xff]  ;;  %v2506_v7 = vld [vmem:[%s6559_s6 + $0x10] sm:$0xff] }
 0x26c   : > { %v1850_v49 = vmul.f32 %v5290_v37, %v5896_v36  ;;  %v1743_v31 = vmul.f32 %v1742_v51, %v1740_v58  ;;  %v2372_v0 = vmul.f32 0.0, %v5780_v8  ;;  %v1930_v57 = vmul.f32 %v5308_v41, %v5764_v39  ;;  %3699 = vmatpush3.msra.mxu0 %v2508_v34  ;;  %v5972_v51 = vld [vmem:[#allocation5 + $0x3] ss:$0 sm:$0xff] }
 0x26d   : > { %v5920_v1 = vsel %vm1449_vm3, %v6712_v6, %v4024_v23  ;;  %v2333_v13 = vadd.f32 %v5788_v28, %v2312_v14  ;;  %v5936_v23 = vsel %vm1548_vm5, %v1551_v46, %v1554_v56  ;;  %v1749_v37 = vsel %vm5848_vm7, 0, %v5903_v63  ;;  %v2507_v56 = vld [vmem:[%s6559_s6 + $0x18] sm:$0xff]  ;;  %3700 = vmatprep.subr.mxu0 %v6686_v4  ;;  %v5977_v6 = vld [vmem:[#allocation7 + $0x6] ss:$0 sm:$0xff] }
 0x26e   : > { %v1885_v38 = vrot.slane %v1849_v27, 1  ;;  %v1886_v54 = vrot.slane %v1850_v49, 1  ;;  %vm1655_vm11 = vcmp.eq.s32.totalorder %v5879_v20, 2  ;;  %v1744_v35 = vxor.u32 2147483648, %v1743_v31  ;;  %3701 = vmatpush3.msra.mxu0 %v2507_v56 }
 0x26f   : > { %v2356_v5 = vadd.f32 %v5791_v50, %v2333_v13  ;;  %v1822_v12 = vmul.f32 %v5943_v60, %v5764_v39  ;;  %v1931_v40 = vmul.f32 %v5308_v41, %v5896_v36  ;;  %vm1652_vm12 = vcmp.eq.s32.totalorder %v5879_v20, 0  ;;  %3702 = vmatprep.subr.mxu0 %v6686_v4 }
 0x270   : > { %v2396_v30 = vmul.f32 %v5793_v3, %v5102_v2  ;;  %v1887_v50 = vsel %vm1875_vm4, %v1885_v38, %v1886_v54  ;;  %v1966_v16 = vrot.slane %v1930_v57, 2  ;;  %v2011_v25 = vmul.f32 %v5321_v11, %v5764_v39  ;;  %3703 = vmatpush3.msra.mxu0 %v2506_v7 }
 0x271   : > { %v1745_v41 = vsel %vm1662_vm1, %v1744_v35, %v1743_v31  ;;  %v2380_v18 = vadd.f32 %v2372_v0, %v2356_v5  ;;  %v2420_v46 = vmul.f32 %v5799_v42, %v5370_v17  ;;  %v1911_v62 = vadd.f32 %v1887_v50, %v1822_v12  ;;  %3704 = vmatprep.subr.mxu0 %v6686_v4  ;;  %v2504_v35 = vld [vmem:[%s6559_s6] sm:$0xff] }
 0x272   : > { %vm1445_vm14 = vcmp.lt.s32.totalorder %v5738_v24, 2  ;;  %vm1546_vm15 = vweird.f32 %v5192_v10  ;;  %v1748_v11 = vsel %vm5848_vm7, %v5475_v61, %v1745_v41  ;;  %v1967_v58 = vrot.slane %v1931_v40, 2  ;;  %3705 = vmatpush3.msra.mxu0 %v2505_v59  ;;  %v6048_v59 = vld [vmem:[#allocation5 + $0x2] ss:$0 sm:$0xff] }
 0x273   : > { %v2012_v63 = vmul.f32 %v5972_v51, %v5896_v36  ;;  %v2047_v14 = vrot.slane %v2011_v25, 3  ;;  %v1656_v53 = vxor.u32 2147483648, %v5898_v48  ;;  %4029 = vcosq.f32 %v1748_v11  ;;  %3706 = vmatprep.subr.mxu0 %v6686_v4 }
 0x274   : > { %v2404_v27 = vadd.f32 %v2396_v30, %v2380_v18  ;;  %v2092_v49 = vmul.f32 %v5404_v33, %v5764_v39  ;;  %4031 = vsinq.f32 %v1748_v11  ;;  %v1968_v31 = vsel %vm1956_vm8, %v1966_v16, %v1967_v58  ;;  %3707 = vmatpush3.msra.mxu0 %v2504_v35 }
 0x275   : > { %v2048_v13 = vrot.slane %v2012_v63, 3  ;;  %v2093_v0 = vmul.f32 %v5404_v33, %v5896_v36  ;;  %v1653_v57 = vxor.u32 2147483648, %v5909_v29  ;;  %v2444_v38 = vmul.f32 %v5861_v19, %v5589_v15 }
 0x276   : > { %v2428_v34 = vadd.f32 %v2420_v46, %v2404_v27  ;;  %v1992_v54 = vadd.f32 %v1968_v31, %v1911_v62  ;;  %v5995_v5 = vand.u32 3, %v1749_v37  ;;  %v2467_v12 = vmul.f32 %v5977_v6, %v5633_v47 }
 0x277   : > { %v2049_v33 = vsel %vm2037_vm9, %v2047_v14, %v2048_v13  ;;  %v2128_v40 = vrot.slane %v2092_v49, 4  ;;  %v2129_v50 = vrot.slane %v2093_v0, 4  ;;  %v2173_v16 = vmul.f32 %v5432_v55, %v5764_v39 }
 0x278   : > { %v2451_v56 = vadd.f32 %v2444_v38, %v2428_v34  ;;  %v2073_v30 = vadd.f32 %v2049_v33, %v1992_v54  ;;  %v1657_v37 = vsel %vm1655_vm11, %v1656_v53, %v5909_v29  ;;  %v2174_v25 = vmul.f32 %v5432_v55, %v5896_v36  ;;  %v6058_v38 = vld [vmem:[#allocation5 + $0x4] ss:$0 sm:$0xff] }
 0x279   : > { %v2253_v41 = vmul.f32 %v5732_v32, %v5764_v39  ;;  %v2254_v18 = vmul.f32 %v5732_v32, %v5896_v36  ;;  %v1654_v46 = vsel %vm1652_vm12, %v5898_v48, %v1653_v57  ;;  %v2130_v7 = vsel %vm2118_vm10, %v2128_v40, %v2129_v50 }
 0x27a   : > { %v6015_v62 = vadd.f32 %v2467_v12, %v2451_v56  ;;  %v2208_v11 = vrot.slane %v2173_v16, 5  ;;  %v2154_v29 = vadd.f32 %v2130_v7, %v2073_v30  ;;  %v2209_v58 = vrot.slane %v2174_v25, 5  ;;  %v6714_v16 = vld [vmem:[#allocation27_spill] sm:$0xff] }
 0x27b   : > { %v2289_v63 = vrot.slane %v2253_v41, 6  ;;  %v2290_v55 = vrot.slane %v2254_v18, 6  ;;  %v6713_v14 = vrot.slane %v5589_v15, 5  ;;  %v1452_v36 = vsel %vm1445_vm14, %v5914_v45, %v5920_v1  ;;  %v6042_v45 = vld [vmem:[#allocation5 + $0x1] ss:$0 sm:$0xff] }
 0x27c   : > { %v1556_v48 = vsel %vm1546_vm15, nan, %v5936_v23  ;;  %vm1651_vm0 = vcmp.lt.s32.totalorder %v5879_v20, 2  ;;  %vm1755_vm1 = vcmp.eq.s32.totalorder %v5995_v5, 0  ;;  %vm1758_vm2 = vcmp.eq.s32.totalorder %v5995_v5, 2 }
 0x27d   : > { %v6021_v39 = vsel %vm1795_vm6, %v6713_v14, 0.0  ;;  %v1658_v53 = vsel %vm1651_vm0, %v1654_v46, %v1657_v37  ;;  %v2210_v27 = vsel %vm1795_vm6, %v2208_v11, %v2209_v58  ;;  %vm1443_vm3 = vweird.f32 %v5115_v22 }
 0x27e   : > { %vm1754_vm5 = vcmp.lt.s32.totalorder %v5995_v5, 2  ;;  %v2234_v49 = vadd.f32 %v2210_v27, %v2154_v29  ;;  %v2291_v24 = vsel %vm2279_vm13, %v2289_v63, %v2290_v55  ;;  %v2351_v10 = vmul.f32 %v5782_v26, %v5370_v17 }
 0x27f   : > { %v2375_v20 = vmul.f32 %v5780_v8, %v5589_v15  ;;  %vm1649_vm7 = vweird.f32 %v5353_v43  ;;  %v1847_v1 = vmul.f32 %v6042_v45, %v5705_v9  ;;  %v1848_v23 = vmul.f32 %v6042_v45, %v6021_v39  ;;  %v6716_v43 = vld [vmem:[#allocation31_spill] sm:$0xff] }
 0x280   : > { %v1928_v31 = vmul.f32 %v6048_v59, %v5705_v9  ;;  %v1929_v13 = vmul.f32 %v6048_v59, %v6021_v39  ;;  %v2315_v0 = vadd.f32 %v2291_v24, %v2234_v49  ;;  %v2009_v57 = vmul.f32 %v5972_v51, %v5705_v9  ;;  %v4030_v35 = vpop.eup %4029  ;;  %v6074_v24 = vld [vmem:[#allocation5 + $0x5] ss:$0 sm:$0xff] }
 0x281   : > { %v2010_v34 = vmul.f32 %v5972_v51, %v6021_v39  ;;  %v2090_v54 = vmul.f32 %v6058_v38, %v5705_v9  ;;  %vm1752_vm11 = vweird.f32 %v5475_v61  ;;  %v1882_v12 = vrot.slane %v1847_v1, 1  ;;  %v4032_v30 = vpop.eup %4031 }
 0x282   : > { %v1883_v33 = vrot.slane %v1848_v23, 1  ;;  %v1963_v40 = vrot.slane %v1928_v31, 2  ;;  %v1964_v56 = vrot.slane %v1929_v13, 2  ;;  %v1759_v50 = vxor.u32 2147483648, %v4030_v35 }
 0x283   : > { %v2336_v37 = vadd.f32 %v6714_v16, %v2315_v0  ;;  %v1821_v25 = vmul.f32 %v5943_v60, %v5705_v9  ;;  %v2044_v41 = vrot.slane %v2009_v57, 3  ;;  %v1756_v18 = vxor.u32 2147483648, %v4032_v30 }
 0x284   : > { %v1884_v46 = vsel %vm1875_vm4, %v1882_v12, %v1883_v33  ;;  %v2045_v7 = vrot.slane %v2010_v34, 3  ;;  %v2091_v11 = vmul.f32 %v6058_v38, %v6021_v39  ;;  %v1760_v29 = vsel %vm1758_vm2, %v1759_v50, %v4032_v30 }
 0x285   : > { %v2359_v58 = vadd.f32 %v2351_v10, %v2336_v37  ;;  %v1910_v63 = vadd.f32 %v1884_v46, %v1821_v25  ;;  %v1965_v55 = vsel %vm1956_vm8, %v1963_v40, %v1964_v56  ;;  %v1757_v14 = vsel %vm1755_vm1, %v4030_v35, %v1756_v18  ;;  %v808_v35 = vpop.f32.mrf.mxu0 }
 0x286   : > { %v2125_v27 = vrot.slane %v2090_v54, 4  ;;  %v2126_v49 = vrot.slane %v2091_v11, 4  ;;  %v2171_v1 = vmul.f32 %v6074_v24, %v5705_v9  ;;  %v2399_v31 = vmul.f32 %v5793_v3, %v5633_v47 }
 0x287   : > { %v2383_v23 = vadd.f32 %v2375_v20, %v2359_v58  ;;  %v1991_v13 = vadd.f32 %v1965_v55, %v1910_v63  ;;  %v2172_v10 = vmul.f32 %v6074_v24, %v6021_v39  ;;  %v1453_v0 = vsel %vm1443_vm3, nan, %v1452_v36  ;;  %v6715_v36 = vld [vmem:[#allocation23_spill] sm:$0xff] }
 0x288   : > { %v6085_v57 = vmul.f32 %v1556_v48, %v5709_v52  ;;  %v1761_v34 = vsel %vm1754_vm5, %v1757_v14, %v1760_v29  ;;  %v2046_v54 = vsel %vm2037_vm9, %v2044_v41, %v2045_v7  ;;  %v1659_v20 = vsel %vm1649_vm7, nan, %v1658_v53  ;;  %v6717_v41 = vld [vmem:[#allocation21_spill] sm:$0xff]  ;;  %v4066_v14 = vld [vmem:[%s6555_s2] sm:$0x7] }
 0x289   : > { %v6092_v12 = vadd.f32 %v2399_v31, %v2383_v23  ;;  %v2072_v33 = vadd.f32 %v2046_v54, %v1991_v13  ;;  %v2127_v40 = vsel %vm2118_vm10, %v2125_v27, %v2126_v49  ;;  %v2205_v56 = vrot.slane %v2171_v1, 5 }
 0x28a   : > { %v2206_v22 = vrot.slane %v2172_v10, 5  ;;  %v2251_v52 = vmul.f32 %v5732_v32, %v5705_v9  ;;  %v2252_v5 = vmul.f32 %v5732_v32, %v6021_v39  ;;  %v791_v48 = vadd.f32 %v6715_v36, %v5028_v21 }
 0x28b   : > { %v803_v53 = vadd.f32 %v6716_v43, %v5028_v21  ;;  %v1762_v30 = vsel %vm1752_vm11, nan, %v1761_v34  ;;  %v2153_v50 = vadd.f32 %v2127_v40, %v2072_v33  ;;  %v1784_v16 = vrot.slane %v6085_v57, 5 }
 0x28c   : > { %v809_v37 = vadd.f32 %v808_v35, %v5028_v21  ;;  %v6107_v25 = vmul.f32 %v1453_v0, %v791_v48  ;;  %v693_v39 = vsub.s32 2, %v6717_v41  ;;  %v2207_v46 = vsel %vm1795_vm6, %v2205_v56, %v2206_v22 }
 0x28d   : > { %v6109_v9 = vmul.f32 %v1659_v20, %v803_v53  ;;  %v2286_v7 = vrot.slane %v2251_v52, 6  ;;  %v2287_v11 = vrot.slane %v2252_v5, 6  ;;  %v2233_v29 = vadd.f32 %v2207_v46, %v2153_v50 }
 0x28e   : > { %v6112_v18 = vmul.f32 %v1762_v30, %v809_v37  ;;  %v1801_v61 = vsel %vm1795_vm6, 0.0, %v1784_v16  ;;  %v1809_v58 = vsel %vm1795_vm6, %v1784_v16, 0.0  ;;  %v2350_v21 = vmul.f32 %v5782_v26, %v5102_v2 }
 0x28f   : > { %v1783_v63 = vrot.slane %v6107_v25, 5  ;;  %v1785_v55 = vrot.slane %v6109_v9, 5  ;;  %v6126_v27 = vrot.slane %v4066_v14, %v693_v39  ;;  %v2288_v1 = vsel %vm2279_vm13, %v2286_v7, %v2287_v11 }
 0x290   : > { %v1786_v49 = vrot.slane %v6112_v18, 5  ;;  %v2374_v23 = vmul.f32 %v5780_v8, %v5370_v17  ;;  %v2398_v2 = vmul.f32 %v5793_v3, %v5589_v15  ;;  %v2314_v31 = vadd.f32 %v2288_v1, %v2233_v29 }
 0x291   : > { %v1853_v13 = vmul.f32 %v6042_v45, %v1801_v61  ;;  %v1854_v10 = vmul.f32 %v6042_v45, %v1809_v58  ;;  %v1934_v0 = vmul.f32 %v6048_v59, %v1801_v61  ;;  %v1824_v34 = vmul.f32 %v5943_v60, %v1801_v61 }
 0x292   : > { %v1935_v54 = vmul.f32 %v6048_v59, %v1809_v58  ;;  %v2015_v20 = vmul.f32 %v5972_v51, %v1801_v61  ;;  %v2016_v35 = vmul.f32 %v5972_v51, %v1809_v58  ;;  %v2335_v33 = vadd.f32 %v5788_v28, %v2314_v31 }
 0x293   : > { %v1891_v40 = vrot.slane %v1853_v13, 1  ;;  %v1892_v56 = vrot.slane %v1854_v10, 1  ;;  %v1972_v22 = vrot.slane %v1934_v0, 2  ;;  %v2096_v48 = vmul.f32 %v6058_v38, %v1801_v61  ;;  %v3666_v10 = vpop.f32.mrf.mxu1 }
 0x294   : > { %v1973_v52 = vrot.slane %v1935_v54, 2  ;;  %v2053_v5 = vrot.slane %v2015_v20, 3  ;;  %v2054_v36 = vrot.slane %v2016_v35, 3  ;;  %v2358_v43 = vadd.f32 %v2350_v21, %v2335_v33 }
 0x295   : > { %v1893_v53 = vsel %vm1875_vm4, %v1891_v40, %v1892_v56  ;;  %v2097_v30 = vmul.f32 %v6058_v38, %v1809_v58  ;;  %v2177_v50 = vmul.f32 %v6074_v24, %v1801_v61  ;;  %v6147_v16 = vsel %vm1795_vm6, 0.0, %v1786_v49 }
 0x296   : > { %v2422_v28 = vmul.f32 %v5799_v42, %v5633_v47  ;;  %v1913_v37 = vadd.f32 %v1893_v53, %v1824_v34  ;;  %v1974_v46 = vsel %vm1956_vm8, %v1972_v22, %v1973_v52  ;;  %v2382_v7 = vadd.f32 %v2374_v23, %v2358_v43 }
 0x297   : > { %v2134_v11 = vrot.slane %v2096_v48, 4  ;;  %v2135_v29 = vrot.slane %v2097_v30, 4  ;;  %v2178_v21 = vmul.f32 %v6074_v24, %v1809_v58  ;;  %v6154_v14 = vsel %vm1795_vm6, %v1786_v49, 0.0  ;;  %v6184_v48 = vld [vmem:[#allocation7] ss:$0 sm:$0xff] }
 0x298   : > { %v1994_v1 = vadd.f32 %v1974_v46, %v1913_v37  ;;  %v2257_v31 = vmul.f32 %v5732_v32, %v1801_v61  ;;  %v2258_v13 = vmul.f32 %v5732_v32, %v1809_v58  ;;  %v2406_v0 = vadd.f32 %v2398_v2, %v2382_v7 }
 0x299   : > { %v2055_v54 = vsel %vm2037_vm9, %v2053_v5, %v2054_v36  ;;  %v2214_v34 = vrot.slane %v2177_v50, 5  ;;  %v2215_v20 = vrot.slane %v2178_v21, 5  ;;  %v1800_v23 = vsel %vm1795_vm6, 0.0, %v1783_v63 }
 0x29a   : > { %v6163_v35 = vsel %vm1795_vm6, %v1785_v55, 0.0  ;;  %v6166_v49 = vadd.f32 %v3666_v10, %v6126_v27  ;;  %v2075_v33 = vadd.f32 %v2055_v54, %v1994_v1  ;;  %v6168_v61 = vadd.f32 %v2422_v28, %v2406_v0 }
 0x29b   : > { %v2136_v58 = vsel %vm2118_vm10, %v2134_v11, %v2135_v29  ;;  %v2295_v2 = vrot.slane %v2257_v31, 6  ;;  %v2296_v40 = vrot.slane %v2258_v13, 6  ;;  %v6173_v56 = vmul.f32 %v6042_v45, %v6147_v16 }
 0x29c   : > { %v6177_v22 = vmul.f32 %v6042_v45, %v6154_v14  ;;  %v6181_v52 = vmul.f32 %v6048_v59, %v6147_v16  ;;  %v2156_v5 = vadd.f32 %v2136_v58, %v2075_v33  ;;  %v2216_v36 = vsel %vm1795_vm6, %v2214_v34, %v2215_v20 }
 0x29d   : > { %v2330_v43 = vmul.f32 %v6184_v48, %v5589_v15  ;;  %v2353_v53 = vmul.f32 %v5782_v26, %v5633_v47  ;;  %v1808_v30 = vsel %vm1795_vm6, %v1783_v63, 0.0  ;;  %v1851_v28 = vmul.f32 %v6042_v45, %v1800_v23 }
 0x29e   : > { %v2236_v50 = vadd.f32 %v2216_v36, %v2156_v5  ;;  %v1852_v37 = vmul.f32 %v6042_v45, %v1808_v30  ;;  %v1932_v46 = vmul.f32 %v6048_v59, %v1800_v23  ;;  %v2297_v7 = vsel %vm2279_vm13, %v2295_v2, %v2296_v40 }
 0x29f   : > { %v1933_v11 = vmul.f32 %v6048_v59, %v1808_v30  ;;  %v2013_v29 = vmul.f32 %v5972_v51, %v1800_v23  ;;  %v2014_v21 = vmul.f32 %v5972_v51, %v1808_v30  ;;  %v1888_v31 = vrot.slane %v1851_v28, 1 }
 0x2a0   : > { %v2317_v1 = vadd.f32 %v2297_v7, %v2236_v50  ;;  %v1889_v13 = vrot.slane %v1852_v37, 1  ;;  %v1969_v10 = vrot.slane %v1932_v46, 2  ;;  %v1823_v63 = vmul.f32 %v5943_v60, %v1800_v23 }
 0x2a1   : > { %v1970_v0 = vrot.slane %v1933_v11, 2  ;;  %v2050_v54 = vrot.slane %v2013_v29, 3  ;;  %v2051_v34 = vrot.slane %v2014_v21, 3  ;;  %v2094_v58 = vmul.f32 %v6058_v38, %v1800_v23 }
 0x2a2   : > { %v2338_v20 = vadd.f32 %v2330_v43, %v2317_v1  ;;  %v1890_v33 = vsel %vm1875_vm4, %v1888_v31, %v1889_v13  ;;  %v2095_v2 = vmul.f32 %v6058_v38, %v1808_v30  ;;  %v1939_v40 = vmul.f32 %v6048_v59, %v6154_v14 }
 0x2a3   : > { %v2019_v5 = vmul.f32 %v5972_v51, %v6147_v16  ;;  %v1912_v36 = vadd.f32 %v1890_v33, %v1823_v63  ;;  %v1971_v50 = vsel %vm1956_vm8, %v1969_v10, %v1970_v0  ;;  %v2131_v37 = vrot.slane %v2094_v58, 4 }
 0x2a4   : > { %v6207_v28 = vadd.f32 %v2353_v53, %v2338_v20  ;;  %v2132_v46 = vrot.slane %v2095_v2, 4  ;;  %v2175_v43 = vmul.f32 %v6074_v24, %v1800_v23  ;;  %v2176_v11 = vmul.f32 %v6074_v24, %v1808_v30 }
 0x2a5   : > { %v1993_v7 = vadd.f32 %v1971_v50, %v1912_v36  ;;  %v2255_v29 = vmul.f32 %v5732_v32, %v1800_v23  ;;  %v2256_v21 = vmul.f32 %v5732_v32, %v1808_v30  ;;  %v2020_v1 = vmul.f32 %v5972_v51, %v6154_v14 }
 0x2a6   : > { %v2101_v31 = vmul.f32 %v6058_v38, %v6154_v14  ;;  %v2052_v53 = vsel %vm2037_vm9, %v2050_v54, %v2051_v34  ;;  %v2211_v13 = vrot.slane %v2175_v43, 5  ;;  %v1897_v10 = vrot.slane %v6173_v56, 1 }
 0x2a7   : > { %v1898_v63 = vrot.slane %v6177_v22, 1  ;;  %v2074_v0 = vadd.f32 %v2052_v53, %v1993_v7  ;;  %v2212_v20 = vrot.slane %v2176_v11, 5  ;;  %v2468_v23 = vmul.f32 %v5977_v6, %v6107_v25 }
 0x2a8   : > { %v2133_v30 = vsel %vm2118_vm10, %v2131_v37, %v2132_v46  ;;  %v2292_v33 = vrot.slane %v2255_v29, 6  ;;  %v2293_v58 = vrot.slane %v2256_v21, 6  ;;  %v6225_v2 = vmul.f32 %v6042_v45, %v6163_v35 }
 0x2a9   : > { %v1978_v54 = vrot.slane %v6181_v52, 2  ;;  %v1979_v34 = vrot.slane %v1939_v40, 2  ;;  %v2155_v36 = vadd.f32 %v2133_v30, %v2074_v0  ;;  %v1826_v56 = vmul.f32 %v5943_v60, %v6147_v16  ;;  %v877_v0 = vpop.f32.mrf.mxu1 }
 0x2aa   : > { %v2059_v22 = vrot.slane %v2019_v5, 3  ;;  %v2182_v50 = vmul.f32 %v6074_v24, %v6154_v14  ;;  %v2213_v43 = vsel %vm1795_vm6, %v2211_v13, %v2212_v20  ;;  %v2060_v37 = vrot.slane %v2020_v1, 3 }
 0x2ab   : > { %v2141_v46 = vrot.slane %v2101_v31, 4  ;;  %v2235_v7 = vadd.f32 %v2213_v43, %v2155_v36  ;;  %v1899_v11 = vsel %vm1875_vm4, %v1897_v10, %v1898_v63  ;;  %v2294_v29 = vsel %vm2279_vm13, %v2292_v33, %v2293_v58 }
 0x2ac   : > { %v2329_v52 = vmul.f32 %v6184_v48, %v5370_v17  ;;  %v1915_v40 = vadd.f32 %v1899_v11, %v1826_v56  ;;  %v2100_v21 = vmul.f32 %v6058_v38, %v6147_v16  ;;  %v1980_v53 = vsel %vm1956_vm8, %v1978_v54, %v1979_v34 }
 0x2ad   : > { %v2316_v5 = vadd.f32 %v2294_v29, %v2235_v7  ;;  %v2181_v13 = vmul.f32 %v6074_v24, %v6147_v16  ;;  %v2261_v1 = vmul.f32 %v5732_v32, %v6147_v16  ;;  %v2352_v31 = vmul.f32 %v5782_v26, %v5589_v15 }
 0x2ae   : > { %v1996_v10 = vadd.f32 %v1980_v53, %v1915_v40  ;;  %v2140_v63 = vrot.slane %v2100_v21, 4  ;;  %v2262_v17 = vmul.f32 %v5732_v32, %v6154_v14  ;;  %v2061_v30 = vsel %vm2037_vm9, %v2059_v22, %v2060_v37 }
 0x2af   : > { %v2337_v20 = vadd.f32 %v2329_v52, %v2316_v5  ;;  %v2220_v33 = vrot.slane %v2181_v13, 5  ;;  %v2221_v58 = vrot.slane %v2182_v50, 5  ;;  %v1802_v54 = vsel %vm1795_vm6, 0.0, %v1785_v55 }
 0x2b0   : > { %v2077_v34 = vadd.f32 %v2061_v30, %v1996_v10  ;;  %v2301_v16 = vrot.slane %v2261_v1, 6  ;;  %v2302_v36 = vrot.slane %v2262_v17, 6  ;;  %v1937_v15 = vmul.f32 %v6048_v59, %v6163_v35 }
 0x2b1   : > { %v2360_v56 = vadd.f32 %v2352_v31, %v2337_v20  ;;  %v2376_v14 = vmul.f32 %v5780_v8, %v5633_v47  ;;  %v2142_v43 = vsel %vm2118_vm10, %v2140_v63, %v2141_v46  ;;  %v1895_v22 = vrot.slane %v6225_v2, 1 }
 0x2b2   : > { %v6259_v50 = vadd.f32 %v877_v0, %v6126_v27  ;;  %v2423_v55 = vmul.f32 %v5799_v42, %v6107_v25  ;;  %v2158_v37 = vadd.f32 %v2142_v43, %v2077_v34  ;;  %v2377_v7 = vmul.f32 %v5780_v8, %v6107_v25 }
 0x2b3   : > { %v2384_v11 = vadd.f32 %v2376_v14, %v2360_v56  ;;  %v2222_v29 = vsel %vm1795_vm6, %v2220_v33, %v2221_v58  ;;  %v2332_v52 = vmul.f32 %v6184_v48, %v6107_v25  ;;  %v2303_v46 = vsel %vm2279_vm13, %v2301_v16, %v2302_v36 }
 0x2b4   : > { %v2238_v40 = vadd.f32 %v2222_v29, %v2158_v37  ;;  %v1855_v2 = vmul.f32 %v6042_v45, %v1802_v54  ;;  %v1936_v21 = vmul.f32 %v6048_v59, %v1802_v54  ;;  %v1976_v5 = vrot.slane %v1937_v15, 2 }
 0x2b5   : > { %v2017_v53 = vmul.f32 %v5972_v51, %v1802_v54  ;;  %v2018_v13 = vmul.f32 %v5972_v51, %v6163_v35  ;;  %v2098_v1 = vmul.f32 %v6058_v38, %v1802_v54  ;;  %v2099_v17 = vmul.f32 %v6058_v38, %v6163_v35 }
 0x2b6   : > { %v2319_v31 = vadd.f32 %v2303_v46, %v2238_v40  ;;  %v1894_v10 = vrot.slane %v1855_v2, 1  ;;  %v1975_v63 = vrot.slane %v1936_v21, 2  ;;  %v6278_v0 = vadd.f32 %v2468_v23, %v5890_v44 }
 0x2b7   : > { %v2431_v45 = vadd.f32 %v2423_v55, %v6092_v12  ;;  %v2385_v59 = vadd.f32 %v2377_v7, %v6207_v28  ;;  %v1825_v20 = vmul.f32 %v5943_v60, %v1802_v54  ;;  %v2056_v33 = vrot.slane %v2017_v53, 3  ;;  %v3669_v28 = vpop.f32.mrf.mxu1 }
 0x2b8   : > { %v2340_v30 = vadd.f32 %v2332_v52, %v2319_v31  ;;  %v1896_v51 = vsel %vm1875_vm4, %v1894_v10, %v1895_v22  ;;  %v2057_v58 = vrot.slane %v2018_v13, 3  ;;  %v2355_v34 = vmul.f32 %v5782_v26, %v6085_v57 }
 0x2b9   : > { %v1914_v16 = vadd.f32 %v1896_v51, %v1825_v20  ;;  %v2137_v36 = vrot.slane %v2098_v1, 4  ;;  %v2179_v38 = vmul.f32 %v6074_v24, %v1802_v54  ;;  %v1977_v44 = vsel %vm1956_vm8, %v1975_v63, %v1976_v5  ;;  %v887_v21 = vpop.f32.mrf.mxu1 }
 0x2ba   : > { %v2138_v23 = vrot.slane %v2099_v17, 4  ;;  %v2180_v12 = vmul.f32 %v6074_v24, %v6163_v35  ;;  %v2259_v60 = vmul.f32 %v5732_v32, %v1802_v54  ;;  %v2400_v15 = vmul.f32 %v5793_v3, %v6107_v25 }
 0x2bb   : > { %v2363_v56 = vadd.f32 %v2355_v34, %v2340_v30  ;;  %v1995_v14 = vadd.f32 %v1977_v44, %v1914_v16  ;;  %v2260_v43 = vmul.f32 %v5732_v32, %v6163_v35  ;;  %v2401_v22 = vmul.f32 %v5793_v3, %v6085_v57  ;;  %v3672_v63 = vpop.f32.mrf.mxu1 }
 0x2bc   : > { %v2058_v55 = vsel %vm2037_vm9, %v2056_v33, %v2057_v58  ;;  %v2217_v37 = vrot.slane %v2179_v38, 5  ;;  %v2218_v7 = vrot.slane %v2180_v12, 5  ;;  %v2446_v24 = vmul.f32 %v5861_v19, %v6107_v25 }
 0x2bd   : > { %v2408_v54 = vadd.f32 %v2400_v15, %v2384_v11  ;;  %v2379_v29 = vmul.f32 %v5780_v8, %v6109_v9  ;;  %v2076_v52 = vadd.f32 %v2058_v55, %v1995_v14  ;;  %v2409_v40 = vadd.f32 %v2401_v22, %v2385_v59 }
 0x2be   : > { %v2139_v46 = vsel %vm2118_vm10, %v2137_v36, %v2138_v23  ;;  %v2298_v2 = vrot.slane %v2259_v60, 6  ;;  %v2299_v32 = vrot.slane %v2260_v43, 6  ;;  %v2447_v35 = vmul.f32 %v5861_v19, %v6085_v57  ;;  %v897_v60 = vpop.f32.mrf.mxu1 }
 0x2bf   : > { %v2424_v5 = vmul.f32 %v5799_v42, %v6085_v57  ;;  %v2387_v53 = vadd.f32 %v2379_v29, %v2363_v56  ;;  %v2157_v13 = vadd.f32 %v2139_v46, %v2076_v52  ;;  %v2453_v11 = vadd.f32 %v2446_v24, %v6168_v61 }
 0x2c0   : > { %v2425_v1 = vmul.f32 %v5799_v42, %v6109_v9  ;;  %v2219_v31 = vsel %vm1795_vm6, %v2217_v37, %v2218_v7  ;;  %v2469_v10 = vmul.f32 %v5977_v6, %v6085_v57  ;;  %v2403_v59 = vmul.f32 %v5793_v3, %v6112_v18 }
 0x2c1   : > { %v2432_v17 = vadd.f32 %v2424_v5, %v2408_v54  ;;  %v2237_v20 = vadd.f32 %v2219_v31, %v2157_v13  ;;  %vm4356_vm4 = vmmov 0   ;;  %v2454_v30 = vadd.f32 %v2447_v35, %v2431_v45  ;;  %v3675_v54 = vpop.f32.mrf.mxu1 }
 0x2c2   : > { %3708 = vmatprep.mubr.msk.f32.mxu0 %vm4356_vm4, %v6686_v4  ;;  %v2433_v61 = vadd.f32 %v2425_v1, %v2409_v40  ;;  %v2448_v51 = vmul.f32 %v5861_v19, %v6109_v9  ;;  %v2300_v33 = vsel %vm2279_vm13, %v2298_v2, %v2299_v32  ;;  %v2411_v58 = vadd.f32 %v2403_v59, %v2387_v53 }
 0x2c3   : > { %v2427_v34 = vmul.f32 0.0, %v5799_v42  ;;  %v2318_v16 = vadd.f32 %v2300_v33, %v2237_v20  ;;  %v2331_v36 = vmul.f32 %v6184_v48, %v5633_v47  ;;  %v6324_v38 = vadd.f32 %v3669_v28, %v6126_v27 }
 0x2c4   : > { %v2470_v44 = vmul.f32 %v5977_v6, %v6109_v9  ;;  %v6329_v45 = vadd.f32 %v887_v21, %v6126_v27  ;;  %v6331_v23 = vadd.f32 %v2469_v10, %v2453_v11  ;;  %v2449_v12 = vmul.f32 %v5861_v19, %v6112_v18 }
 0x2c5   : > { %v2455_v15 = vadd.f32 %v2448_v51, %v2432_v17  ;;  %v2339_v56 = vadd.f32 %v2331_v36, %v2318_v16  ;;  %v2354_v47 = vmul.f32 %v5782_v26, %v6107_v25  ;;  %v2482_v48 = vadd.f32 %v6278_v0, %v6166_v49 }
 0x2c6   : > { %v6339_v28 = vadd.f32 %v2470_v44, %v2454_v30  ;;  %v2472_v14 = vmul.f32 0.0, %v5977_v6  ;;  %v2471_v43 = vmul.f32 %v5977_v6, %v6112_v18  ;;  %v2456_v22 = vadd.f32 %v2449_v12, %v2433_v61  ;;  %v2600_v44 = vld [vmem:[#allocation8] sm:$0xff]  ;;  %v2520_v12 = vld [vmem:[%s6560_s7] sm:$0x1] }
 0x2c7   : > { %v2435_v55 = vadd.f32 %v2427_v34, %v2411_v58  ;;  %v2362_v37 = vadd.f32 %v2354_v47, %v2339_v56  ;;  %v2378_v7 = vmul.f32 %v5780_v8, %v6085_v57  ;;  %v2481_v24 = vadd.f32 %v6015_v62, %v6259_v50 }
 0x2c8   : > { %v2483_v26 = vadd.f32 %v6331_v23, %v6329_v45  ;;  %v6351_v25 = vadd.f32 %v897_v60, %v6126_v27  ;;  %v6353_v29 = vadd.f32 %v2471_v43, %v2455_v15  ;;  %v2450_v6 = vmul.f32 0.0, %v5861_v19  ;;  %v907_v19 = vpop.f32.mrf.mxu1 }
 0x2c9   : > { %v2386_v52 = vadd.f32 %v2378_v7, %v2362_v37  ;;  %v2402_v40 = vmul.f32 %v5793_v3, %v6109_v9  ;;  %v2489_v46 = vadd.f32 %v2482_v48, %v2481_v24  ;;  %v2484_v8 = vadd.f32 %v6339_v28, %v6324_v38 }
 0x2ca   : > { %v6361_v57 = vadd.f32 %v3672_v63, %v6126_v27  ;;  %v6363_v2 = vadd.f32 %v2472_v14, %v2456_v22  ;;  %v2458_v32 = vadd.f32 %v2450_v6, %v2435_v55  ;;  %v2426_v21 = vmul.f32 %v5799_v42, %v6112_v18 }
 0x2cb   : > { %v2410_v35 = vadd.f32 %v2402_v40, %v2386_v52  ;;  %v2490_v5 = vadd.f32 %v2489_v46, %v2483_v26  ;;  %v2485_v53 = vadd.f32 %v6353_v29, %v6351_v25  ;;  %v6374_v1 = vadd.f32 %v907_v19, %v6126_v27  ;;  %v2602_v26 = vld [vmem:[#allocation8 + $0x10] sm:$0xff]  ;;  %v2826_v52 = vld [vmem:[#allocation10 + $0x68] sm:$0xff]  ;;  %v2825_v40 = vld [vmem:[#allocation10 + $0x60] sm:$0xff] }
 0x2cc   : > { %v2486_v13 = vadd.f32 %v6363_v2, %v6361_v57  ;;  %v6371_v11 = vadd.f32 %v2472_v14, %v2458_v32  ;;  %v6377_v63 = vadd.f32 %v3675_v54, %v6126_v27  ;;  %v2601_v27 = vld [vmem:[#allocation8 + $0x8] sm:$0xff]  ;;  %vm2620_vm6 = vcmask 64512   ;;  %v2828_v54 = vld [vmem:[#allocation10 + $0x78] sm:$0xff]  ;;  %v2822_v32 = vld [vmem:[#allocation10 + $0x48] sm:$0xff] }
 0x2cd   : > { %v2434_v3 = vadd.f32 %v2426_v21, %v2410_v35  ;;  %v2491_v9 = vadd.f32 %v2490_v5, %v2484_v8  ;;  %2654 = vmatprep.subr.mxu0 %v2601_v27  ;;  %3716 = vmatprep.subr.mxu1 %v2828_v54  ;;  %v2824_v46 = vld [vmem:[#allocation10 + $0x58] sm:$0xff]  ;;  %v2823_v8 = vld [vmem:[#allocation10 + $0x50] sm:$0xff]  ;;  %v2818_v5 = vld [vmem:[#allocation10 + $0x28] sm:$0xff] }
 0x2ce   : > { %v2488_v18 = vadd.f32 %v6371_v11, %v6377_v63  ;;  %3717 = vmatpush3.msra.mxu1 %v2828_v54  ;;  %v2820_v35 = vld [vmem:[#allocation10 + $0x38] sm:$0xff]  ;;  %v2819_v21 = vld [vmem:[#allocation10 + $0x30] sm:$0xff]  ;;  %v2817_v19 = vld [vmem:[#allocation10 + $0x20] sm:$0xff] }
 0x2cf   : > { %v2457_v31 = vadd.f32 %v2450_v6, %v2434_v3  ;;  %v2492_v10 = vadd.f32 %v2491_v9, %v2485_v53  ;;  %v2827_v6 = vld [vmem:[#allocation10 + $0x70] sm:$0xff]  ;;  %v2964_v53 = vld [vmem:[#allocation11 + $0x78] sm:$0xff] }
 0x2d0   : > { %3718 = vmatprep.subr.mxu1 %v2827_v6  ;;  %v2963_v3 = vld [vmem:[#allocation11 + $0x70] sm:$0xff]  ;;  %v2816_v9 = vld [vmem:[#allocation10 + $0x18] sm:$0xff] }
 0x2d1   : > { %v6379_v42 = vadd.f32 %v2472_v14, %v2457_v31  ;;  %v2493_v59 = vadd.f32 %v2492_v10, %v2486_v13  ;;  %3719 = vmatpush3.msra.mxu1 %v2827_v6  ;;  %v2962_v13 = vld [vmem:[#allocation11 + $0x68] sm:$0xff]  ;;  %v2815_v31 = vld [vmem:[#allocation10 + $0x10] sm:$0xff]  ;;  %v2961_v10 = vld [vmem:[#allocation11 + $0x60] sm:$0xff] }
 0x2d2   : > { %3720 = vmatprep.subr.mxu1 %v2826_v52 }
 0x2d3   : > { %v2487_v17 = vadd.f32 %v6379_v42, %v6374_v1  ;;  %3721 = vmatpush3.msra.mxu1 %v2826_v52 }
 0x2d4   : > { %3722 = vmatprep.subr.mxu1 %v2825_v40 }
 0x2d5   : > { %v2494_v20 = vadd.f32 %v2493_v59, %v2487_v17  ;;  %3723 = vmatpush3.msra.mxu1 %v2825_v40  ;;  %v2960_v17 = vld [vmem:[#allocation11 + $0x58] sm:$0xff]  ;;  %v2813_v59 = vld [vmem:[#allocation10] sm:$0xff] }
 0x2d6   : > { %3724 = vmatprep.subr.mxu1 %v2824_v46 }
 0x2d7   : > { %v2495_v30 = vadd.f32 %v2494_v20, %v2488_v18  ;;  %3725 = vmatpush3.msra.mxu1 %v2824_v46  ;;  %v2814_v18 = vld [vmem:[#allocation10 + $0x8] sm:$0xff]  ;;  %v2959_v20 = vld [vmem:[#allocation11 + $0x50] sm:$0xff] }
 0x2d8   : > { %3726 = vmatprep.subr.mxu1 %v2823_v8 }
 0x2d9   : > { %v2496_v61 = vrot.slane %v2495_v30, 4  ;;  %3727 = vmatpush3.msra.mxu1 %v2823_v8 }
 0x2da   : > { %3728 = vmatprep.subr.mxu1 %v2822_v32 }
 0x2db   : > { %v2497_v51 = vadd.f32 %v2496_v61, %v2495_v30  ;;  %3729 = vmatpush3.msra.mxu1 %v2822_v32  ;;  %v2958_v30 = vld [vmem:[#allocation11 + $0x48] sm:$0xff]  ;;  %v2957_v61 = vld [vmem:[#allocation11 + $0x40] sm:$0xff] }
 0x2dd   : > { %v2498_v33 = vrot.slane %v2497_v51, 2 }
 0x2df   : > { %v2499_v58 = vadd.f32 %v2498_v33, %v2497_v51  ;;  %v2956_v51 = vld [vmem:[#allocation11 + $0x38] sm:$0xff]  ;;  %v2955_v33 = vld [vmem:[#allocation11 + $0x30] sm:$0xff] }
 0x2e1   : > { %v2500_v34 = vrot.slane %v2499_v58, 1 }
 0x2e3   : > { %v2501_v16 = vadd.f32 %v2500_v34, %v2499_v58  ;;  %v2954_v58 = vld [vmem:[#allocation11 + $0x28] sm:$0xff]  ;;  %v2953_v34 = vld [vmem:[#allocation11 + $0x20] sm:$0xff] }
 0x2e5   : > { %v2503_v36 = vmul.f32 0.015625, %v2501_v16  ;;  %v2603_v16 = vld [vmem:[%s6562_s9] sm:$0x7] }
 0x2e7   : > { %3709 = vmatmul.mubr.f32.vlgmr.msra.gmra.mxu0 %v2503_v36  ;;  %v6718_v36 = vld [vmem:[#allocation22_spill] sm:$0xff] }
 0x2e8   : > { %2688 = vmatprep.mubr.f32.mxu0 %v6686_v4  ;;  %2655 = vmatpush1.msra.mxu0 %v2600_v44  ;;  %v2608_v27 = vrot.slane %v2603_v16, %v6718_v36  ;;  %v6719_v44 = vsub.s32 1, %v6717_v41 }
 0x2e9   : > { %3711 = vmatprep.subr.mxu0 %v6686_v4 }
 0x3a7   : > { %v2587_v60 = vpop.f32.mrf.mxu0 }
 0x3a8   : > { %v2588_v15 = vadd.f32 %v2587_v60, %v2520_v12  ;;  %v2612_v12 = vrot.slane %v2603_v16, %v6719_v44  ;;  %v4069_v44 = vld [vmem:[%s4630_s10 + $0x8] sm:$0xff] }
 0x3a9   : > { %v3710_v56 = vpop.f32.mrf.mxu0 }
 0x3aa   : > { %v2592_v47 = vmul.f32 0.044715, %v2588_v15  ;;  %v2591_v37 = vmul.f32 0.5, %v2588_v15 }
 0x3ac   : > { %v2593_v48 = vmul.f32 %v2592_v47, %v2588_v15 }
 0x3ae   : > { %v2594_v14 = vmul.f32 %v2593_v48, %v2588_v15 }
 0x3b0   : > { %v2595_v43 = vadd.f32 %v2594_v14, %v2588_v15  ;;  %v2616_v15 = vrot.slane %v2603_v16, %v693_v39 }
 0x3b2   : > { %v2596_v22 = vmul.f32 0.7978846, %v2595_v43 }
 0x3b4   : > { %4033 = vtanh.f32 %v2596_v22 }
 0x3c1   : > { %v4034_v55 = vpop.eup %4033 }
 0x3c2   : > { %v2598_v7 = vadd.f32 1.0, %v4034_v55 }
 0x3c4   : > { %v2599_v24 = vmul.f32 %v2598_v7, %v2591_v37 }
 0x3c6   : > { %3505 = vmatmul.mubr.msk.f32.vlgmr.msra.gmra.mxu0 %vm2620_vm6, %v2599_v24 }
 0x3c7   : > { %3712 = vmatpush3.msra.mxu0 %v2602_v26  ;;  %3713 = vmatprep.mubr.msk.f32.mxu0 %vm4356_vm4, %v6686_v4  ;;  %v2821_v4 = vld [vmem:[#allocation10 + $0x40] sm:$0xff] }
 0x3c8   : > { %3730 = vmatprep.subr.mxu1 %v2821_v4  ;;  %3760 = vmatprep.subr.mxu0 %v2964_v53 }
 0x3c9   : > { %3731 = vmatpush3.msra.mxu1 %v2821_v4 }
 0x3ca   : > { %3714 = vmatmul.mubr.msk.f32.vlgmr.msra.gmra.mxu0 %vm2620_vm6, %v2599_v24  ;;  %3732 = vmatprep.subr.mxu1 %v2820_v35 }
 0x3cb   : > { %3733 = vmatpush3.msra.mxu1 %v2820_v35  ;;  %3761 = vmatpush3.msra.mxu0 %v2964_v53 }
 0x3cc   : > { %3734 = vmatprep.subr.mxu1 %v2819_v21  ;;  %3762 = vmatprep.subr.mxu0 %v2963_v3 }
 0x3cd   : > { %3735 = vmatpush3.msra.mxu1 %v2819_v21  ;;  %3763 = vmatpush3.msra.mxu0 %v2963_v3 }
 0x3ce   : > { %3736 = vmatprep.subr.mxu1 %v2818_v5  ;;  %3764 = vmatprep.subr.mxu0 %v2962_v13 }
 0x3cf   : > { %3737 = vmatpush3.msra.mxu1 %v2818_v5  ;;  %3765 = vmatpush3.msra.mxu0 %v2962_v13 }
 0x3d0   : > { %3738 = vmatprep.subr.mxu1 %v2817_v19  ;;  %3766 = vmatprep.subr.mxu0 %v2961_v10 }
 0x3d1   : > { %3739 = vmatpush3.msra.mxu1 %v2817_v19  ;;  %3767 = vmatpush3.msra.mxu0 %v2961_v10 }
 0x3d2   : > { %3740 = vmatprep.subr.mxu1 %v2816_v9  ;;  %3768 = vmatprep.subr.mxu0 %v2960_v17 }
 0x3d3   : > { %3741 = vmatpush3.msra.mxu1 %v2816_v9  ;;  %3769 = vmatpush3.msra.mxu0 %v2960_v17 }
 0x3d4   : > { %3742 = vmatprep.subr.mxu1 %v2815_v31  ;;  %3770 = vmatprep.subr.mxu0 %v2959_v20 }
 0x3d5   : > { %3743 = vmatpush3.msra.mxu1 %v2815_v31  ;;  %3771 = vmatpush3.msra.mxu0 %v2959_v20 }
 0x3d6   : > { %3744 = vmatprep.subr.mxu1 %v2814_v18  ;;  %3772 = vmatprep.subr.mxu0 %v2958_v30 }
 0x3d7   : > { %3745 = vmatpush3.msra.mxu1 %v2814_v18  ;;  %3773 = vmatpush3.msra.mxu0 %v2958_v30 }
 0x3d8   : > { %3746 = vmatprep.subr.mxu1 %v2813_v59  ;;  %3774 = vmatprep.subr.mxu0 %v2957_v61 }
 0x3d9   : > { %3747 = vmatpush3.msra.mxu1 %v2813_v59  ;;  %3775 = vmatpush3.msra.mxu0 %v2957_v61 }
 0x3da   : > { %3776 = vmatprep.subr.mxu0 %v2956_v51 }
 0x3db   : > { %3777 = vmatpush3.msra.mxu0 %v2956_v51 }
 0x3dc   : > { %3778 = vmatprep.subr.mxu0 %v2955_v33 }
 0x3dd   : > { %3779 = vmatpush3.msra.mxu0 %v2955_v33 }
 0x3de   : > { %3780 = vmatprep.subr.mxu0 %v2954_v58 }
 0x3df   : > { %3781 = vmatpush3.msra.mxu0 %v2954_v58 }
 0x3e0   : > { %3782 = vmatprep.subr.mxu0 %v2953_v34 }
 0x3e1   : > { %3783 = vmatpush3.msra.mxu0 %v2953_v34 }
 0x486   : > { %v2690_v60 = vpop.f32.mrf.mxu0 }
 0x487   : > { %v2691_v47 = vadd.f32 %v2690_v60, %v2608_v27 }
 0x488   : > { %v2692_v56 = vpop.f32.mrf.mxu0 }
 0x489   : > { %v2693_v48 = vadd.f32 %v2692_v56, %v2612_v12 }
 0x48a   : > { %v2761_v14 = vpop.f32.mrf.mxu0 }
 0x48b   : > { %v2765_v43 = vmax.f32 %v2691_v47, %v2693_v48  ;;  %v2762_v22 = vadd.f32 %v2761_v14, %v2616_v15 }
 0x48c   : > { %v3715_v55 = vpop.f32.mrf.mxu0 }
 0x48d   : > { %v2766_v37 = vmax.f32 %v2765_v43, %v2762_v22  ;;  %v4071_v43 = vld [vmem:[%s4630_s10 + $0x18] sm:$0xff] }
 0x48f   : > { %v2767_v7 = vsub.f32 %v2691_v47, %v2766_v37  ;;  %v2770_v24 = vsub.f32 %v2693_v48, %v2766_v37  ;;  %v2773_v26 = vsub.f32 %v2762_v22, %v2766_v37  ;;  %v4070_v48 = vld [vmem:[%s4630_s10 + $0x10] sm:$0xff] }
 0x491   : > { %v2768_v54 = vmul.f32 1.442695, %v2767_v7  ;;  %v2771_v6 = vmul.f32 1.442695, %v2770_v24  ;;  %v2774_v52 = vmul.f32 1.442695, %v2773_v26 }
 0x492   : > { %v4072_v26 = vld [vmem:[%s4630_s10 + $0x20] sm:$0xff] }
 0x493   : > { %4035 = vpow2.f32 %v2768_v54 }
 0x494   : > { %4037 = vpow2.f32 %v2771_v6  ;;  %v4073_v6 = vld [vmem:[%s4630_s10 + $0x28] sm:$0xff] }
 0x495   : > { %4039 = vpow2.f32 %v2774_v52 }
 0x4a0   : > { %v4036_v40 = vpop.eup %4035 }
 0x4a1   : > { %v4038_v41 = vpop.eup %4037 }
 0x4a2   : > { %v2776_v39 = vadd.f32 %v4038_v41, %v4036_v40  ;;  %v4040_v46 = vpop.eup %4039 }
 0x4a4   : > { %v2777_v8 = vadd.f32 %v4040_v46, %v2776_v39 }
 0x4a6   : > { %4041 = vrcp.f32 %v2777_v8 }
 0x4b3   : > { %v4042_v32 = vpop.eup %4041 }
 0x4b4   : > { %v2779_v4 = vmul.f32 %v4042_v32, %v4036_v40  ;;  %v2780_v35 = vmul.f32 %v4042_v32, %v4040_v46  ;;  %v4074_v46 = vld [vmem:[%s4630_s10 + $0x30] sm:$0xff]  ;;  %v4075_v32 = vld [vmem:[%s4630_s10 + $0x38] sm:$0xff] }
 0x4b6   : > { %v2784_v21 = vrot.slane %v2779_v4, %v6718_v36  ;;  %v2796_v5 = vrot.slane %v2780_v35, %v6718_v36  ;;  %v4068_v36 = vld [vmem:[%s4630_s10] sm:$0xff]  ;;  %s4357_s10 = smov [#allocation14]  }
 0x4b7   : > { %v3164_v35 = vld [vmem:[#allocation13 + $0x78] sm:$0xff]  ;;  %s4264_s20 = sshll.u32 %s4357_s10, 4  ;;  %s4265_s20 = int_to_ptr.vmem [resolvable:$false] %s4264_s20 }
 0x4b8   : > { %v2785_v19 = vmul.f32 %v2784_v21, %v6015_v62  ;;  %v2797_v53 = vmul.f32 %v2796_v5, %v6259_v50  ;;  %v2786_v3 = vmul.f32 %v2784_v21, %v6278_v0  ;;  %v2798_v9 = vmul.f32 %v2796_v5, %v6166_v49  ;;  %3804 = vmatprep.subr.mxu1 %v3164_v35  ;;  %p4267_p13 = scmp.lt.s32.totalorder %s6503_s4, %s4265_s20 }
 0x4b9   : > { %v2787_v13 = vmul.f32 %v2784_v21, %v6331_v23  ;;  %v2799_v31 = vmul.f32 %v2796_v5, %v6329_v45  ;;  %v2788_v17 = vmul.f32 %v2784_v21, %v6339_v28  ;;  %v2800_v59 = vmul.f32 %v2796_v5, %v6324_v38 }
 0x4ba   : > { %v2805_v10 = vadd.f32 %v2797_v53, %v2785_v19  ;;  %v2806_v18 = vadd.f32 %v2798_v9, %v2786_v3  ;;  %v2789_v62 = vmul.f32 %v2784_v21, %v6353_v29  ;;  %v2801_v50 = vmul.f32 %v2796_v5, %v6351_v25  ;;  %v3161_v19 = vld [vmem:[#allocation13 + $0x60] sm:$0xff]  ;;  %v3160_v53 = vld [vmem:[#allocation13 + $0x58] sm:$0xff]  ;;  %v3159_v3 = vld [vmem:[#allocation13 + $0x50] sm:$0xff] }
 0x4bb   : > { %v2807_v20 = vadd.f32 %v2799_v31, %v2787_v13  ;;  %v2808_v0 = vadd.f32 %v2800_v59, %v2788_v17  ;;  %v2790_v49 = vmul.f32 %v2784_v21, %v6363_v2  ;;  %v2802_v23 = vmul.f32 %v2796_v5, %v6361_v57  ;;  %v2952_v2 = vld [vmem:[#allocation11 + $0x18] sm:$0xff]  ;;  %v2951_v57 = vld [vmem:[#allocation11 + $0x10] sm:$0xff]  ;;  %v3158_v9 = vld [vmem:[#allocation13 + $0x48] sm:$0xff] }
 0x4bc   : > { %3748 = vmatprep.mubr.f32.mxu1 %v2805_v10  ;;  %v2809_v45 = vadd.f32 %v2801_v50, %v2789_v62  ;;  %v2791_v30 = vmul.f32 %v2784_v21, %v6379_v42  ;;  %v2803_v28 = vmul.f32 %v2796_v5, %v6374_v1  ;;  %v2792_v61 = vmul.f32 %v2784_v21, %v6371_v11  ;;  %v2950_v1 = vld [vmem:[#allocation11 + $0x8] sm:$0xff]  ;;  %v2949_v42 = vld [vmem:[#allocation11] sm:$0xff]  ;;  %v3507_v11 = vld [vmem:[%s6564_s11] ss:$0 sm:$0xff] }
 0x4bd   : > { %3749 = vmatmul.mubr.f32.vlgmr.msra.gmra.mxu1 %v2806_v18  ;;  %v2810_v38 = vadd.f32 %v2802_v23, %v2790_v49  ;;  %v2804_v29 = vmul.f32 %v2796_v5, %v6377_v63  ;;  %3784 = vmatprep.subr.mxu0 %v2952_v2  ;;  %v3163_v21 = vld [vmem:[#allocation13 + $0x70] sm:$0xff]  ;;  %v3162_v5 = vld [vmem:[#allocation13 + $0x68] sm:$0xff]  ;;  %v3157_v13 = vld [vmem:[#allocation13 + $0x40] sm:$0xff] }
 0x4be   : > { %3751 = vmatprep.mubr.f32.mxu1 %v2807_v20  ;;  %v2811_v25 = vadd.f32 %v2803_v28, %v2791_v30  ;;  %3785 = vmatpush3.msra.mxu0 %v2952_v2  ;;  %v3156_v31 = vld [vmem:[#allocation13 + $0x38] sm:$0xff]  ;;  %v3155_v10 = vld [vmem:[#allocation13 + $0x30] sm:$0xff]  ;;  %v3154_v18 = vld [vmem:[#allocation13 + $0x28] sm:$0xff] }
 0x4bf   : > { %v2812_v51 = vadd.f32 %v2804_v29, %v2792_v61  ;;  %3786 = vmatprep.subr.mxu0 %v2951_v57  ;;  %3805 = vmatpush3.msra.mxu1 %v3164_v35  ;;  %v3153_v17 = vld [vmem:[#allocation13 + $0x20] sm:$0xff]  ;;  %v3152_v59 = vld [vmem:[#allocation13 + $0x18] sm:$0xff]  ;;  %v3151_v20 = vld [vmem:[#allocation13 + $0x10] sm:$0xff] }
 0x4c0   : > { %3787 = vmatpush3.msra.mxu0 %v2951_v57  ;;  %3806 = vmatprep.subr.mxu1 %v3163_v21  ;;  %v3150_v62 = vld [vmem:[#allocation13 + $0x8] sm:$0xff]  ;;  %v3149_v50 = vld [vmem:[#allocation13] sm:$0xff] }
 0x4c1   : > { %3752 = vmatmul.mubr.f32.gmra.mxu1 %v2808_v0  ;;  %3788 = vmatprep.subr.mxu0 %v2950_v1  ;;  %v3508_v0 = vld [vmem:[%s6720_s29] ss:$0 sm:$0xff]  ;;  %s4266_s29 = scalar_lea.vmem %s4265_s20, 2048 }
 0x4c2   : > { %3754 = vmatprep.mubr.f32.mxu1 %v2809_v45  ;;  %3789 = vmatpush3.msra.mxu0 %v2950_v1  ;;  %p4268_p0 = scmp.lt.s32.totalorder %s4266_s29, %s4260_s14 }
 0x4c3   : > { %3790 = vmatprep.subr.mxu0 %v2949_v42  ;;  %3807 = vmatpush3.msra.mxu1 %v3163_v21 }
 0x4c4   : > { %3791 = vmatpush3.msra.mxu0 %v2949_v42  ;;  %3808 = vmatprep.subr.mxu1 %v3162_v5  ;;  %p4269_p7 = por %p4268_p0, %p4267_p13 }
 0x4c5   : > { %3755 = vmatmul.mubr.f32.gmra.mxu1 %v2810_v38 }
 0x4c6   : > { %3757 = vmatprep.mubr.f32.mxu1 %v2811_v25  ;;  %3809 = vmatpush3.msra.mxu1 %v3162_v5  ;;  %p4270_p6 = pnand %p4269_p7, %p4263_p9 }
 0x4c7   : > { %3810 = vmatprep.subr.mxu1 %v3161_v19 }
 0x4c8   : > { %3811 = vmatpush3.msra.mxu1 %v3161_v19 }
 0x4c9   : > { %3758 = vmatmul.mubr.f32.gmra.mxu1 %v2812_v51  ;;  %3812 = vmatprep.subr.mxu1 %v3160_v53 }
 0x4ca   : > { %3813 = vmatpush3.msra.mxu1 %v3160_v53 }
 0x4cb   : > { %3814 = vmatprep.subr.mxu1 %v3159_v3 }
 0x4cc   : > { %3815 = vmatpush3.msra.mxu1 %v3159_v3 }
 0x4cd   : > { %3816 = vmatprep.subr.mxu1 %v3158_v9 }
 0x4ce   : > { %3817 = vmatpush3.msra.mxu1 %v3158_v9 }
 0x4cf   : > { %3818 = vmatprep.subr.mxu1 %v3157_v13 }
 0x4d0   : > { %3819 = vmatpush3.msra.mxu1 %v3157_v13 }
 0x4d1   : > { %3820 = vmatprep.subr.mxu1 %v3156_v31 }
 0x4d2   : > { %3821 = vmatpush3.msra.mxu1 %v3156_v31 }
 0x4d3   : > { %3822 = vmatprep.subr.mxu1 %v3155_v10 }
 0x4d4   : > { %3823 = vmatpush3.msra.mxu1 %v3155_v10 }
 0x4d5   : > { %3824 = vmatprep.subr.mxu1 %v3154_v18 }
 0x4d6   : > { %3825 = vmatpush3.msra.mxu1 %v3154_v18 }
 0x4d7   : > { %3826 = vmatprep.subr.mxu1 %v3153_v17 }
 0x4d8   : > { %3827 = vmatpush3.msra.mxu1 %v3153_v17 }
 0x4d9   : > { %3828 = vmatprep.subr.mxu1 %v3152_v59 }
 0x4da   : > { %3829 = vmatpush3.msra.mxu1 %v3152_v59 }
 0x4db   : > { %3830 = vmatprep.subr.mxu1 %v3151_v20 }
 0x4dc   : > { %3831 = vmatpush3.msra.mxu1 %v3151_v20 }
 0x4dd   : > { %3832 = vmatprep.subr.mxu1 %v3150_v62 }
 0x4de   : > { %3833 = vmatpush3.msra.mxu1 %v3150_v62 }
 0x4df   : > { %3834 = vmatprep.subr.mxu1 %v3149_v50 }
 0x4e0   : > { %3835 = vmatpush3.msra.mxu1 %v3149_v50 }
 0x57d   : > { %v3750_v63 = vpop.f32.mrf.mxu1 }
 0x57e   : > { %v2908_v33 = vadd.f32 %v3750_v63, %v3507_v11 }
 0x57f   : > { %v2902_v58 = vpop.f32.mrf.mxu1 }
 0x580   : > { %v2903_v34 = vadd.f32 %v3507_v11, %v2902_v58  ;;  %v6425_v12 = vadd.f32 %v4069_v44, %v2908_v33 }
 0x581   : > { %v3753_v16 = vpop.f32.mrf.mxu1 }
 0x582   : > { %v6422_v27 = vadd.f32 %v4068_v36, %v2903_v34  ;;  %v2918_v60 = vadd.f32 %v3753_v16, %v3507_v11 }
 0x583   : > { %v2912_v15 = vpop.f32.mrf.mxu1 }
 0x584   : > { %v2913_v56 = vadd.f32 %v3507_v11, %v2912_v15  ;;  %3792 = vmatprep.mubr.f32.mxu0 %v6422_v27  ;;  %v6433_v22 = vadd.f32 %v4071_v43, %v2918_v60 }
 0x585   : > { %v3756_v47 = vpop.f32.mrf.mxu1  ;;  %3793 = vmatmul.mubr.f32.vlgmr.msra.gmra.mxu0 %v6425_v12 }
 0x586   : > { %v6430_v14 = vadd.f32 %v4070_v48, %v2913_v56  ;;  %v2928_v55 = vadd.f32 %v3756_v47, %v3507_v11 }
 0x587   : > { %v2922_v37 = vpop.f32.mrf.mxu1 }
 0x588   : > { %v2923_v7 = vadd.f32 %v3507_v11, %v2922_v37  ;;  %3795 = vmatprep.mubr.f32.mxu0 %v6430_v14  ;;  %v6441_v52 = vadd.f32 %v4073_v6, %v2928_v55 }
 0x589   : > { %v3759_v24 = vpop.f32.mrf.mxu1  ;;  %3796 = vmatmul.mubr.f32.gmra.mxu0 %v6433_v22 }
 0x58a   : > { %v6438_v54 = vadd.f32 %v4072_v26, %v2923_v7  ;;  %v2938_v40 = vadd.f32 %v3759_v24, %v3507_v11 }
 0x58b   : > { %v2932_v41 = vpop.f32.mrf.mxu1 }
 0x58c   : > { %v2933_v39 = vadd.f32 %v3507_v11, %v2932_v41  ;;  %3798 = vmatprep.mubr.f32.mxu0 %v6438_v54  ;;  %v6449_v4 = vadd.f32 %v4075_v32, %v2938_v40 }
 0x58d   : > { %3799 = vmatmul.mubr.f32.gmra.mxu0 %v6441_v52 }
 0x58e   : > { %v6446_v8 = vadd.f32 %v4074_v46, %v2933_v39 }
 0x590   : > { %3801 = vmatprep.mubr.f32.mxu0 %v6446_v8 }
 0x591   : > { %3802 = vmatmul.mubr.f32.gmra.mxu0 %v6449_v4 }
 0x645   : > { %v3794_v49 = vpop.f32.mrf.mxu0 }
 0x646   : > { %v6456_v23 = vadd.f32 %v3794_v49, %v3508_v0 }
 0x647   : > { %v3038_v45 = vpop.f32.mrf.mxu0 }
 0x648   : > { %v3086_v30 = vmul.f32 0.044715, %v6456_v23  ;;  %v3039_v28 = vadd.f32 %v3508_v0, %v3038_v45 }
 0x649   : > { %v3797_v38 = vpop.f32.mrf.mxu0 }
 0x64a   : > { %v3094_v61 = vmul.f32 %v3086_v30, %v6456_v23  ;;  %v3085_v29 = vmul.f32 0.044715, %v3039_v28  ;;  %v6460_v25 = vadd.f32 %v3797_v38, %v3508_v0  ;;  %v3077_v38 = vmul.f32 0.5, %v3039_v28 }
 0x64b   : > { %v3048_v51 = vpop.f32.mrf.mxu0 }
 0x64c   : > { %v3102_v2 = vmul.f32 %v3094_v61, %v6456_v23  ;;  %v3093_v57 = vmul.f32 %v3085_v29, %v3039_v28  ;;  %v3088_v1 = vmul.f32 0.044715, %v6460_v25  ;;  %v6464_v42 = vadd.f32 %v3508_v0, %v3048_v51 }
 0x64d   : > { %v3800_v11 = vpop.f32.mrf.mxu0  ;;  %v3078_v51 = vmul.f32 0.5, %v6456_v23 }
 0x64e   : > { %v3110_v63 = vadd.f32 %v3102_v2, %v6456_v23  ;;  %v3096_v33 = vmul.f32 %v3088_v1, %v6460_v25  ;;  %v3087_v58 = vmul.f32 0.044715, %v6464_v42  ;;  %v6469_v34 = vadd.f32 %v3800_v11, %v3508_v0 }
 0x64f   : > { %v3058_v16 = vpop.f32.mrf.mxu0  ;;  %v3101_v36 = vmul.f32 %v3093_v57, %v3039_v28 }
 0x650   : > { %v3118_v44 = vmul.f32 0.7978846, %v3110_v63  ;;  %v3095_v60 = vmul.f32 %v3087_v58, %v6464_v42  ;;  %v3090_v15 = vmul.f32 0.044715, %v6469_v34  ;;  %v3059_v56 = vadd.f32 %v3508_v0, %v3058_v16 }
 0x651   : > { %v3803_v47 = vpop.f32.mrf.mxu0  ;;  %v3109_v48 = vadd.f32 %v3101_v36, %v3039_v28  ;;  %v3104_v43 = vmul.f32 %v3096_v33, %v6460_v25  ;;  %v3079_v33 = vmul.f32 0.5, %v6464_v42  ;;  %v3080_v16 = vmul.f32 0.5, %v6460_v25 }
 0x652   : > { %4043 = vtanh.f32 %v3118_v44  ;;  %v3098_v55 = vmul.f32 %v3090_v15, %v6469_v34  ;;  %v3089_v37 = vmul.f32 0.044715, %v3059_v56  ;;  %v6475_v7 = vadd.f32 %v3803_v47, %v3508_v0 }
 0x653   : > { %v3068_v24 = vpop.f32.mrf.mxu0  ;;  %v3117_v26 = vmul.f32 0.7978846, %v3109_v48  ;;  %v3103_v6 = vmul.f32 %v3095_v60, %v6464_v42  ;;  %v3112_v40 = vadd.f32 %v3104_v43, %v6460_v25  ;;  %v3081_v28 = vmul.f32 0.5, %v3059_v56 }
 0x654   : > { %v3097_v41 = vmul.f32 %v3089_v37, %v3059_v56  ;;  %v3092_v39 = vmul.f32 0.044715, %v6475_v7  ;;  %v3069_v46 = vadd.f32 %v3508_v0, %v3068_v24  ;;  %v3106_v32 = vmul.f32 %v3098_v55, %v6469_v34 }
 0x655   : > { %4045 = vtanh.f32 %v3117_v26  ;;  %v3111_v35 = vadd.f32 %v3103_v6, %v6464_v42  ;;  %v3120_v21 = vmul.f32 0.7978846, %v3112_v40  ;;  %v3082_v43 = vmul.f32 0.5, %v6469_v34  ;;  %v3509_v40 = vld [vmem:[%s6721_s12] ss:$0 sm:$0xff] }
 0x656   : > { %v3100_v5 = vmul.f32 %v3092_v39, %v6475_v7  ;;  %v3091_v19 = vmul.f32 0.044715, %v3069_v46  ;;  %v3105_v53 = vmul.f32 %v3097_v41, %v3059_v56  ;;  %v3114_v3 = vadd.f32 %v3106_v32, %v6469_v34 }
 0x657   : > { %v3119_v9 = vmul.f32 0.7978846, %v3111_v35  ;;  %4047 = vtanh.f32 %v3120_v21  ;;  %v3083_v42 = vmul.f32 0.5, %v3069_v46  ;;  %v3084_v6 = vmul.f32 0.5, %v6475_v7 }
 0x658   : > { %v3099_v13 = vmul.f32 %v3091_v19, %v3069_v46  ;;  %v3113_v31 = vadd.f32 %v3105_v53, %v3059_v56  ;;  %v3122_v10 = vmul.f32 0.7978846, %v3114_v3  ;;  %v3108_v18 = vmul.f32 %v3100_v5, %v6475_v7 }
 0x659   : > { %4049 = vtanh.f32 %v3119_v9 }
 0x65a   : > { %v3121_v17 = vmul.f32 0.7978846, %v3113_v31  ;;  %4051 = vtanh.f32 %v3122_v10  ;;  %v3107_v59 = vmul.f32 %v3099_v13, %v3069_v46  ;;  %v3116_v20 = vadd.f32 %v3108_v18, %v6475_v7 }
 0x65c   : > { %4053 = vtanh.f32 %v3121_v17  ;;  %v3115_v62 = vadd.f32 %v3107_v59, %v3069_v46  ;;  %v3124_v50 = vmul.f32 0.7978846, %v3116_v20 }
 0x65e   : > { %v3123_v0 = vmul.f32 0.7978846, %v3115_v62  ;;  %4055 = vtanh.f32 %v3124_v50 }
 0x65f   : > { %v4044_v49 = vpop.eup %4043 }
 0x660   : > { %4057 = vtanh.f32 %v3123_v0  ;;  %v3134_v30 = vadd.f32 1.0, %v4044_v49 }
 0x662   : > { %v4046_v45 = vpop.eup %4045  ;;  %v3142_v1 = vmul.f32 %v3134_v30, %v3078_v51 }
 0x663   : > { %v3133_v61 = vadd.f32 1.0, %v4046_v45 }
 0x664   : > { %v4048_v29 = vpop.eup %4047 }
 0x665   : > { %v3141_v2 = vmul.f32 %v3133_v61, %v3077_v38  ;;  %v3136_v11 = vadd.f32 1.0, %v4048_v29 }
 0x666   : > { %v4050_v57 = vpop.eup %4049 }
 0x667   : > { %v4052_v63 = vpop.eup %4051  ;;  %3836 = vmatprep.mubr.f32.mxu1 %v3141_v2  ;;  %v3135_v58 = vadd.f32 1.0, %v4050_v57  ;;  %v3144_v60 = vmul.f32 %v3136_v11, %v3080_v16 }
 0x668   : > { %3837 = vmatmul.mubr.f32.vlgmr.msra.gmra.mxu1 %v3142_v1  ;;  %v3138_v47 = vadd.f32 1.0, %v4052_v63 }
 0x669   : > { %v4054_v36 = vpop.eup %4053  ;;  %v3143_v44 = vmul.f32 %v3135_v58, %v3079_v33 }
 0x66a   : > { %v3137_v15 = vadd.f32 1.0, %v4054_v36  ;;  %v3146_v37 = vmul.f32 %v3138_v47, %v3082_v43 }
 0x66b   : > { %v4056_v48 = vpop.eup %4055  ;;  %3839 = vmatprep.mubr.f32.mxu1 %v3143_v44 }
 0x66c   : > { %3840 = vmatmul.mubr.f32.gmra.mxu1 %v3144_v60  ;;  %v3145_v23 = vmul.f32 %v3137_v15, %v3081_v28  ;;  %v3140_v26 = vadd.f32 1.0, %v4056_v48 }
 0x66d   : > { %v4058_v55 = vpop.eup %4057 }
 0x66e   : > { %3842 = vmatprep.mubr.f32.mxu1 %v3145_v23  ;;  %v3139_v24 = vadd.f32 1.0, %v4058_v55  ;;  %v3148_v56 = vmul.f32 %v3140_v26, %v3084_v6 }
 0x670   : > { %3843 = vmatmul.mubr.f32.gmra.mxu1 %v3146_v37  ;;  %v3147_v25 = vmul.f32 %v3139_v24, %v3083_v42 }
 0x672   : > { %3845 = vmatprep.mubr.f32.mxu1 %v3147_v25 }
 0x674   : > { %3846 = vmatmul.mubr.f32.gmra.mxu1 %v3148_v56 }
 0x728   : > { %v3838_v41 = vpop.f32.mrf.mxu1 }
 0x729   : > { %v3244_v34 = vadd.f32 %v3838_v41, %v3509_v40 }
 0x72a   : > { %v3238_v39 = vpop.f32.mrf.mxu1 }
 0x72b   : > { %v3278_v32 = vadd.f32 %v3244_v34, %v6425_v12  ;;  %v3239_v46 = vadd.f32 %v3509_v40, %v3238_v39 }
 0x72c   : > { %v3841_v35 = vpop.f32.mrf.mxu1 }
 0x72d   : > { %3286 = vst [vmem:[%s624_s28 + $0x8] sm:$0xff] %v3278_v32  ;;  %v3277_v21 = vadd.f32 %v3239_v46, %v6422_v27  ;;  %v3254_v7 = vadd.f32 %v3841_v35, %v3509_v40 }
 0x72e   : > { %v3248_v5 = vpop.f32.mrf.mxu1 }
 0x72f   : > { %3285 = vst [vmem:[%s624_s28] sm:$0xff] %v3277_v21  ;;  %v3280_v19 = vadd.f32 %v3254_v7, %v6433_v22  ;;  %v3249_v53 = vadd.f32 %v3509_v40, %v3248_v5 }
 0x730   : > { %v3844_v3 = vpop.f32.mrf.mxu1 }
 0x731   : > { %3288 = vst [vmem:[%s624_s28 + $0x18] sm:$0xff] %v3280_v19  ;;  %v3279_v9 = vadd.f32 %v3249_v53, %v6430_v14  ;;  %v3264_v13 = vadd.f32 %v3844_v3, %v3509_v40 }
 0x732   : > { %v3258_v12 = vpop.f32.mrf.mxu1 }
 0x733   : > { %3287 = vst [vmem:[%s624_s28 + $0x10] sm:$0xff] %v3279_v9  ;;  %v3282_v31 = vadd.f32 %v3264_v13, %v6441_v52  ;;  %v3259_v10 = vadd.f32 %v3509_v40, %v3258_v12 }
 0x734   : > { %v3847_v27 = vpop.f32.mrf.mxu1 }
 0x735   : > { %3290 = vst [vmem:[%s624_s28 + $0x28] sm:$0xff] %v3282_v31  ;;  %v3281_v18 = vadd.f32 %v3259_v10, %v6438_v54  ;;  %v3274_v17 = vadd.f32 %v3847_v27, %v3509_v40 }
 0x736   : > { %v3268_v22 = vpop.f32.mrf.mxu1 }
 0x737   : > { %3289 = vst [vmem:[%s624_s28 + $0x20] sm:$0xff] %v3281_v18  ;;  %v3284_v14 = vadd.f32 %v3274_v17, %v6449_v4  ;;  %v3269_v52 = vadd.f32 %v3509_v40, %v3268_v22 }
 0x739   : > { %3292 = vst [vmem:[%s624_s28 + $0x38] sm:$0xff] %v3284_v14  ;;  %v3283_v54 = vadd.f32 %v3269_v52, %v6446_v8 }
 0x73b   : > { %3291 = vst [vmem:[%s624_s28 + $0x30] sm:$0xff] %v3283_v54 }
 0x73c   : > { %4273 = shalt.err (!%p4270_p6)
}
 0x73d   : > { %s4274_s5 = scalar_lea.hbm %s6509_s13, 1024  ;;  %s4278_s28 = scalar_lea.hbm %s6722_s26, 2048 }
 0x73e   : > { %p4275_p10 = scmp.ne.s32.totalorder %s6509_s13, %s4274_s5  ;;  %p4279_p2 = scmp.lt.s32.totalorder %s6509_s13, %s6722_s26 }
 0x73f   : > { %p4280_p5 = scmp.lt.s32.totalorder %s4278_s28, %s4274_s5 }
 0x740   : > { %p4276_p11 = pnand %p4275_p10, %p6723_p4 }
 0x741   : > { %p4281_p1 = por %p4280_p5, %p4279_p2 }
 0x742   : > { %p4277_p12 = pneg %p4276_p11 }
 0x744   : > { %p4282_p3 = pnand %p4281_p1, %p4277_p12 }
 0x746   : > { %4285 = shalt.err (!%p4282_p3)
}
 0x747   : > { %s4358_s17 = smov 128   ;;  %s4359_s14 = smov 8  }
 0x748   : > { %3906 = dma.vmem_to_hbm [thread:$0]  (%p6723_p4), %s6503_s4, 1024, %s6509_s13, %s3294_s27, %s4358_s17, %s4358_s17, %s4359_s14  }
 0x749 PF: > { %s3322_s10 = sand.u32 1, %s4324_s21   ;;  %p6724_p8 = scmp.ne.s32.totalorder %s6638_s30, 0 }
 0x74a   : > { %p6725_p9 = scmp.ge.s32.totalorder %s4336_s24, 2  ;;  %s3323_s20 = scalar_lea.sflag [#allocation4], %s3322_s10 }
 0x74c   : > { %p3932_p13 = pnand %p6725_p9, %p6724_p8 }
 0x74e   : > { %p3933_p0 = pneg %p3932_p13 }
 0x750   : > { %4319 = dma.done.wait (%p3933_p0), %s3323_s20, 1024  }
 0x751   : > { %4321 = vsyncadd (%p3933_p0), %s3323_s20, 4294966272  ;;  %s6726_s29 = sld [smem:[#allocation20_spill]]  ;;  %p32_p7 = scmp.ge.s32.totalorder %s4549_s19, 4  }
 0x752   : > { %s6727_s21 = smov %s4328_s22  ;;  %s6728_s22 = smov %s4332_s23 }
 0x753   : > { %s6730_s24 = smov %s4549_s19  ;;  %34 = sbr.rel (!%p32_p7) target bundleno = 19 (0x13), region = 165 }
 0x757   : > { %s6729_s23 = smov %s6726_s29 }
 0x758   :  { %3328 = vsyncpa [#allocation3], 1 }
 0x759   :  { %3330 = vsyncpa [#allocation3 + $0x1], 1 }
 0x75a   :  { %3331 = vsyncpa [#allocation6], 1 }
 0x75b   :  { %3332 = vsyncpa [#allocation9], 1 }
 0x75c   :  { %3333 = vsyncpa [#allocation12], 1 }
 0x75d   :  { %3334 = vsyncpa [#allocation4], 1 }
 0x75e   :  { %3336 = vsyncpa [#allocation4 + $0x1], 1 }

</bundles_post_ra>
